<compile_context>
chip_gen: v7x
topology: tpu7x:2x2x1
jax: 0.10.0
libtpu: 0.0.40
codegen_flags: <defaults>
</compile_context>

<pallas_src>
import functools

import numpy as np

import jax
import jax.numpy as jnp
from jax.experimental import pallas as pl
from jax.experimental.pallas import tpu as pltpu


CNN_NC = 256
CONV_CHANNELS = (16, 32, 64, CNN_NC)   # assumed get_base_cnn() channel plan
LANE = 128


def _round_up(x, m):
    return (x + m - 1) // m * m


# ----------------------------------------------------------------------------
# Structural tap constants (shape-only, trace-time numpy) for a 3x3 / stride-2
# / pad-1 conv: G[t, p_out, p_in] = 1 iff input spatial position p_in feeds
# output position p_out through kernel tap t = kh*3 + kw.
# ----------------------------------------------------------------------------
def _conv_taps(h, w):
    ho = (h + 2 - 3) // 2 + 1          # floor((h + 2p - k)/s) + 1
    wo = (w + 2 - 3) // 2 + 1
    g = np.zeros((9, ho * wo, h * w), np.float32)
    for kh in range(3):
        for kw in range(3):
            t = kh * 3 + kw
            for r in range(ho):
                hi = 2 * r + kh - 1
                if hi < 0 or hi >= h:
                    continue
                for c in range(wo):
                    wi = 2 * c + kw - 1
                    if wi < 0 or wi >= w:
                        continue
                    g[t, r * wo + c, hi * w + wi] = 1.0
    return g, ho, wo


# ----------------------------------------------------------------------------
# Fused forward kernel: 4 conv matmuls + ReLU, then f32 head (fc/l1/add/l2).
# Every intermediate activation stays in VMEM/registers.
# ----------------------------------------------------------------------------
def _fused_cnn_kernel(*refs, num_convs):
    x_ref, state_ref = refs[0], refs[1]
    conv_refs = refs[2:2 + 2 * num_convs]
    fcw_ref, fcb_ref, l1w_ref, l1b_ref, l2w_ref, l2b_ref = refs[2 + 2 * num_convs:-1]
    o_ref = refs[-1]

    x = x_ref[...]                                   # (bn, H*W*Cin) f32, lane dense
    for l in range(num_convs):
        t_ref = conv_refs[2 * l]                     # (Rin, Rout) bf16 unrolled conv
        b_ref = conv_refs[2 * l + 1]                 # (1, Rout)   f32 bias row
        acc = jnp.dot(x.astype(jnp.bfloat16), t_ref[...],
                      preferred_element_type=jnp.float32)
        x = jnp.maximum(acc + b_ref[...], 0.0)       # f32 ReLU

    # x is now the flattened CNN feature, (bn, 256).  Head stays f32.
    out1 = jnp.tanh(
        jnp.dot(x, fcw_ref[...], preferred_element_type=jnp.float32) + fcb_ref[...])
    out2 = jnp.tanh(
        jnp.dot(state_ref[...], l1w_ref[...], preferred_element_type=jnp.float32)
        + l1b_ref[...])
    h = out1 + out2
    o_ref[...] = jnp.tanh(
        jnp.dot(h, l2w_ref[...], preferred_element_type=jnp.float32)
        + l2b_ref[...]).astype(o_ref.dtype)


# ----------------------------------------------------------------------------
# Parameter init (PyTorch-default uniform init, raw layouts)
# ----------------------------------------------------------------------------
def _uniform(key, shape, fan_in):
    bound = 1.0 / np.sqrt(float(fan_in))
    return jax.random.uniform(key, shape, jnp.float32, -bound, bound)


def init_params(key, in_channels, state_dim, out_state_dim=200):
    chans = (in_channels,) + CONV_CHANNELS
    params = {"convs": []}
    for cin, cout in zip(chans[:-1], chans[1:]):
        key, kw, kb = jax.random.split(key, 3)
        fan_in = cin * 9
        w_torch = _uniform(kw, (cout, cin, 3, 3), fan_in)            # torch layout
        # -> (9, cin, cout) with t = kh*3 + kw, matching _conv_taps ordering.
        w_k = jnp.transpose(w_torch, (2, 3, 1, 0)).reshape(9, cin, cout)
        params["convs"].append((w_k, _uniform(kb, (1, cout), fan_in)))

    key, k1, k2, k3, k4, k5, k6 = jax.random.split(key, 7)
    params["fc_w"] = _uniform(k1, (CNN_NC, CNN_NC), CNN_NC)
    params["fc_b"] = _uniform(k2, (1, CNN_NC), CNN_NC)
    params["l1_w"] = _uniform(k3, (state_dim, CNN_NC), state_dim)
    params["l1_b"] = _uniform(k4, (1, CNN_NC), state_dim)
    params["l2_w"] = _uniform(k5, (CNN_NC, out_state_dim), CNN_NC)
    params["l2_b"] = _uniform(k6, (1, out_state_dim), CNN_NC)
    return params


# ----------------------------------------------------------------------------
# Fold raw params into kernel operands: one dense Toeplitz matrix + bias row
# per conv layer (bf16), f32 head weights padded to lane-dense shapes.
# Done ONCE outside the forward so the per-call cost is just the DMA.
# ----------------------------------------------------------------------------
def fold_params(params, image_hw, in_channels):
    h, w = image_hw
    cin = in_channels
    folded = {"convs": []}
    for (w_k, b) in params["convs"]:                 # w_k: (9, cin, cout) f32
        g, ho, wo = _conv_taps(h, w)                 # (9, Pout, Pin) structural 0/1
        cout = w_k.shape[2]
        # T[p_in*cin + c, p_out*cout + co] = sum_t G[t, p_out, p_in] * W[t, c, co]
        toep = jnp.einsum("tpq,tcd->qcpd", jnp.asarray(g), w_k)
        toep = toep.reshape(h * w * cin, ho * wo * cout).astype(jnp.bfloat16)
        brow = jnp.tile(b, (1, ho * wo))             # (1, Pout*cout) f32
        folded["convs"].append((toep, brow))
        h, w, cin = ho, wo, cout
    assert h == 1 and w == 1 and cin == CNN_NC, \
        "assumed base CNN must reduce spatial dims to 1x1 with 256 channels"

    state_dim = params["l1_w"].shape[0]
    state_pad = _round_up(max(state_dim, LANE), LANE)
    out_dim = params["l2_w"].shape[1]
    out_pad = _round_up(out_dim, LANE)

    folded["fc_w"] = params["fc_w"]
    folded["fc_b"] = params["fc_b"]
    folded["l1_w"] = jnp.pad(params["l1_w"], ((0, state_pad - state_dim), (0, 0)))
    folded["l1_b"] = params["l1_b"]
    folded["l2_w"] = jnp.pad(params["l2_w"], ((0, 0), (0, out_pad - out_dim)))
    folded["l2_b"] = jnp.pad(params["l2_b"], ((0, 0), (0, out_pad - out_dim)))
    return folded


# ----------------------------------------------------------------------------
# Forward wrapper: one layout conversion + ONE pallas_call + final slice.
# ----------------------------------------------------------------------------
def cnn_forward(folded, image, state, *, out_dim):
    """image: (N, C, H, W) f32 NCHW; state: (N, state_dim) f32."""
    n, c, h, w = image.shape
    # NCHW -> (N, H*W*C) per-sample HWC rows (lane-dense, matches Toeplitz layout).
    x2d = jnp.transpose(image, (0, 2, 3, 1)).reshape(n, h * w * c)
    state_pad = folded["l1_w"].shape[0]
    st = jnp.pad(state, ((0, 0), (0, state_pad - state.shape[1])))

    operands = [x2d, st]
    for (toep, brow) in folded["convs"]:
        operands += [toep, brow]
    operands += [folded["fc_w"], folded["fc_b"],
                 folded["l1_w"], folded["l1_b"],
                 folded["l2_w"], folded["l2_b"]]
    out_pad = folded["l2_w"].shape[1]                # lane-dense (multiple of 128)

    # Batch grid: trivially (1,) at small N, splits across v7x's 2 TCs at larger N.
    if n <= 8:
        bn = n
    elif n % 8 == 0:
        bn = 8
    else:
        bn = n
    grid = (n // bn,)

    def row_block(cols):
        return pl.BlockSpec((bn, cols), lambda i: (i, 0))

    def whole(arr):
        # Constant block index across the grid -> not re-fetched per step.
        return pl.BlockSpec(arr.shape, lambda i: (0, 0))

    in_specs = [row_block(x2d.shape[1]), row_block(state_pad)]
    in_specs += [whole(op) for op in operands[2:]]
    out_specs = row_block(out_pad)

    flops = 0
    for (toep, _) in folded["convs"]:
        flops += 2 * n * toep.shape[0] * toep.shape[1]
    flops += 2 * n * (CNN_NC * CNN_NC + state_pad * CNN_NC + CNN_NC * out_pad)
    bytes_acc = sum(int(np.prod(op.shape)) * op.dtype.itemsize for op in operands)
    bytes_acc += n * out_pad * 4
    cost = pl.CostEstimate(flops=flops,
                           transcendentals=n * 3 * CNN_NC,
                           bytes_accessed=bytes_acc)

    out = pl.pallas_call(
        functools.partial(_fused_cnn_kernel, num_convs=len(folded["convs"])),
        out_shape=jax.ShapeDtypeStruct((n, out_pad), jnp.float32),
        grid=grid,
        in_specs=in_specs,
        out_specs=out_specs,
        compiler_params=pltpu.CompilerParams(
            dimension_semantics=("parallel",),
            vmem_limit_bytes=32 * 1024 * 1024),
        cost_estimate=cost,
    )(*operands)
    return out[:, :out_dim]


# ----------------------------------------------------------------------------
# Pure-JAX reference of the same assumed module (for a correctness sanity check)
# ----------------------------------------------------------------------------
def _reference_forward(params, image, state):
    x = image
    for (w_k, b) in params["convs"]:
        cin, cout = w_k.shape[1], w_k.shape[2]
        w4 = jnp.transpose(w_k.reshape(3, 3, cin, cout), (3, 2, 0, 1))  # OIHW
        x = jax.lax.conv_general_dilated(
            x, w4, window_strides=(2, 2), padding=((1, 1), (1, 1)),
            dimension_numbers=("NCHW", "OIHW", "NCHW"))
        x = jnp.maximum(x + b.reshape(1, cout, 1, 1), 0.0)
    feat = x.reshape(x.shape[0], -1)
    out1 = jnp.tanh(feat @ params["fc_w"] + params["fc_b"])
    out2 = jnp.tanh(state @ params["l1_w"] + params["l1_b"])
    return jnp.tanh((out1 + out2) @ params["l2_w"] + params["l2_b"])


# ----------------------------------------------------------------------------
if __name__ == "__main__":
    key = jax.random.PRNGKey(0)
    k_img, k_state, k_params = jax.random.split(key, 3)

    N, C, H, W = 2, 4, 16, 16
    STATE_DIM = 8
    OUT_STATE_DIM = 200

    image = jax.random.normal(k_img, (N, C, H, W), jnp.float32)
    state = jax.random.normal(k_state, (N, STATE_DIM), jnp.float32)
    params = init_params(k_params, C, STATE_DIM, OUT_STATE_DIM)
    folded = jax.tree_util.tree_map(
        lambda x: x, fold_params(params, (H, W), C))   # folded once, reused per call

    fwd = jax.jit(cnn_forward, static_argnames=("out_dim",))
    out = fwd(folded, image, state, out_dim=OUT_STATE_DIM)
    out = jax.block_until_ready(out)

    assert out.shape == (N, OUT_STATE_DIM), out.shape
    assert bool(jnp.all(jnp.isfinite(out)))

    # Loose-tolerance check vs. an f32 XLA reference (kernel conv path is bf16).
    ref = np.asarray(_reference_forward(params, image, state))
    assert np.max(np.abs(ref - np.asarray(out))) < 0.1, \
        float(np.max(np.abs(ref - np.asarray(out))))

    print("KERNEL_OK")
</pallas_src>

<mosaic_0001>
module attributes {stable_mosaic.version = 11 : i64} {
  func.func @_fused_cnn_kernel(%arg0: i32, %arg1: memref<2x1024xf32, #tpu.memory_space<vmem>>, %arg2: memref<2x128xf32, #tpu.memory_space<vmem>>, %arg3: memref<1024x1024xbf16, #tpu.memory_space<vmem>>, %arg4: memref<1x1024xf32, #tpu.memory_space<vmem>>, %arg5: memref<1024x512xbf16, #tpu.memory_space<vmem>>, %arg6: memref<1x512xf32, #tpu.memory_space<vmem>>, %arg7: memref<512x256xbf16, #tpu.memory_space<vmem>>, %arg8: memref<1x256xf32, #tpu.memory_space<vmem>>, %arg9: memref<256x256xbf16, #tpu.memory_space<vmem>>, %arg10: memref<1x256xf32, #tpu.memory_space<vmem>>, %arg11: memref<256x256xf32, #tpu.memory_space<vmem>>, %arg12: memref<1x256xf32, #tpu.memory_space<vmem>>, %arg13: memref<128x256xf32, #tpu.memory_space<vmem>>, %arg14: memref<1x256xf32, #tpu.memory_space<vmem>>, %arg15: memref<256x256xf32, #tpu.memory_space<vmem>>, %arg16: memref<1x256xf32, #tpu.memory_space<vmem>>, %arg17: memref<2x256xf32, #tpu.memory_space<vmem>>) attributes {dimension_semantics = [#tpu.dimension_semantics<parallel>], iteration_bounds = array<i64: 1>, scalar_prefetch = 0 : i64, scratch_operands = 0 : i64, tpu.core_type = #tpu.core_type<tc>, window_params = [{transform_indices = @transform_0, window_bounds = array<i64: 2, 1024>}, {transform_indices = @transform_1, window_bounds = array<i64: 2, 128>}, {pipeline_mode = #tpu.pipeline_mode<synchronous>, transform_indices = @transform_2, window_bounds = array<i64: 1024, 1024>}, {pipeline_mode = #tpu.pipeline_mode<synchronous>, transform_indices = @transform_3, window_bounds = array<i64: 1, 1024>}, {pipeline_mode = #tpu.pipeline_mode<synchronous>, transform_indices = @transform_4, window_bounds = array<i64: 1024, 512>}, {pipeline_mode = #tpu.pipeline_mode<synchronous>, transform_indices = @transform_5, window_bounds = array<i64: 1, 512>}, {pipeline_mode = #tpu.pipeline_mode<synchronous>, transform_indices = @transform_6, window_bounds = array<i64: 512, 256>}, {pipeline_mode = #tpu.pipeline_mode<synchronous>, transform_indices = @transform_7, window_bounds = array<i64: 1, 256>}, {pipeline_mode = #tpu.pipeline_mode<synchronous>, transform_indices = @transform_8, window_bounds = array<i64: 256, 256>}, {pipeline_mode = #tpu.pipeline_mode<synchronous>, transform_indices = @transform_9, window_bounds = array<i64: 1, 256>}, {pipeline_mode = #tpu.pipeline_mode<synchronous>, transform_indices = @transform_10, window_bounds = array<i64: 256, 256>}, {pipeline_mode = #tpu.pipeline_mode<synchronous>, transform_indices = @transform_11, window_bounds = array<i64: 1, 256>}, {pipeline_mode = #tpu.pipeline_mode<synchronous>, transform_indices = @transform_12, window_bounds = array<i64: 128, 256>}, {pipeline_mode = #tpu.pipeline_mode<synchronous>, transform_indices = @transform_13, window_bounds = array<i64: 1, 256>}, {pipeline_mode = #tpu.pipeline_mode<synchronous>, transform_indices = @transform_14, window_bounds = array<i64: 256, 256>}, {pipeline_mode = #tpu.pipeline_mode<synchronous>, transform_indices = @transform_15, window_bounds = array<i64: 1, 256>}, {transform_indices = @transform_16, window_bounds = array<i64: 2, 256>}]} {
    %c0 = arith.constant 0 : index
    %c0_0 = arith.constant 0 : index
    %0 = vector.load %arg1[%c0, %c0_0] : memref<2x1024xf32, #tpu.memory_space<vmem>>, vector<2x1024xf32>
    %1 = arith.truncf %0 : vector<2x1024xf32> to vector<2x1024xbf16>
    %c0_1 = arith.constant 0 : index
    %c0_2 = arith.constant 0 : index
    %2 = vector.load %arg3[%c0_1, %c0_2] : memref<1024x1024xbf16, #tpu.memory_space<vmem>>, vector<1024x1024xbf16>
    %cst = arith.constant dense<0.000000e+00> : vector<2x1024xf32>
    %3 = tpu.matmul %1, %2, %cst {dimension_numbers = #tpu.dot_dimension_numbers<[1], [0], [0], [1], [0, 0, 1, 1], [], []>} : vector<2x1024xbf16>, vector<1024x1024xbf16>, vector<2x1024xf32> -> vector<2x1024xf32>
    %c0_3 = arith.constant 0 : index
    %c0_4 = arith.constant 0 : index
    %4 = vector.load %arg4[%c0_3, %c0_4] : memref<1x1024xf32, #tpu.memory_space<vmem>>, vector<1x1024xf32>
    %5 = vector.broadcast %4 : vector<1x1024xf32> to vector<2x1024xf32>
    %6 = arith.addf %3, %5 : vector<2x1024xf32>
    %cst_5 = arith.constant 0.000000e+00 : f32
    %7 = vector.broadcast %cst_5 : f32 to vector<2x1024xf32>
    %8 = arith.maximumf %6, %7 : vector<2x1024xf32>
    %9 = arith.truncf %8 : vector<2x1024xf32> to vector<2x1024xbf16>
    %c0_6 = arith.constant 0 : index
    %c0_7 = arith.constant 0 : index
    %10 = vector.load %arg5[%c0_6, %c0_7] : memref<1024x512xbf16, #tpu.memory_space<vmem>>, vector<1024x512xbf16>
    %cst_8 = arith.constant dense<0.000000e+00> : vector<2x512xf32>
    %11 = tpu.matmul %9, %10, %cst_8 {dimension_numbers = #tpu.dot_dimension_numbers<[1], [0], [0], [1], [0, 0, 1, 1], [], []>} : vector<2x1024xbf16>, vector<1024x512xbf16>, vector<2x512xf32> -> vector<2x512xf32>
    %c0_9 = arith.constant 0 : index
    %c0_10 = arith.constant 0 : index
    %12 = vector.load %arg6[%c0_9, %c0_10] : memref<1x512xf32, #tpu.memory_space<vmem>>, vector<1x512xf32>
    %13 = vector.broadcast %12 : vector<1x512xf32> to vector<2x512xf32>
    %14 = arith.addf %11, %13 : vector<2x512xf32>
    %cst_11 = arith.constant 0.000000e+00 : f32
    %15 = vector.broadcast %cst_11 : f32 to vector<2x512xf32>
    %16 = arith.maximumf %14, %15 : vector<2x512xf32>
    %17 = arith.truncf %16 : vector<2x512xf32> to vector<2x512xbf16>
    %c0_12 = arith.constant 0 : index
    %c0_13 = arith.constant 0 : index
    %18 = vector.load %arg7[%c0_12, %c0_13] : memref<512x256xbf16, #tpu.memory_space<vmem>>, vector<512x256xbf16>
    %cst_14 = arith.constant dense<0.000000e+00> : vector<2x256xf32>
    %19 = tpu.matmul %17, %18, %cst_14 {dimension_numbers = #tpu.dot_dimension_numbers<[1], [0], [0], [1], [0, 0, 1, 1], [], []>} : vector<2x512xbf16>, vector<512x256xbf16>, vector<2x256xf32> -> vector<2x256xf32>
    %c0_15 = arith.constant 0 : index
    %c0_16 = arith.constant 0 : index
    %20 = vector.load %arg8[%c0_15, %c0_16] : memref<1x256xf32, #tpu.memory_space<vmem>>, vector<1x256xf32>
    %21 = vector.broadcast %20 : vector<1x256xf32> to vector<2x256xf32>
    %22 = arith.addf %19, %21 : vector<2x256xf32>
    %cst_17 = arith.constant 0.000000e+00 : f32
    %23 = vector.broadcast %cst_17 : f32 to vector<2x256xf32>
    %24 = arith.maximumf %22, %23 : vector<2x256xf32>
    %25 = arith.truncf %24 : vector<2x256xf32> to vector<2x256xbf16>
    %c0_18 = arith.constant 0 : index
    %c0_19 = arith.constant 0 : index
    %26 = vector.load %arg9[%c0_18, %c0_19] : memref<256x256xbf16, #tpu.memory_space<vmem>>, vector<256x256xbf16>
    %cst_20 = arith.constant dense<0.000000e+00> : vector<2x256xf32>
    %27 = tpu.matmul %25, %26, %cst_20 {dimension_numbers = #tpu.dot_dimension_numbers<[1], [0], [0], [1], [0, 0, 1, 1], [], []>} : vector<2x256xbf16>, vector<256x256xbf16>, vector<2x256xf32> -> vector<2x256xf32>
    %c0_21 = arith.constant 0 : index
    %c0_22 = arith.constant 0 : index
    %28 = vector.load %arg10[%c0_21, %c0_22] : memref<1x256xf32, #tpu.memory_space<vmem>>, vector<1x256xf32>
    %29 = vector.broadcast %28 : vector<1x256xf32> to vector<2x256xf32>
    %30 = arith.addf %27, %29 : vector<2x256xf32>
    %cst_23 = arith.constant 0.000000e+00 : f32
    %31 = vector.broadcast %cst_23 : f32 to vector<2x256xf32>
    %32 = arith.maximumf %30, %31 : vector<2x256xf32>
    %c0_24 = arith.constant 0 : index
    %c0_25 = arith.constant 0 : index
    %33 = vector.load %arg11[%c0_24, %c0_25] : memref<256x256xf32, #tpu.memory_space<vmem>>, vector<256x256xf32>
    %cst_26 = arith.constant dense<0.000000e+00> : vector<2x256xf32>
    %34 = tpu.matmul %32, %33, %cst_26 {dimension_numbers = #tpu.dot_dimension_numbers<[1], [0], [0], [1], [0, 0, 1, 1], [], []>} : vector<2x256xf32>, vector<256x256xf32>, vector<2x256xf32> -> vector<2x256xf32>
    %c0_27 = arith.constant 0 : index
    %c0_28 = arith.constant 0 : index
    %35 = vector.load %arg12[%c0_27, %c0_28] : memref<1x256xf32, #tpu.memory_space<vmem>>, vector<1x256xf32>
    %36 = vector.broadcast %35 : vector<1x256xf32> to vector<2x256xf32>
    %37 = arith.addf %34, %36 : vector<2x256xf32>
    %38 = math.tanh %37 : vector<2x256xf32>
    %c0_29 = arith.constant 0 : index
    %c0_30 = arith.constant 0 : index
    %39 = vector.load %arg2[%c0_29, %c0_30] : memref<2x128xf32, #tpu.memory_space<vmem>>, vector<2x128xf32>
    %c0_31 = arith.constant 0 : index
    %c0_32 = arith.constant 0 : index
    %40 = vector.load %arg13[%c0_31, %c0_32] : memref<128x256xf32, #tpu.memory_space<vmem>>, vector<128x256xf32>
    %cst_33 = arith.constant dense<0.000000e+00> : vector<2x256xf32>
    %41 = tpu.matmul %39, %40, %cst_33 {dimension_numbers = #tpu.dot_dimension_numbers<[1], [0], [0], [1], [0, 0, 1, 1], [], []>} : vector<2x128xf32>, vector<128x256xf32>, vector<2x256xf32> -> vector<2x256xf32>
    %c0_34 = arith.constant 0 : index
    %c0_35 = arith.constant 0 : index
    %42 = vector.load %arg14[%c0_34, %c0_35] : memref<1x256xf32, #tpu.memory_space<vmem>>, vector<1x256xf32>
    %43 = vector.broadcast %42 : vector<1x256xf32> to vector<2x256xf32>
    %44 = arith.addf %41, %43 : vector<2x256xf32>
    %45 = math.tanh %44 : vector<2x256xf32>
    %46 = arith.addf %38, %45 : vector<2x256xf32>
    %c0_36 = arith.constant 0 : index
    %c0_37 = arith.constant 0 : index
    %47 = vector.load %arg15[%c0_36, %c0_37] : memref<256x256xf32, #tpu.memory_space<vmem>>, vector<256x256xf32>
    %cst_38 = arith.constant dense<0.000000e+00> : vector<2x256xf32>
    %48 = tpu.matmul %46, %47, %cst_38 {dimension_numbers = #tpu.dot_dimension_numbers<[1], [0], [0], [1], [0, 0, 1, 1], [], []>} : vector<2x256xf32>, vector<256x256xf32>, vector<2x256xf32> -> vector<2x256xf32>
    %c0_39 = arith.constant 0 : index
    %c0_40 = arith.constant 0 : index
    %49 = vector.load %arg16[%c0_39, %c0_40] : memref<1x256xf32, #tpu.memory_space<vmem>>, vector<1x256xf32>
    %50 = vector.broadcast %49 : vector<1x256xf32> to vector<2x256xf32>
    %51 = arith.addf %48, %50 : vector<2x256xf32>
    %52 = math.tanh %51 : vector<2x256xf32>
    %c0_41 = arith.constant 0 : index
    %c0_42 = arith.constant 0 : index
    %53 = vector.load %arg17[%c0_41, %c0_42] : memref<2x256xf32, #tpu.memory_space<vmem>>, vector<2x256xf32>
    tpu.vector_store %arg17[%c0_41, %c0_42], %52 {strides = array<i32>} : memref<2x256xf32, #tpu.memory_space<vmem>>, vector<2x256xf32>,
    return
  }
  func.func @transform_0(%arg0: i32) -> (i32, i32) {
    %c0_i32 = arith.constant 0 : i32
    %c0_i32_0 = arith.constant 0 : i32
    return %arg0, %c0_i32 : i32, i32
  }
  func.func @transform_1(%arg0: i32) -> (i32, i32) {
    %c0_i32 = arith.constant 0 : i32
    %c0_i32_0 = arith.constant 0 : i32
    return %arg0, %c0_i32 : i32, i32
  }
  func.func @transform_2(%arg0: i32) -> (i32, i32) {
    %c0_i32 = arith.constant 0 : i32
    %c0_i32_0 = arith.constant 0 : i32
    %c0_i32_1 = arith.constant 0 : i32
    return %c0_i32, %c0_i32_0 : i32, i32
  }
  func.func @transform_3(%arg0: i32) -> (i32, i32) {
    %c0_i32 = arith.constant 0 : i32
    %c0_i32_0 = arith.constant 0 : i32
    %c0_i32_1 = arith.constant 0 : i32
    return %c0_i32, %c0_i32_0 : i32, i32
  }
  func.func @transform_4(%arg0: i32) -> (i32, i32) {
    %c0_i32 = arith.constant 0 : i32
    %c0_i32_0 = arith.constant 0 : i32
    %c0_i32_1 = arith.constant 0 : i32
    return %c0_i32, %c0_i32_0 : i32, i32
  }
  func.func @transform_5(%arg0: i32) -> (i32, i32) {
    %c0_i32 = arith.constant 0 : i32
    %c0_i32_0 = arith.constant 0 : i32
    %c0_i32_1 = arith.constant 0 : i32
    return %c0_i32, %c0_i32_0 : i32, i32
  }
  func.func @transform_6(%arg0: i32) -> (i32, i32) {
    %c0_i32 = arith.constant 0 : i32
    %c0_i32_0 = arith.constant 0 : i32
    %c0_i32_1 = arith.constant 0 : i32
    return %c0_i32, %c0_i32_0 : i32, i32
  }
  func.func @transform_7(%arg0: i32) -> (i32, i32) {
    %c0_i32 = arith.constant 0 : i32
    %c0_i32_0 = arith.constant 0 : i32
    %c0_i32_1 = arith.constant 0 : i32
    return %c0_i32, %c0_i32_0 : i32, i32
  }
  func.func @transform_8(%arg0: i32) -> (i32, i32) {
    %c0_i32 = arith.constant 0 : i32
    %c0_i32_0 = arith.constant 0 : i32
    %c0_i32_1 = arith.constant 0 : i32
    return %c0_i32, %c0_i32_0 : i32, i32
  }
  func.func @transform_9(%arg0: i32) -> (i32, i32) {
    %c0_i32 = arith.constant 0 : i32
    %c0_i32_0 = arith.constant 0 : i32
    %c0_i32_1 = arith.constant 0 : i32
    return %c0_i32, %c0_i32_0 : i32, i32
  }
  func.func @transform_10(%arg0: i32) -> (i32, i32) {
    %c0_i32 = arith.constant 0 : i32
    %c0_i32_0 = arith.constant 0 : i32
    %c0_i32_1 = arith.constant 0 : i32
    return %c0_i32, %c0_i32_0 : i32, i32
  }
  func.func @transform_11(%arg0: i32) -> (i32, i32) {
    %c0_i32 = arith.constant 0 : i32
    %c0_i32_0 = arith.constant 0 : i32
    %c0_i32_1 = arith.constant 0 : i32
    return %c0_i32, %c0_i32_0 : i32, i32
  }
  func.func @transform_12(%arg0: i32) -> (i32, i32) {
    %c0_i32 = arith.constant 0 : i32
    %c0_i32_0 = arith.constant 0 : i32
    %c0_i32_1 = arith.constant 0 : i32
    return %c0_i32, %c0_i32_0 : i32, i32
  }
  func.func @transform_13(%arg0: i32) -> (i32, i32) {
    %c0_i32 = arith.constant 0 : i32
    %c0_i32_0 = arith.constant 0 : i32
    %c0_i32_1 = arith.constant 0 : i32
    return %c0_i32, %c0_i32_0 : i32, i32
  }
  func.func @transform_14(%arg0: i32) -> (i32, i32) {
    %c0_i32 = arith.constant 0 : i32
    %c0_i32_0 = arith.constant 0 : i32
    %c0_i32_1 = arith.constant 0 : i32
    return %c0_i32, %c0_i32_0 : i32, i32
  }
  func.func @transform_15(%arg0: i32) -> (i32, i32) {
    %c0_i32 = arith.constant 0 : i32
    %c0_i32_0 = arith.constant 0 : i32
    %c0_i32_1 = arith.constant 0 : i32
    return %c0_i32, %c0_i32_0 : i32, i32
  }
  func.func @transform_16(%arg0: i32) -> (i32, i32) {
    %c0_i32 = arith.constant 0 : i32
    %c0_i32_0 = arith.constant 0 : i32
    return %arg0, %c0_i32 : i32, i32
  }
}

</mosaic_0001>

<bundles_post_ra>
// kernel: cnn_forward.1
= control target key start
LH: loop header
LB: loop body
LE: loop exit
PB: predicated region body
PF: predicated region fallthrough
CT: control target
= control target key end

     0   :  { %s9641_s0 = inlined_call_operand.vmem [shape: f32[2,1024], index: 0, kind: input, shape index: {}]   ;;  %s9642_s1 = inlined_call_operand.vmem [shape: f32[2,128], index: 1, kind: input, shape index: {}]   ;;  %s9643_s2 = inlined_call_operand.hbm [shape: bf16[1024,1024], index: 2, kind: input, shape index: {}]   ;;  %s9644_s3 = inlined_call_operand.hbm [shape: f32[1,1024], index: 3, kind: input, shape index: {}]   ;;  %s9645_s4 = inlined_call_operand.hbm [shape: bf16[1024,512], index: 4, kind: input, shape index: {}]   ;;  %s9646_s5 = inlined_call_operand.hbm [shape: f32[1,512], index: 5, kind: input, shape index: {}]   ;;  %s9647_s6 = inlined_call_operand.hbm [shape: bf16[512,256], index: 6, kind: input, shape index: {}]   ;;  %s9648_s7 = inlined_call_operand.hbm [shape: f32[1,256], index: 7, kind: input, shape index: {}]   ;;  %s9649_s8 = inlined_call_operand.hbm [shape: bf16[256,256], index: 8, kind: input, shape index: {}]   ;;  %s9650_s9 = inlined_call_operand.hbm [shape: f32[1,256], index: 9, kind: input, shape index: {}]   ;;  %s9651_s10 = inlined_call_operand.hbm [shape: f32[256,256], index: 10, kind: input, shape index: {}]   ;;  %s9652_s11 = inlined_call_operand.hbm [shape: f32[1,256], index: 11, kind: input, shape index: {}]   ;;  %s9653_s12 = inlined_call_operand.hbm [shape: f32[128,256], index: 12, kind: input, shape index: {}]   ;;  %s9654_s13 = inlined_call_operand.hbm [shape: f32[1,256], index: 13, kind: input, shape index: {}]   ;;  %s9655_s14 = inlined_call_operand.hbm [shape: f32[256,256], index: 14, kind: input, shape index: {}]   ;;  %s9656_s15 = inlined_call_operand.hbm [shape: f32[1,256], index: 15, kind: input, shape index: {}]   ;;  %s9657_s16 = inlined_call_operand.hbm [shape: f32[2,256], index: 16, kind: output, shape index: {}]  }
   0x1   :  { %9659 = sst [smem:[#allocation35_spill]] %s9641_s0 }
   0x2   :  { %21 = vsyncpa [#allocation3], 0 }
   0x3   :  { %22 = vsyncpa [#allocation6], 0 }
   0x4   :  { %23 = vsyncpa [#allocation9], 0 }
   0x5   :  { %24 = vsyncpa [#allocation12], 0 }
   0x6   :  { %25 = vsyncpa [#allocation15], 0 }
   0x7   :  { %26 = vsyncpa [#allocation18], 0 }
   0x8   :  { %27 = vsyncpa [#allocation21], 0 }
   0x9   :  { %28 = vsyncpa [#allocation24], 0 }
   0xa   :  { %29 = vsyncpa [#allocation4], 0  ;;  %s9174_s21 = smov [#allocation5]   ;;  %s9175_s23 = smov [#allocation8]  }
   0xb   :  { %s52_s22 = sshll.u32 %s9174_s21, 4  ;;  %s74_s24 = sshll.u32 %s9175_s23, 4  ;;  %s53_s22 = int_to_ptr.vmem [resolvable:$true] %s52_s22  ;;  %s75_s24 = int_to_ptr.vmem [resolvable:$true] %s74_s24 }
   0xc   :  { %s8826_s27 = scalar_lea.hbm %s9644_s3, 128 }
   0xd   :  { %p8827_p0 = scmp.ne.s32.totalorder %s9644_s3, %s8826_s27  ;;  %p8830_p1 = scmp.lt.u32.totalorder %s8826_s27, %s9644_s3 }
   0xf   :  { %p8832_p2 = pnand %p8830_p1, %p8827_p0 }
  0x11   :  { %8835 = shalt.err (!%p8832_p2)
}
  0x12   :  { %s8836_s17 = scalar_lea.vmem %s53_s22, 128  ;;  %p8841_p4 = scmp.lt.s32.totalorder %s53_s22, %s53_s22 }
  0x13   :  { %p8837_p3 = scmp.ne.s32.totalorder %s53_s22, %s8836_s17  ;;  %p8842_p5 = scmp.lt.s32.totalorder %s8836_s17, %s8836_s17 }
  0x15   :  { %p8843_p6 = por %p8842_p5, %p8841_p4 }
  0x17   :  { %p8844_p7 = pnand %p8843_p6, %p8837_p3 }
  0x19   :  { %8847 = shalt.err (!%p8844_p7)
}
  0x1a   :  { %55 = dma.hbm_to_vmem [thread:$0]  %s9644_s3, 128, %s53_s22, [#allocation6]  }
  0x1b   :  { %s8848_s23 = scalar_lea.hbm %s9646_s5, 64 }
  0x1c   :  { %p8849_p8 = scmp.ne.s32.totalorder %s9646_s5, %s8848_s23  ;;  %p8852_p9 = scmp.lt.u32.totalorder %s8848_s23, %s9646_s5 }
  0x1e   :  { %p8854_p10 = pnand %p8852_p9, %p8849_p8 }
  0x20   :  { %8857 = shalt.err (!%p8854_p10)
}
  0x21   :  { %s8858_s29 = scalar_lea.vmem %s75_s24, 64  ;;  %p8863_p12 = scmp.lt.s32.totalorder %s75_s24, %s75_s24 }
  0x22   :  { %p8859_p11 = scmp.ne.s32.totalorder %s75_s24, %s8858_s29  ;;  %p8864_p13 = scmp.lt.s32.totalorder %s8858_s29, %s8858_s29 }
  0x24   :  { %p8865_p0 = por %p8864_p13, %p8863_p12 }
  0x26   :  { %p8866_p1 = pnand %p8865_p0, %p8859_p11 }
  0x28   :  { %8869 = shalt.err (!%p8866_p1)
}
  0x29   :  { %77 = dma.hbm_to_vmem [thread:$0]  %s9646_s5, 64, %s75_s24, [#allocation9]  }
  0x2a   :  { %s9176_s30 = smov [#allocation11]   ;;  %s9177_s17 = smov [#allocation14]  }
  0x2b   :  { %s96_s0 = sshll.u32 %s9176_s30, 4  ;;  %s118_s18 = sshll.u32 %s9177_s17, 4  ;;  %s97_s0 = int_to_ptr.vmem [resolvable:$true] %s96_s0  ;;  %s119_s18 = int_to_ptr.vmem [resolvable:$true] %s118_s18 }
  0x2c   :  { %s8870_s21 = scalar_lea.hbm %s9648_s7, 32 }
  0x2d   :  { %p8871_p2 = scmp.ne.s32.totalorder %s9648_s7, %s8870_s21  ;;  %p8874_p3 = scmp.lt.u32.totalorder %s8870_s21, %s9648_s7 }
  0x2f   :  { %p8876_p4 = pnand %p8874_p3, %p8871_p2 }
  0x31   :  { %8879 = shalt.err (!%p8876_p4)
}
  0x32   :  { %s8880_s5 = scalar_lea.vmem %s97_s0, 32  ;;  %p8885_p6 = scmp.lt.s32.totalorder %s97_s0, %s97_s0 }
  0x33   :  { %p8881_p5 = scmp.ne.s32.totalorder %s97_s0, %s8880_s5  ;;  %p8886_p7 = scmp.lt.s32.totalorder %s8880_s5, %s8880_s5 }
  0x35   :  { %p8887_p8 = por %p8886_p7, %p8885_p6 }
  0x37   :  { %p8888_p9 = pnand %p8887_p8, %p8881_p5 }
  0x39   :  { %8891 = shalt.err (!%p8888_p9)
}
  0x3a   :  { %99 = dma.hbm_to_vmem [thread:$0]  %s9648_s7, 32, %s97_s0, [#allocation12]  }
  0x3b   :  { %s8892_s22 = scalar_lea.hbm %s9650_s9, 32 }
  0x3c   :  { %p8893_p10 = scmp.ne.s32.totalorder %s9650_s9, %s8892_s22  ;;  %p8896_p11 = scmp.lt.u32.totalorder %s8892_s22, %s9650_s9 }
  0x3e   :  { %p8898_p12 = pnand %p8896_p11, %p8893_p10 }
  0x40   :  { %8901 = shalt.err (!%p8898_p12)
}
  0x41   :  { %s8902_s21 = scalar_lea.vmem %s119_s18, 32  ;;  %p8907_p0 = scmp.lt.s32.totalorder %s119_s18, %s119_s18 }
  0x42   :  { %p8903_p13 = scmp.ne.s32.totalorder %s119_s18, %s8902_s21  ;;  %p8908_p1 = scmp.lt.s32.totalorder %s8902_s21, %s8902_s21 }
  0x44   :  { %p8909_p2 = por %p8908_p1, %p8907_p0 }
  0x46   :  { %p8910_p3 = pnand %p8909_p2, %p8903_p13 }
  0x48   :  { %8913 = shalt.err (!%p8910_p3)
}
  0x49   :  { %121 = dma.hbm_to_vmem [thread:$0]  %s9650_s9, 32, %s119_s18, [#allocation15]  }
  0x4a   :  { %s9178_s23 = smov [#allocation17]   ;;  %s9179_s26 = smov [#allocation20]  }
  0x4b   :  { %s140_s25 = sshll.u32 %s9178_s23, 4  ;;  %s162_s27 = sshll.u32 %s9179_s26, 4  ;;  %s141_s25 = int_to_ptr.vmem [resolvable:$true] %s140_s25  ;;  %s163_s27 = int_to_ptr.vmem [resolvable:$true] %s162_s27 }
  0x4c   :  { %s8914_s28 = scalar_lea.hbm %s9652_s11, 32 }
  0x4d   :  { %p8915_p4 = scmp.ne.s32.totalorder %s9652_s11, %s8914_s28  ;;  %p8918_p5 = scmp.lt.u32.totalorder %s8914_s28, %s9652_s11 }
  0x4f   :  { %p8920_p6 = pnand %p8918_p5, %p8915_p4 }
  0x51   :  { %8923 = shalt.err (!%p8920_p6)
}
  0x52   :  { %s8924_s9 = scalar_lea.vmem %s141_s25, 32  ;;  %p8929_p8 = scmp.lt.s32.totalorder %s141_s25, %s141_s25 }
  0x53   :  { %p8925_p7 = scmp.ne.s32.totalorder %s141_s25, %s8924_s9  ;;  %p8930_p9 = scmp.lt.s32.totalorder %s8924_s9, %s8924_s9 }
  0x55   :  { %p8931_p10 = por %p8930_p9, %p8929_p8 }
  0x57   :  { %p8932_p11 = pnand %p8931_p10, %p8925_p7 }
  0x59   :  { %8935 = shalt.err (!%p8932_p11)
}
  0x5a   :  { %143 = dma.hbm_to_vmem [thread:$0]  %s9652_s11, 32, %s141_s25, [#allocation18]  }
  0x5b   :  { %s8936_s21 = scalar_lea.hbm %s9654_s13, 32 }
  0x5c   :  { %p8937_p12 = scmp.ne.s32.totalorder %s9654_s13, %s8936_s21  ;;  %p8940_p13 = scmp.lt.u32.totalorder %s8936_s21, %s9654_s13 }
  0x5e   :  { %p8942_p0 = pnand %p8940_p13, %p8937_p12 }
  0x60   :  { %8945 = shalt.err (!%p8942_p0)
}
  0x61   :  { %s8946_s5 = scalar_lea.vmem %s163_s27, 32  ;;  %p8951_p2 = scmp.lt.s32.totalorder %s163_s27, %s163_s27 }
  0x62   :  { %p8947_p1 = scmp.ne.s32.totalorder %s163_s27, %s8946_s5  ;;  %p8952_p3 = scmp.lt.s32.totalorder %s8946_s5, %s8946_s5 }
  0x64   :  { %p8953_p4 = por %p8952_p3, %p8951_p2 }
  0x66   :  { %p8954_p5 = pnand %p8953_p4, %p8947_p1 }
  0x68   :  { %8957 = shalt.err (!%p8954_p5)
}
  0x69   :  { %165 = dma.hbm_to_vmem [thread:$0]  %s9654_s13, 32, %s163_s27, [#allocation21]  }
  0x6a   :  { %s9180_s24 = smov [#allocation2]   ;;  %s8958_s22 = scalar_lea.hbm %s9643_s2, 65536 }
  0x6b   :  { %s39_s28 = sshll.u32 %s9180_s24, 4  ;;  %p8959_p6 = scmp.ne.s32.totalorder %s9643_s2, %s8958_s22  ;;  %s40_s28 = int_to_ptr.vmem [resolvable:$true] %s39_s28 }
  0x6c   :  { %p8962_p7 = scmp.lt.u32.totalorder %s8958_s22, %s9643_s2 }
  0x6e   :  { %p8964_p8 = pnand %p8962_p7, %p8959_p6 }
  0x70   :  { %8967 = shalt.err (!%p8964_p8)
}
  0x71   :  { %s8968_s19 = scalar_lea.vmem %s40_s28, 65536  ;;  %p8973_p10 = scmp.lt.s32.totalorder %s40_s28, %s40_s28 }
  0x72   :  { %p8969_p9 = scmp.ne.s32.totalorder %s40_s28, %s8968_s19  ;;  %p8974_p11 = scmp.lt.s32.totalorder %s8968_s19, %s8968_s19 }
  0x74   :  { %p8975_p12 = por %p8974_p11, %p8973_p10 }
  0x76   :  { %p8976_p13 = pnand %p8975_p12, %p8969_p9 }
  0x78   :  { %8979 = shalt.err (!%p8976_p13)
}
  0x79   :  { %s9181_s13 = smov 512   ;;  %s9182_s27 = smov 32  }
  0x7a   :  { %45 = dma.hbm_to_vmem [thread:$0]  %s9643_s2, 65536, %s40_s28, [#allocation3], %s9181_s13, %s9181_s13, %s9182_s27  }
  0x7b   :  { %s9183_s7 = smov [#allocation7]   ;;  %s8980_s5 = scalar_lea.hbm %s9645_s4, 32768 }
  0x7c   :  { %s61_s0 = sshll.u32 %s9183_s7, 4  ;;  %p8981_p0 = scmp.ne.s32.totalorder %s9645_s4, %s8980_s5  ;;  %s62_s0 = int_to_ptr.vmem [resolvable:$true] %s61_s0 }
  0x7d   :  { %p8984_p1 = scmp.lt.u32.totalorder %s8980_s5, %s9645_s4 }
  0x7f   :  { %p8986_p2 = pnand %p8984_p1, %p8981_p0 }
  0x81   :  { %8989 = shalt.err (!%p8986_p2)
}
  0x82   :  { %s8990_s3 = scalar_lea.vmem %s62_s0, 32768  ;;  %p8995_p4 = scmp.lt.s32.totalorder %s62_s0, %s62_s0 }
  0x83   :  { %p8991_p3 = scmp.ne.s32.totalorder %s62_s0, %s8990_s3  ;;  %p8996_p5 = scmp.lt.s32.totalorder %s8990_s3, %s8990_s3 }
  0x85   :  { %p8997_p6 = por %p8996_p5, %p8995_p4 }
  0x87   :  { %p8998_p7 = pnand %p8997_p6, %p8991_p3 }
  0x89   :  { %9001 = shalt.err (!%p8998_p7)
}
  0x8a   :  { %s9184_s2 = smov 256   ;;  %s9185_s28 = smov 16  }
  0x8b   :  { %67 = dma.hbm_to_vmem [thread:$0]  %s9645_s4, 32768, %s62_s0, [#allocation6], %s9184_s2, %s9184_s2, %s9185_s28  }
  0x8c   :  { %s9186_s9 = smov [#allocation10]   ;;  %s9002_s13 = scalar_lea.hbm %s9647_s6, 8192 }
  0x8d   :  { %s83_s18 = sshll.u32 %s9186_s9, 4  ;;  %p9003_p8 = scmp.ne.s32.totalorder %s9647_s6, %s9002_s13  ;;  %s84_s18 = int_to_ptr.vmem [resolvable:$true] %s83_s18 }
  0x8e   :  { %p9006_p9 = scmp.lt.u32.totalorder %s9002_s13, %s9647_s6 }
  0x90   :  { %p9008_p10 = pnand %p9006_p9, %p9003_p8 }
  0x92   :  { %9011 = shalt.err (!%p9008_p10)
}
  0x93   :  { %s9012_s23 = scalar_lea.vmem %s84_s18, 8192  ;;  %p9017_p12 = scmp.lt.s32.totalorder %s84_s18, %s84_s18 }
  0x94   :  { %p9013_p11 = scmp.ne.s32.totalorder %s84_s18, %s9012_s23  ;;  %p9018_p13 = scmp.lt.s32.totalorder %s9012_s23, %s9012_s23 }
  0x96   :  { %p9019_p0 = por %p9018_p13, %p9017_p12 }
  0x98   :  { %p9020_p1 = pnand %p9019_p0, %p9013_p11 }
  0x9a   :  { %9023 = shalt.err (!%p9020_p1)
}
  0x9b   :  { %s9187_s4 = smov 128   ;;  %s9188_s0 = smov 8  }
  0x9c   :  { %89 = dma.hbm_to_vmem [thread:$0]  %s9647_s6, 8192, %s84_s18, [#allocation9], %s9187_s4, %s9187_s4, %s9188_s0  }
  0x9d   :  { %s9189_s11 = smov [#allocation13]   ;;  %s9190_s24 = smov [#allocation16]  }
  0x9e   :  { %s105_s25 = sshll.u32 %s9189_s11, 4  ;;  %s127_s29 = sshll.u32 %s9190_s24, 4  ;;  %s106_s25 = int_to_ptr.vmem [resolvable:$true] %s105_s25  ;;  %s128_s29 = int_to_ptr.vmem [resolvable:$true] %s127_s29 }
  0x9f   :  { %s9024_s30 = scalar_lea.hbm %s9649_s8, 4096 }
  0xa0   :  { %p9025_p2 = scmp.ne.s32.totalorder %s9649_s8, %s9024_s30  ;;  %p9028_p3 = scmp.lt.u32.totalorder %s9024_s30, %s9649_s8 }
  0xa2   :  { %p9030_p4 = pnand %p9028_p3, %p9025_p2 }
  0xa4   :  { %9033 = shalt.err (!%p9030_p4)
}
  0xa5   :  { %s9034_s6 = scalar_lea.vmem %s106_s25, 4096  ;;  %p9039_p6 = scmp.lt.s32.totalorder %s106_s25, %s106_s25 }
  0xa6   :  { %p9035_p5 = scmp.ne.s32.totalorder %s106_s25, %s9034_s6  ;;  %p9040_p7 = scmp.lt.s32.totalorder %s9034_s6, %s9034_s6 }
  0xa8   :  { %p9041_p8 = por %p9040_p7, %p9039_p6 }
  0xaa   :  { %p9042_p9 = pnand %p9041_p8, %p9035_p5 }
  0xac   :  { %9045 = shalt.err (!%p9042_p9)
}
  0xad   :  { %111 = dma.hbm_to_vmem [thread:$0]  %s9649_s8, 4096, %s106_s25, [#allocation12], %s9187_s4, %s9187_s4, %s9188_s0  }
  0xae   :  { %s9046_s7 = scalar_lea.hbm %s9651_s10, 8192 }
  0xaf   :  { %p9047_p10 = scmp.ne.s32.totalorder %s9651_s10, %s9046_s7  ;;  %p9050_p11 = scmp.lt.u32.totalorder %s9046_s7, %s9651_s10 }
  0xb1   :  { %p9052_p12 = pnand %p9050_p11, %p9047_p10 }
  0xb3   :  { %9055 = shalt.err (!%p9052_p12)
}
  0xb4   :  { %s9056_s24 = scalar_lea.vmem %s128_s29, 8192  ;;  %p9061_p0 = scmp.lt.s32.totalorder %s128_s29, %s128_s29 }
  0xb5   :  { %p9057_p13 = scmp.ne.s32.totalorder %s128_s29, %s9056_s24  ;;  %p9062_p1 = scmp.lt.s32.totalorder %s9056_s24, %s9056_s24 }
  0xb7   :  { %p9063_p2 = por %p9062_p1, %p9061_p0 }
  0xb9   :  { %p9064_p3 = pnand %p9063_p2, %p9057_p13 }
  0xbb   :  { %9067 = shalt.err (!%p9064_p3)
}
  0xbc   :  { %133 = dma.hbm_to_vmem [thread:$0]  %s9651_s10, 8192, %s128_s29, [#allocation15], %s9184_s2, %s9184_s2, %s9185_s28  }
  0xbd   :  { %s9191_s0 = smov [#allocation19]   ;;  %s9192_s3 = smov [#allocation22]  }
  0xbe   :  { %s149_s25 = sshll.u32 %s9191_s0, 4  ;;  %s171_s22 = sshll.u32 %s9192_s3, 4  ;;  %s150_s25 = int_to_ptr.vmem [resolvable:$true] %s149_s25  ;;  %s172_s22 = int_to_ptr.vmem [resolvable:$true] %s171_s22 }
  0xbf   :  { %s9068_s17 = scalar_lea.hbm %s9653_s12, 4096 }
  0xc0   :  { %p9069_p4 = scmp.ne.s32.totalorder %s9653_s12, %s9068_s17  ;;  %p9072_p5 = scmp.lt.u32.totalorder %s9068_s17, %s9653_s12 }
  0xc2   :  { %p9074_p6 = pnand %p9072_p5, %p9069_p4 }
  0xc4   :  { %9077 = shalt.err (!%p9074_p6)
}
  0xc5   :  { %s9078_s10 = scalar_lea.vmem %s150_s25, 4096  ;;  %p9083_p8 = scmp.lt.s32.totalorder %s150_s25, %s150_s25 }
  0xc6   :  { %p9079_p7 = scmp.ne.s32.totalorder %s150_s25, %s9078_s10  ;;  %p9084_p9 = scmp.lt.s32.totalorder %s9078_s10, %s9078_s10 }
  0xc8   :  { %p9085_p10 = por %p9084_p9, %p9083_p8 }
  0xca   :  { %p9086_p11 = pnand %p9085_p10, %p9079_p7 }
  0xcc   :  { %9089 = shalt.err (!%p9086_p11)
}
  0xcd   :  { %155 = dma.hbm_to_vmem [thread:$0]  %s9653_s12, 4096, %s150_s25, [#allocation18], %s9184_s2, %s9184_s2, %s9185_s28  }
  0xce   :  { %s9090_s7 = scalar_lea.hbm %s9655_s14, 8192 }
  0xcf   :  { %p9091_p12 = scmp.ne.s32.totalorder %s9655_s14, %s9090_s7  ;;  %p9094_p13 = scmp.lt.u32.totalorder %s9090_s7, %s9655_s14 }
  0xd1   :  { %p9096_p0 = pnand %p9094_p13, %p9091_p12 }
  0xd3   :  { %9099 = shalt.err (!%p9096_p0)
}
  0xd4   :  { %s9100_s24 = scalar_lea.vmem %s172_s22, 8192  ;;  %p9105_p2 = scmp.lt.s32.totalorder %s172_s22, %s172_s22 }
  0xd5   :  { %p9101_p1 = scmp.ne.s32.totalorder %s172_s22, %s9100_s24  ;;  %p9106_p3 = scmp.lt.s32.totalorder %s9100_s24, %s9100_s24 }
  0xd7   :  { %p9107_p4 = por %p9106_p3, %p9105_p2 }
  0xd9   :  { %p9108_p5 = pnand %p9107_p4, %p9101_p1 }
  0xdb   :  { %9111 = shalt.err (!%p9108_p5)
}
  0xdc   :  { %177 = dma.hbm_to_vmem [thread:$0]  %s9655_s14, 8192, %s172_s22, [#allocation21], %s9184_s2, %s9184_s2, %s9185_s28  }
  0xdd   :  { %s9193_s4 = smov [#allocation23]   ;;  %s9112_s30 = scalar_lea.hbm %s9656_s15, 32 }
  0xde   :  { %s184_s0 = sshll.u32 %s9193_s4, 4  ;;  %p9113_p6 = scmp.ne.s32.totalorder %s9656_s15, %s9112_s30  ;;  %s185_s0 = int_to_ptr.vmem [resolvable:$true] %s184_s0 }
  0xdf   :  { %p9116_p7 = scmp.lt.u32.totalorder %s9112_s30, %s9656_s15 }
  0xe1   :  { %p9118_p8 = pnand %p9116_p7, %p9113_p6 }
  0xe3   :  { %9121 = shalt.err (!%p9118_p8)
}
  0xe4   :  { %s9122_s6 = scalar_lea.vmem %s185_s0, 32  ;;  %p9127_p10 = scmp.lt.s32.totalorder %s185_s0, %s185_s0 }
  0xe5   :  { %p9123_p9 = scmp.ne.s32.totalorder %s185_s0, %s9122_s6  ;;  %p9128_p11 = scmp.lt.s32.totalorder %s9122_s6, %s9122_s6 }
  0xe7   :  { %p9129_p12 = por %p9128_p11, %p9127_p10 }
  0xe9   :  { %p9130_p13 = pnand %p9129_p12, %p9123_p9 }
  0xeb   :  { %9133 = shalt.err (!%p9130_p13)
}
  0xec   :  { %187 = dma.hbm_to_vmem [thread:$0]  %s9656_s15, 32, %s185_s0, [#allocation24]  }
  0xed   :  { %9156 = dma.done.wait [#allocation3], 65536  }
  0xee   :  { %9157 = vsyncadd [#allocation3], 4294901760 }
  0xef   :  { %9158 = dma.done.wait [#allocation6], 32896  }
  0xf0   :  { %9159 = vsyncadd [#allocation6], 4294934400 }
  0xf1   :  { %9160 = dma.done.wait [#allocation9], 8256  }
  0xf2   :  { %9161 = vsyncadd [#allocation9], 4294959040 }
  0xf3   :  { %9162 = dma.done.wait [#allocation12], 4128  }
  0xf4   :  { %9163 = vsyncadd [#allocation12], 4294963168 }
  0xf5   :  { %9164 = dma.done.wait [#allocation15], 8224  }
  0xf6   :  { %9165 = vsyncadd [#allocation15], 4294959072 }
  0xf7   :  { %9166 = dma.done.wait [#allocation18], 4128  }
  0xf8   :  { %9167 = vsyncadd [#allocation18], 4294963168 }
  0xf9   :  { %9168 = dma.done.wait [#allocation21], 8224  }
  0xfa   :  { %9169 = vsyncadd [#allocation21], 4294959072 }
  0xfb   :  { %9170 = dma.done.wait [#allocation24], 32  }
  0xfc   :  { %9171 = vsyncadd [#allocation24], 4294967264  ;;  %v284_v0 = vld [vmem:[#allocation2] sm:$0xff]  ;;  %v285_v2 = vld [vmem:[#allocation2 + $0x8] sm:$0xff]  ;;  %v9194_v32 = vmov 1983009808   ;;  %v238_v34 = vlaneseq }
  0xfd   :  { %v288_v1 = vld [vmem:[#allocation2 + $0x20] sm:$0xff]  ;;  %v289_v4 = vld [vmem:[#allocation2 + $0x28] sm:$0xff]  ;;  %v236_v33 = vunpack.c.l.s4 %v9194_v32  ;;  %s9660_s22 = sld [smem:[#allocation35_spill]] }
  0xfe   :  { %v7146_v3 = vcombine.high %v284_v0, %v288_v1  ;;  %v7145_v5 = vcombine.low %v284_v0, %v288_v1  ;;  %v292_v6 = vld [vmem:[#allocation2 + $0x40] sm:$0xff]  ;;  %v7148_v8 = vcombine.high %v285_v2, %v289_v4  ;;  %v7147_v9 = vcombine.low %v285_v2, %v289_v4  ;;  %v293_v11 = vld [vmem:[#allocation2 + $0x48] sm:$0xff] }
  0xff   :  { %v296_v7 = vld [vmem:[#allocation2 + $0x60] sm:$0xff]  ;;  %v297_v12 = vld [vmem:[#allocation2 + $0x68] sm:$0xff]  ;;  %v237_v43 = vunpack.c.0.s8 %v236_v33  ;;  %v9462_v44 = vshrl.u32 %v238_v34, 7 }
 0x100   :  { %v7154_v10 = vcombine.high %v292_v6, %v296_v7  ;;  %v300_v13 = vld [vmem:[#allocation2 + $0x80] sm:$0xff]  ;;  %3398 = vmatprep.subr.bf16.mxu0 %v7146_v3  ;;  %v7156_v14 = vcombine.high %v293_v11, %v297_v12  ;;  %v301_v16 = vld [vmem:[#allocation2 + $0x88] sm:$0xff]  ;;  %3562 = vmatprep.subr.bf16.mxu1 %v7148_v8  ;;  %v7153_v18 = vcombine.low %v292_v6, %v296_v7 }
 0x101   :  { %v304_v15 = vld [vmem:[#allocation2 + $0xa0] sm:$0xff]  ;;  %v305_v17 = vld [vmem:[#allocation2 + $0xa8] sm:$0xff]  ;;  %3399 = vmatpush1.bf16.msra.mxu0 %v7145_v5  ;;  %3563 = vmatpush1.bf16.msra.mxu1 %v7147_v9  ;;  %v7155_v19 = vcombine.low %v293_v11, %v297_v12  ;;  %v9465_v53 = vsub.s32 %v237_v43, %v9462_v44 }
 0x102   :  { %3400 = vmatprep.subr.bf16.mxu0 %v7154_v10  ;;  %v7162_v20 = vcombine.high %v300_v13, %v304_v15  ;;  %3564 = vmatprep.subr.bf16.mxu1 %v7156_v14  ;;  %v7164_v21 = vcombine.high %v301_v16, %v305_v17  ;;  %v308_v22 = vld [vmem:[#allocation2 + $0xc0] sm:$0xff]  ;;  %v309_v24 = vld [vmem:[#allocation2 + $0xc8] sm:$0xff]  ;;  %v7161_v26 = vcombine.low %v300_v13, %v304_v15 }
 0x103   :  { %v312_v23 = vld [vmem:[#allocation2 + $0xe0] sm:$0xff]  ;;  %v313_v25 = vld [vmem:[#allocation2 + $0xe8] sm:$0xff]  ;;  %v7163_v27 = vcombine.low %v301_v16, %v305_v17 }
 0x104   :  { %v7170_v28 = vcombine.high %v308_v22, %v312_v23  ;;  %v7172_v29 = vcombine.high %v309_v24, %v313_v25  ;;  %v316_v30 = vld [vmem:[#allocation2 + $0x100] sm:$0xff]  ;;  %v317_v35 = vld [vmem:[#allocation2 + $0x108] sm:$0xff]  ;;  %v7169_v37 = vcombine.low %v308_v22, %v312_v23  ;;  %v7171_v38 = vcombine.low %v309_v24, %v313_v25 }
 0x105   :  { %3401 = vmatpush1.bf16.msra.mxu0 %v7153_v18  ;;  %3565 = vmatpush1.bf16.msra.mxu1 %v7155_v19  ;;  %v320_v31 = vld [vmem:[#allocation2 + $0x120] sm:$0xff]  ;;  %v321_v36 = vld [vmem:[#allocation2 + $0x128] sm:$0xff] }
 0x106   :  { %3402 = vmatprep.subr.bf16.mxu0 %v7162_v20  ;;  %3566 = vmatprep.subr.bf16.mxu1 %v7164_v21  ;;  %v7178_v39 = vcombine.high %v316_v30, %v320_v31  ;;  %v7180_v40 = vcombine.high %v317_v35, %v321_v36  ;;  %v324_v41 = vld [vmem:[#allocation2 + $0x140] sm:$0xff]  ;;  %v325_v45 = vld [vmem:[#allocation2 + $0x148] sm:$0xff]  ;;  %v7177_v47 = vcombine.low %v316_v30, %v320_v31 }
 0x107   :  { %v328_v42 = vld [vmem:[#allocation2 + $0x160] sm:$0xff]  ;;  %v329_v46 = vld [vmem:[#allocation2 + $0x168] sm:$0xff]  ;;  %v7179_v48 = vcombine.low %v317_v35, %v321_v36 }
 0x108   :  { %v7186_v49 = vcombine.high %v324_v41, %v328_v42  ;;  %v7188_v50 = vcombine.high %v325_v45, %v329_v46  ;;  %v332_v51 = vld [vmem:[#allocation2 + $0x180] sm:$0xff]  ;;  %v333_v54 = vld [vmem:[#allocation2 + $0x188] sm:$0xff]  ;;  %v7185_v56 = vcombine.low %v324_v41, %v328_v42  ;;  %v7187_v57 = vcombine.low %v325_v45, %v329_v46 }
 0x109   :  { %3403 = vmatpush1.bf16.msra.mxu0 %v7161_v26  ;;  %3567 = vmatpush1.bf16.msra.mxu1 %v7163_v27  ;;  %v336_v52 = vld [vmem:[#allocation2 + $0x1a0] sm:$0xff]  ;;  %v337_v55 = vld [vmem:[#allocation2 + $0x1a8] sm:$0xff] }
 0x10a   :  { %3404 = vmatprep.subr.bf16.mxu0 %v7170_v28  ;;  %3568 = vmatprep.subr.bf16.mxu1 %v7172_v29  ;;  %v7194_v58 = vcombine.high %v332_v51, %v336_v52  ;;  %v9470_v59 = vld [vmem:[%s9660_s22] sm:$0xff]  ;;  %v7196_v60 = vcombine.high %v333_v54, %v337_v55  ;;  %v341_v0 = vld [vmem:[#allocation2 + $0x1c8] sm:$0xff]  ;;  %v7193_v2 = vcombine.low %v332_v51, %v336_v52 }
 0x10b   :  { %v340_v61 = vld [vmem:[#allocation2 + $0x1c0] sm:$0xff]  ;;  %v9474_v63 = vrot.slane %v9470_v59, %v9465_v53  ;;  %v345_v1 = vld [vmem:[#allocation2 + $0x1e8] sm:$0xff]  ;;  %v7195_v4 = vcombine.low %v333_v54, %v337_v55 }
 0x10c   :  { %v344_v62 = vld [vmem:[#allocation2 + $0x1e0] sm:$0xff]  ;;  %v7204_v6 = vcombine.high %v341_v0, %v345_v1  ;;  %v349_v10 = vld [vmem:[#allocation2 + $0x208] sm:$0xff]  ;;  %v7203_v13 = vcombine.low %v341_v0, %v345_v1 }
 0x10d   :  { %3405 = vmatpush1.bf16.msra.mxu0 %v7169_v37  ;;  %3569 = vmatpush1.bf16.msra.mxu1 %v7171_v38  ;;  %v249_v3 = vcombine.high %v9474_v63, %v9474_v63  ;;  %v7202_v5 = vcombine.high %v340_v61, %v344_v62  ;;  %v348_v7 = vld [vmem:[#allocation2 + $0x200] sm:$0xff]  ;;  %v353_v11 = vld [vmem:[#allocation2 + $0x228] sm:$0xff]  ;;  %v7201_v12 = vcombine.low %v340_v61, %v344_v62 }
 0x10e   :  { %3406 = vmatprep.subr.bf16.mxu0 %v7178_v39  ;;  %3570 = vmatprep.subr.bf16.mxu1 %v7180_v40  ;;  %v352_v8 = vld [vmem:[#allocation2 + $0x220] sm:$0xff]  ;;  %v7212_v15 = vcombine.high %v349_v10, %v353_v11  ;;  %v357_v18 = vld [vmem:[#allocation2 + $0x248] sm:$0xff]  ;;  %v7211_v21 = vcombine.low %v349_v10, %v353_v11 }
 0x10f   :  { %v9478_v9 = vpack.c.bf16 %v249_v3, %v249_v3  ;;  %v7210_v14 = vcombine.high %v348_v7, %v352_v8  ;;  %v356_v16 = vld [vmem:[#allocation2 + $0x240] sm:$0xff]  ;;  %v361_v19 = vld [vmem:[#allocation2 + $0x268] sm:$0xff]  ;;  %v7209_v20 = vcombine.low %v348_v7, %v352_v8 }
 0x110   :  { %v360_v17 = vld [vmem:[#allocation2 + $0x260] sm:$0xff]  ;;  %v7220_v23 = vcombine.high %v357_v18, %v361_v19  ;;  %v365_v26 = vld [vmem:[#allocation2 + $0x288] sm:$0xff]  ;;  %v7219_v29 = vcombine.low %v357_v18, %v361_v19 }
 0x111   :  { %3407 = vmatpush1.bf16.msra.mxu0 %v7177_v47  ;;  %3571 = vmatpush1.bf16.msra.mxu1 %v7179_v48  ;;  %v7218_v22 = vcombine.high %v356_v16, %v360_v17  ;;  %v364_v24 = vld [vmem:[#allocation2 + $0x280] sm:$0xff]  ;;  %v369_v27 = vld [vmem:[#allocation2 + $0x2a8] sm:$0xff]  ;;  %v7217_v28 = vcombine.low %v356_v16, %v360_v17 }
 0x112   :  { %3408 = vmatprep.subr.bf16.mxu0 %v7186_v49  ;;  %3572 = vmatprep.subr.bf16.mxu1 %v7188_v50  ;;  %v368_v25 = vld [vmem:[#allocation2 + $0x2a0] sm:$0xff]  ;;  %v7228_v31 = vcombine.high %v365_v26, %v369_v27  ;;  %v373_v34 = vld [vmem:[#allocation2 + $0x2c8] sm:$0xff]  ;;  %v7227_v37 = vcombine.low %v365_v26, %v369_v27 }
 0x113   :  { %3430 = vmatprep.mubr.bf16.mxu0 %v9478_v9  ;;  %3594 = vmatprep.mubr.bf16.mxu1 %v9478_v9  ;;  %v7226_v30 = vcombine.high %v364_v24, %v368_v25  ;;  %v372_v32 = vld [vmem:[#allocation2 + $0x2c0] sm:$0xff]  ;;  %v377_v35 = vld [vmem:[#allocation2 + $0x2e8] sm:$0xff]  ;;  %v7225_v36 = vcombine.low %v364_v24, %v368_v25  ;;  %v9491_v25 = vpack.c.bf16 %v9474_v63, %v9474_v63 }
 0x114   :  { %v376_v33 = vld [vmem:[#allocation2 + $0x2e0] sm:$0xff]  ;;  %v7236_v39 = vcombine.high %v373_v34, %v377_v35  ;;  %v381_v42 = vld [vmem:[#allocation2 + $0x308] sm:$0xff]  ;;  %v7235_v46 = vcombine.low %v373_v34, %v377_v35 }
 0x115   :  { %3409 = vmatpush1.bf16.msra.mxu0 %v7185_v56  ;;  %3573 = vmatpush1.bf16.msra.mxu1 %v7187_v57  ;;  %v7234_v38 = vcombine.high %v372_v32, %v376_v33  ;;  %v380_v40 = vld [vmem:[#allocation2 + $0x300] sm:$0xff]  ;;  %v385_v43 = vld [vmem:[#allocation2 + $0x328] sm:$0xff]  ;;  %v7233_v45 = vcombine.low %v372_v32, %v376_v33 }
 0x116   :  { %3410 = vmatprep.subr.bf16.mxu0 %v7194_v58  ;;  %3574 = vmatprep.subr.bf16.mxu1 %v7196_v60  ;;  %v384_v41 = vld [vmem:[#allocation2 + $0x320] sm:$0xff]  ;;  %v7244_v48 = vcombine.high %v381_v42, %v385_v43  ;;  %v389_v51 = vld [vmem:[#allocation2 + $0x348] sm:$0xff]  ;;  %v7243_v55 = vcombine.low %v381_v42, %v385_v43 }
 0x117   :  { %v7242_v47 = vcombine.high %v380_v40, %v384_v41  ;;  %v388_v49 = vld [vmem:[#allocation2 + $0x340] sm:$0xff]  ;;  %v393_v52 = vld [vmem:[#allocation2 + $0x368] sm:$0xff]  ;;  %v7241_v54 = vcombine.low %v380_v40, %v384_v41 }
 0x118   :  { %v392_v50 = vld [vmem:[#allocation2 + $0x360] sm:$0xff]  ;;  %v7252_v57 = vcombine.high %v389_v51, %v393_v52  ;;  %v397_v61 = vld [vmem:[#allocation2 + $0x388] sm:$0xff]  ;;  %v7251_v1 = vcombine.low %v389_v51, %v393_v52 }
 0x119   :  { %3411 = vmatpush1.bf16.msra.mxu0 %v7193_v2  ;;  %3575 = vmatpush1.bf16.msra.mxu1 %v7195_v4  ;;  %v7250_v56 = vcombine.high %v388_v49, %v392_v50  ;;  %v396_v58 = vld [vmem:[#allocation2 + $0x380] sm:$0xff]  ;;  %v401_v62 = vld [vmem:[#allocation2 + $0x3a8] sm:$0xff]  ;;  %v7249_v0 = vcombine.low %v388_v49, %v392_v50 }
 0x11a   :  { %3412 = vmatprep.subr.bf16.mxu0 %v7202_v5  ;;  %3576 = vmatprep.subr.bf16.mxu1 %v7204_v6  ;;  %v400_v60 = vld [vmem:[#allocation2 + $0x3a0] sm:$0xff]  ;;  %v7260_v3 = vcombine.high %v397_v61, %v401_v62  ;;  %v234_v6 = vcombine.high %v9470_v59, %v9470_v59  ;;  %v405_v7 = vld [vmem:[#allocation2 + $0x3c8] sm:$0xff]  ;;  %v7259_v11 = vcombine.low %v397_v61, %v401_v62 }
 0x11b   :  { %v7258_v2 = vcombine.high %v396_v58, %v400_v60  ;;  %v404_v4 = vld [vmem:[#allocation2 + $0x3c0] sm:$0xff]  ;;  %v409_v8 = vld [vmem:[#allocation2 + $0x3e8] sm:$0xff]  ;;  %v7257_v10 = vcombine.low %v396_v58, %v400_v60 }
 0x11c   :  { %v408_v5 = vld [vmem:[#allocation2 + $0x3e0] sm:$0xff]  ;;  %v9485_v16 = vrot.slane %v234_v6, %v9465_v53  ;;  %v413_v17 = vld [vmem:[#allocation2 + $0x408] sm:$0xff]  ;;  %v7267_v59 = vcombine.low %v405_v7, %v409_v8 }
 0x11d   :  { %3413 = vmatpush1.bf16.msra.mxu0 %v7201_v12  ;;  %3577 = vmatpush1.bf16.msra.mxu1 %v7203_v13  ;;  %v7266_v12 = vcombine.high %v404_v4, %v408_v5  ;;  %v7268_v13 = vcombine.high %v405_v7, %v409_v8  ;;  %v417_v18 = vld [vmem:[#allocation2 + $0x428] sm:$0xff]  ;;  %v7265_v19 = vcombine.low %v404_v4, %v408_v5  ;;  %v432_v32 = vld [vmem:[#allocation2 + $0x4a0] sm:$0xff] }
 0x11e   :  { %3414 = vmatprep.subr.bf16.mxu0 %v7210_v14  ;;  %3578 = vmatprep.subr.bf16.mxu1 %v7212_v15  ;;  %v412_v14 = vld [vmem:[#allocation2 + $0x400] sm:$0xff]  ;;  %v250_v24 = vcombine.high %v9485_v16, %v9485_v16  ;;  %v421_v26 = vld [vmem:[#allocation2 + $0x448] sm:$0xff] }
 0x11f   :  { %v416_v15 = vld [vmem:[#allocation2 + $0x420] sm:$0xff]  ;;  %v425_v27 = vld [vmem:[#allocation2 + $0x468] sm:$0xff] }
 0x120   :  { %v429_v33 = vld [vmem:[#allocation2 + $0x488] sm:$0xff]  ;;  %v7284_v34 = vcombine.high %v421_v26, %v425_v27  ;;  %v440_v40 = vld [vmem:[#allocation2 + $0x4e0] sm:$0xff] }
 0x121   :  { %3415 = vmatpush1.bf16.msra.mxu0 %v7209_v20  ;;  %3579 = vmatpush1.bf16.msra.mxu1 %v7211_v21  ;;  %v7274_v20 = vcombine.high %v412_v14, %v416_v15  ;;  %v7276_v21 = vcombine.high %v413_v17, %v417_v18  ;;  %v433_v35 = vld [vmem:[#allocation2 + $0x4a8] sm:$0xff]  ;;  %v448_v49 = vld [vmem:[#allocation2 + $0x520] sm:$0xff] }
 0x122   :  { %3416 = vmatprep.subr.bf16.mxu0 %v7218_v22  ;;  %3580 = vmatprep.subr.bf16.mxu1 %v7220_v23  ;;  %v420_v22 = vld [vmem:[#allocation2 + $0x440] sm:$0xff]  ;;  %v437_v41 = vld [vmem:[#allocation2 + $0x4c8] sm:$0xff]  ;;  %v7292_v42 = vcombine.high %v429_v33, %v433_v35 }
 0x123   :  { %v424_v23 = vld [vmem:[#allocation2 + $0x460] sm:$0xff]  ;;  %v441_v43 = vld [vmem:[#allocation2 + $0x4e8] sm:$0xff] }
 0x124   :  { %v7281_v63 = vcombine.low %v420_v22, %v424_v23  ;;  %v445_v50 = vld [vmem:[#allocation2 + $0x508] sm:$0xff]  ;;  %v7300_v51 = vcombine.high %v437_v41, %v441_v43  ;;  %v456_v58 = vld [vmem:[#allocation2 + $0x560] sm:$0xff] }
 0x125   :  { %3417 = vmatpush1.bf16.msra.mxu0 %v7217_v28  ;;  %3581 = vmatpush1.bf16.msra.mxu1 %v7219_v29  ;;  %v7273_v28 = vcombine.low %v412_v14, %v416_v15  ;;  %v7275_v29 = vcombine.low %v413_v17, %v417_v18  ;;  %v449_v52 = vld [vmem:[#allocation2 + $0x528] sm:$0xff]  ;;  %v464_v4 = vld [vmem:[#allocation2 + $0x5a0] sm:$0xff] }
 0x126   :  { %3418 = vmatprep.subr.bf16.mxu0 %v7226_v30  ;;  %3582 = vmatprep.subr.bf16.mxu1 %v7228_v31  ;;  %v7282_v30 = vcombine.high %v420_v22, %v424_v23  ;;  %v428_v31 = vld [vmem:[#allocation2 + $0x480] sm:$0xff]  ;;  %v453_v60 = vld [vmem:[#allocation2 + $0x548] sm:$0xff]  ;;  %v7308_v61 = vcombine.high %v445_v50, %v449_v52 }
 0x127   :  { %v457_v62 = vld [vmem:[#allocation2 + $0x568] sm:$0xff] }
 0x128   :  { %v461_v5 = vld [vmem:[#allocation2 + $0x588] sm:$0xff]  ;;  %v7316_v6 = vcombine.high %v453_v60, %v457_v62 }
 0x129   :  { %3419 = vmatpush1.bf16.msra.mxu0 %v7225_v36  ;;  %3583 = vmatpush1.bf16.msra.mxu1 %v7227_v37  ;;  %v9493_v36 = vpack.c.bf16 %v250_v24, %v250_v24  ;;  %v7283_v37 = vcombine.low %v421_v26, %v425_v27  ;;  %v465_v7 = vld [vmem:[#allocation2 + $0x5a8] sm:$0xff] }
 0x12a   :  { %3420 = vmatprep.subr.bf16.mxu0 %v7234_v38  ;;  %3584 = vmatprep.subr.bf16.mxu1 %v7236_v39  ;;  %v7290_v38 = vcombine.high %v428_v31, %v432_v32  ;;  %v436_v39 = vld [vmem:[#allocation2 + $0x4c0] sm:$0xff]  ;;  %v469_v14 = vld [vmem:[#allocation2 + $0x5c8] sm:$0xff]  ;;  %v7324_v15 = vcombine.high %v461_v5, %v465_v7 }
 0x12b   :  { %v473_v17 = vld [vmem:[#allocation2 + $0x5e8] sm:$0xff] }
 0x12c   :  { %v477_v22 = vld [vmem:[#allocation2 + $0x608] sm:$0xff]  ;;  %v7332_v23 = vcombine.high %v469_v14, %v473_v17  ;;  %v7331_v27 = vcombine.low %v469_v14, %v473_v17  ;;  %v532_v17 = vld [vmem:[#allocation2 + $0x7c0] sm:$0xff] }
 0x12d   :  { %3421 = vmatpush1.bf16.msra.mxu0 %v7233_v45  ;;  %3585 = vmatpush1.bf16.msra.mxu1 %v7235_v46  ;;  %v7289_v45 = vcombine.low %v428_v31, %v432_v32  ;;  %v7291_v46 = vcombine.low %v429_v33, %v433_v35  ;;  %v481_v24 = vld [vmem:[#allocation2 + $0x628] sm:$0xff] }
 0x12e   :  { %3422 = vmatprep.subr.bf16.mxu0 %v7242_v47  ;;  %3586 = vmatprep.subr.bf16.mxu1 %v7244_v48  ;;  %v7298_v47 = vcombine.high %v436_v39, %v440_v40  ;;  %v444_v48 = vld [vmem:[#allocation2 + $0x500] sm:$0xff]  ;;  %v485_v31 = vld [vmem:[#allocation2 + $0x648] sm:$0xff]  ;;  %v7340_v32 = vcombine.high %v477_v22, %v481_v24  ;;  %v7339_v35 = vcombine.low %v477_v22, %v481_v24 }
 0x12f   :  { %v489_v33 = vld [vmem:[#allocation2 + $0x668] sm:$0xff] }
 0x130   :  { %v529_v14 = vld [vmem:[#allocation2 + $0x7a8] sm:$0xff] }
 0x131   :  { %3423 = vmatpush1.bf16.msra.mxu0 %v7241_v54  ;;  %3587 = vmatpush1.bf16.msra.mxu1 %v7243_v55  ;;  %v7297_v54 = vcombine.low %v436_v39, %v440_v40  ;;  %v7299_v55 = vcombine.low %v437_v41, %v441_v43  ;;  %v493_v39 = vld [vmem:[#allocation2 + $0x688] sm:$0xff]  ;;  %v7348_v40 = vcombine.high %v485_v31, %v489_v33 }
 0x132   :  { %3424 = vmatprep.subr.bf16.mxu0 %v7250_v56  ;;  %3588 = vmatprep.subr.bf16.mxu1 %v7252_v57  ;;  %v7306_v56 = vcombine.high %v444_v48, %v448_v49  ;;  %v452_v57 = vld [vmem:[#allocation2 + $0x540] sm:$0xff]  ;;  %v497_v41 = vld [vmem:[#allocation2 + $0x6a8] sm:$0xff]  ;;  %v7347_v43 = vcombine.low %v485_v31, %v489_v33 }
 0x133   :  { %v7313_v8 = vcombine.low %v452_v57, %v456_v58 }
 0x135   :  { %3425 = vmatpush1.bf16.msra.mxu0 %v7249_v0  ;;  %3589 = vmatpush1.bf16.msra.mxu1 %v7251_v1  ;;  %v7305_v0 = vcombine.low %v444_v48, %v448_v49  ;;  %v7307_v1 = vcombine.low %v445_v50, %v449_v52  ;;  %v501_v48 = vld [vmem:[#allocation2 + $0x6c8] sm:$0xff]  ;;  %v7356_v49 = vcombine.high %v493_v39, %v497_v41 }
 0x136   :  { %3426 = vmatprep.subr.bf16.mxu0 %v7258_v2  ;;  %3590 = vmatprep.subr.bf16.mxu1 %v7260_v3  ;;  %v7314_v2 = vcombine.high %v452_v57, %v456_v58  ;;  %v460_v3 = vld [vmem:[#allocation2 + $0x580] sm:$0xff]  ;;  %v505_v50 = vld [vmem:[#allocation2 + $0x6e8] sm:$0xff]  ;;  %v7355_v52 = vcombine.low %v493_v39, %v497_v41 }
 0x137   :  { %v7321_v18 = vcombine.low %v460_v3, %v464_v4  ;;  %v509_v57 = vld [vmem:[#allocation2 + $0x708] sm:$0xff]  ;;  %v7364_v58 = vcombine.high %v501_v48, %v505_v50 }
 0x138   :  { %v549_v39 = vld [vmem:[#allocation2 + $0x848] sm:$0xff] }
 0x139   :  { %3427 = vmatpush1.bf16.msra.mxu0 %v7257_v10  ;;  %3591 = vmatpush1.bf16.msra.mxu1 %v7259_v11  ;;  %v7315_v10 = vcombine.low %v453_v60, %v457_v62  ;;  %v7322_v11 = vcombine.high %v460_v3, %v464_v4  ;;  %v513_v60 = vld [vmem:[#allocation2 + $0x728] sm:$0xff]  ;;  %v7363_v62 = vcombine.low %v501_v48, %v505_v50  ;;  %v556_v48 = vld [vmem:[#allocation2 + $0x880] sm:$0xff] }
 0x13a   :  { %3428 = vmatprep.subr.bf16.mxu0 %v7266_v12  ;;  %3592 = vmatprep.subr.bf16.mxu1 %v7268_v13  ;;  %v468_v12 = vld [vmem:[#allocation2 + $0x5c0] sm:$0xff]  ;;  %v517_v3 = vld [vmem:[#allocation2 + $0x748] sm:$0xff]  ;;  %v7372_v4 = vcombine.high %v509_v57, %v513_v60 }
 0x13b   :  { %v472_v13 = vld [vmem:[#allocation2 + $0x5e0] sm:$0xff]  ;;  %v553_v41 = vld [vmem:[#allocation2 + $0x868] sm:$0xff] }
 0x13c   :  { %v7329_v26 = vcombine.low %v468_v12, %v472_v13  ;;  %v557_v50 = vld [vmem:[#allocation2 + $0x888] sm:$0xff] }
 0x13d   :  { %3429 = vmatpush1.bf16.msra.mxu0 %v7265_v19  ;;  %3593 = vmatpush1.bf16.msra.mxu1 %v7267_v59  ;;  %v7323_v19 = vcombine.low %v461_v5, %v465_v7  ;;  %v7330_v59 = vcombine.high %v468_v12, %v472_v13  ;;  %v521_v5 = vld [vmem:[#allocation2 + $0x768] sm:$0xff]  ;;  %v7371_v7 = vcombine.low %v509_v57, %v513_v60  ;;  %v564_v57 = vld [vmem:[#allocation2 + $0x8c0] sm:$0xff] }
 0x13e   :  { %3439 = vmatprep.subr.bf16.mxu0 %v7274_v20  ;;  %3603 = vmatprep.subr.bf16.mxu1 %v7276_v21  ;;  %v476_v20 = vld [vmem:[#allocation2 + $0x600] sm:$0xff]  ;;  %v525_v12 = vld [vmem:[#allocation2 + $0x788] sm:$0xff]  ;;  %v7380_v13 = vcombine.high %v517_v3, %v521_v5 }
 0x13f   :  { %v480_v21 = vld [vmem:[#allocation2 + $0x620] sm:$0xff]  ;;  %v7388_v22 = vcombine.high %v525_v12, %v529_v14  ;;  %v565_v60 = vld [vmem:[#allocation2 + $0x8c8] sm:$0xff] }
 0x140   :  { %3431 = vmatmul.mubr.bf16.vlgmr.msra.gmra.mrb[0].mxu0 %v9491_v25  ;;  %3595 = vmatmul.mubr.bf16.vlgmr.msra.gmra.mrb[0].mxu1 %v9491_v25 }
 0x141   :  { %3440 = vmatpush1.bf16.msra.mxu0 %v7273_v28  ;;  %3604 = vmatpush1.bf16.msra.mxu1 %v7275_v29  ;;  %v7338_v28 = vcombine.high %v476_v20, %v480_v21  ;;  %v484_v29 = vld [vmem:[#allocation2 + $0x640] sm:$0xff] }
 0x142   :  { %3441 = vmatprep.subr.bf16.mxu0 %v7282_v30  ;;  %3605 = vmatprep.subr.bf16.mxu1 %v7284_v34  ;;  %v488_v30 = vld [vmem:[#allocation2 + $0x660] sm:$0xff]  ;;  %v7337_v34 = vcombine.low %v476_v20, %v480_v21  ;;  %v533_v20 = vld [vmem:[#allocation2 + $0x7c8] sm:$0xff] }
 0x143   :  { %3471 = vmatprep.mubr.bf16.mxu0 %v9493_v36  ;;  %3635 = vmatprep.mubr.bf16.mxu1 %v9493_v36  ;;  %v537_v21 = vld [vmem:[#allocation2 + $0x7e8] sm:$0xff] }
 0x144   :  { %v7396_v31 = vcombine.high %v533_v20, %v537_v21 }
 0x145   :  { %3442 = vmatpush1.bf16.msra.mxu0 %v7281_v63  ;;  %3606 = vmatpush1.bf16.msra.mxu1 %v7283_v37  ;;  %v7346_v63 = vcombine.high %v484_v29, %v488_v30  ;;  %v492_v37 = vld [vmem:[#allocation2 + $0x680] sm:$0xff] }
 0x146   :  { %3443 = vmatprep.subr.bf16.mxu0 %v7290_v38  ;;  %3607 = vmatprep.subr.bf16.mxu1 %v7292_v42  ;;  %v496_v38 = vld [vmem:[#allocation2 + $0x6a0] sm:$0xff]  ;;  %v7345_v42 = vcombine.low %v484_v29, %v488_v30  ;;  %v541_v30 = vld [vmem:[#allocation2 + $0x808] sm:$0xff] }
 0x147   :  { %v544_v29 = vld [vmem:[#allocation2 + $0x820] sm:$0xff] }
 0x149   :  { %3444 = vmatpush1.bf16.msra.mxu0 %v7289_v45  ;;  %3608 = vmatpush1.bf16.msra.mxu1 %v7291_v46  ;;  %v7354_v45 = vcombine.high %v492_v37, %v496_v38  ;;  %v500_v46 = vld [vmem:[#allocation2 + $0x6c0] sm:$0xff] }
 0x14a   :  { %3445 = vmatprep.subr.bf16.mxu0 %v7298_v47  ;;  %3609 = vmatprep.subr.bf16.mxu1 %v7300_v51  ;;  %v504_v47 = vld [vmem:[#allocation2 + $0x6e0] sm:$0xff]  ;;  %v7353_v51 = vcombine.low %v492_v37, %v496_v38 }
 0x14b   :  { %v548_v37 = vld [vmem:[#allocation2 + $0x840] sm:$0xff] }
 0x14c   :  { %v552_v38 = vld [vmem:[#allocation2 + $0x860] sm:$0xff] }
 0x14d   :  { %3446 = vmatpush1.bf16.msra.mxu0 %v7297_v54  ;;  %3610 = vmatpush1.bf16.msra.mxu1 %v7299_v55  ;;  %v7362_v54 = vcombine.high %v500_v46, %v504_v47  ;;  %v508_v55 = vld [vmem:[#allocation2 + $0x700] sm:$0xff] }
 0x14e   :  { %3447 = vmatprep.subr.bf16.mxu0 %v7306_v56  ;;  %3611 = vmatprep.subr.bf16.mxu1 %v7308_v61  ;;  %v512_v56 = vld [vmem:[#allocation2 + $0x720] sm:$0xff]  ;;  %v7361_v61 = vcombine.low %v500_v46, %v504_v47  ;;  %v7410_v47 = vcombine.high %v548_v37, %v552_v38 }
 0x151   :  { %3448 = vmatpush1.bf16.msra.mxu0 %v7305_v0  ;;  %3612 = vmatpush1.bf16.msra.mxu1 %v7307_v1  ;;  %v7370_v0 = vcombine.high %v508_v55, %v512_v56  ;;  %v516_v1 = vld [vmem:[#allocation2 + $0x740] sm:$0xff] }
 0x152   :  { %3449 = vmatprep.subr.bf16.mxu0 %v7314_v2  ;;  %3613 = vmatprep.subr.bf16.mxu1 %v7316_v6  ;;  %v520_v2 = vld [vmem:[#allocation2 + $0x760] sm:$0xff]  ;;  %v7369_v6 = vcombine.low %v508_v55, %v512_v56  ;;  %v7411_v55 = vcombine.low %v549_v39, %v553_v41 }
 0x155   :  { %3450 = vmatpush1.bf16.msra.mxu0 %v7313_v8  ;;  %3614 = vmatpush1.bf16.msra.mxu1 %v7315_v10  ;;  %v7378_v8 = vcombine.high %v516_v1, %v520_v2  ;;  %v524_v10 = vld [vmem:[#allocation2 + $0x780] sm:$0xff] }
 0x156   :  { %3451 = vmatprep.subr.bf16.mxu0 %v7322_v11  ;;  %3615 = vmatprep.subr.bf16.mxu1 %v7324_v15  ;;  %v528_v11 = vld [vmem:[#allocation2 + $0x7a0] sm:$0xff]  ;;  %v7377_v15 = vcombine.low %v516_v1, %v520_v2 }
 0x157   :  { %v7385_v24 = vcombine.low %v524_v10, %v528_v11 }
 0x159   :  { %3452 = vmatpush1.bf16.msra.mxu0 %v7321_v18  ;;  %3616 = vmatpush1.bf16.msra.mxu1 %v7323_v19  ;;  %v7379_v18 = vcombine.low %v517_v3, %v521_v5  ;;  %v7386_v19 = vcombine.high %v524_v10, %v528_v11  ;;  %v572_v3 = vld [vmem:[#allocation2 + $0x900] sm:$0xff]  ;;  %v573_v5 = vld [vmem:[#allocation2 + $0x908] sm:$0xff] }
 0x15a   :  { %3453 = vmatprep.subr.bf16.mxu0 %v7330_v59  ;;  %3617 = vmatprep.subr.bf16.mxu1 %v7332_v23  ;;  %v536_v59 = vld [vmem:[#allocation2 + $0x7e0] sm:$0xff]  ;;  %v9502_v23 = vld [vmem:[%s9660_s22 + $0x8] sm:$0xff] }
 0x15b   :  { %v9506_v33 = vrot.slane %v9502_v23, %v9465_v53 }
 0x15d   :  { %3454 = vmatpush1.bf16.msra.mxu0 %v7329_v26  ;;  %3618 = vmatpush1.bf16.msra.mxu1 %v7331_v27  ;;  %v7387_v26 = vcombine.low %v525_v12, %v529_v14  ;;  %v7394_v27 = vcombine.high %v532_v17, %v536_v59  ;;  %v580_v12 = vld [vmem:[#allocation2 + $0x940] sm:$0xff]  ;;  %v581_v14 = vld [vmem:[#allocation2 + $0x948] sm:$0xff] }
 0x15e   :  { %3455 = vmatprep.subr.bf16.mxu0 %v7338_v28  ;;  %3619 = vmatprep.subr.bf16.mxu1 %v7340_v32  ;;  %v540_v28 = vld [vmem:[#allocation2 + $0x800] sm:$0xff]  ;;  %v545_v32 = vld [vmem:[#allocation2 + $0x828] sm:$0xff] }
 0x15f   :  { %v7403_v46 = vcombine.low %v541_v30, %v545_v32 }
 0x161   :  { %3456 = vmatpush1.bf16.msra.mxu0 %v7337_v34  ;;  %3620 = vmatpush1.bf16.msra.mxu1 %v7339_v35  ;;  %v7393_v34 = vcombine.low %v532_v17, %v536_v59  ;;  %v7395_v35 = vcombine.low %v533_v20, %v537_v21  ;;  %v585_v17 = vld [vmem:[#allocation2 + $0x968] sm:$0xff]  ;;  %v588_v20 = vld [vmem:[#allocation2 + $0x980] sm:$0xff] }
 0x162   :  { %3457 = vmatprep.subr.bf16.mxu0 %v7346_v63  ;;  %3621 = vmatprep.subr.bf16.mxu1 %v7348_v40  ;;  %v7402_v63 = vcombine.high %v540_v28, %v544_v29  ;;  %v7404_v40 = vcombine.high %v541_v30, %v545_v32  ;;  %v592_v21 = vld [vmem:[#allocation2 + $0x9a0] sm:$0xff]  ;;  %v597_v32 = vld [vmem:[#allocation2 + $0x9c8] sm:$0xff] }
 0x163   :  { %v596_v30 = vld [vmem:[#allocation2 + $0x9c0] sm:$0xff] }
 0x165   :  { %3458 = vmatpush1.bf16.msra.mxu0 %v7345_v42  ;;  %3622 = vmatpush1.bf16.msra.mxu1 %v7347_v43  ;;  %v266_v42 = vcombine.high %v9506_v33, %v9506_v33  ;;  %v9512_v43 = vpack.c.bf16 %v9485_v16, %v9485_v16  ;;  %v7409_v16 = vcombine.low %v548_v37, %v552_v38 }
 0x166   :  { %3459 = vmatprep.subr.bf16.mxu0 %v7354_v45  ;;  %3623 = vmatprep.subr.bf16.mxu1 %v7356_v49  ;;  %v7401_v45 = vcombine.low %v540_v28, %v544_v29  ;;  %v560_v49 = vld [vmem:[#allocation2 + $0x8a0] sm:$0xff]  ;;  %v7443_v28 = vcombine.low %v581_v14, %v585_v17  ;;  %v7450_v29 = vcombine.high %v588_v20, %v592_v21 }
 0x167   :  { %v7418_v56 = vcombine.high %v556_v48, %v560_v49 }
 0x169   :  { %3460 = vmatpush1.bf16.msra.mxu0 %v7353_v51  ;;  %3624 = vmatpush1.bf16.msra.mxu1 %v7355_v52  ;;  %v7412_v51 = vcombine.high %v549_v39, %v553_v41  ;;  %v561_v52 = vld [vmem:[#allocation2 + $0x8a8] sm:$0xff]  ;;  %v604_v39 = vld [vmem:[#allocation2 + $0xa00] sm:$0xff] }
 0x16a   :  { %3461 = vmatprep.subr.bf16.mxu0 %v7362_v54  ;;  %3625 = vmatprep.subr.bf16.mxu1 %v7364_v58  ;;  %v9514_v54 = vpack.c.bf16 %v266_v42, %v266_v42  ;;  %v568_v58 = vld [vmem:[#allocation2 + $0x8e0] sm:$0xff]  ;;  %v7419_v1 = vcombine.low %v557_v50, %v561_v52  ;;  %v605_v41 = vld [vmem:[#allocation2 + $0xa08] sm:$0xff] }
 0x16b   :  { %v7426_v2 = vcombine.high %v564_v57, %v568_v58 }
 0x16d   :  { %3462 = vmatpush1.bf16.msra.mxu0 %v7361_v61  ;;  %3626 = vmatpush1.bf16.msra.mxu1 %v7363_v62  ;;  %v7420_v61 = vcombine.high %v557_v50, %v561_v52  ;;  %v569_v62 = vld [vmem:[#allocation2 + $0x8e8] sm:$0xff]  ;;  %v616_v50 = vld [vmem:[#allocation2 + $0xa60] sm:$0xff] }
 0x16e   :  { %3463 = vmatprep.subr.bf16.mxu0 %v7370_v0  ;;  %3627 = vmatprep.subr.bf16.mxu1 %v7372_v4  ;;  %v7417_v0 = vcombine.low %v556_v48, %v560_v49  ;;  %v576_v4 = vld [vmem:[#allocation2 + $0x920] sm:$0xff]  ;;  %v7427_v10 = vcombine.low %v565_v60, %v569_v62 }
 0x16f   :  { %v7434_v11 = vcombine.high %v572_v3, %v576_v4  ;;  %v612_v49 = vld [vmem:[#allocation2 + $0xa40] sm:$0xff] }
 0x171   :  { %3464 = vmatpush1.bf16.msra.mxu0 %v7369_v6  ;;  %3628 = vmatpush1.bf16.msra.mxu1 %v7371_v7  ;;  %v7428_v6 = vcombine.high %v565_v60, %v569_v62  ;;  %v577_v7 = vld [vmem:[#allocation2 + $0x928] sm:$0xff]  ;;  %v624_v60 = vld [vmem:[#allocation2 + $0xaa0] sm:$0xff] }
 0x172   :  { %3465 = vmatprep.subr.bf16.mxu0 %v7378_v8  ;;  %3629 = vmatprep.subr.bf16.mxu1 %v7380_v13  ;;  %v7425_v8 = vcombine.low %v564_v57, %v568_v58  ;;  %v584_v13 = vld [vmem:[#allocation2 + $0x960] sm:$0xff]  ;;  %v7474_v57 = vcombine.high %v612_v49, %v616_v50 }
 0x173   :  { %v7442_v59 = vcombine.high %v580_v12, %v584_v13  ;;  %v620_v58 = vld [vmem:[#allocation2 + $0xa80] sm:$0xff] }
 0x175   :  { %3466 = vmatpush1.bf16.msra.mxu0 %v7377_v15  ;;  %3630 = vmatpush1.bf16.msra.mxu1 %v7379_v18  ;;  %v7436_v15 = vcombine.high %v573_v5, %v577_v7  ;;  %v7433_v18 = vcombine.low %v572_v3, %v576_v4  ;;  %v7482_v3 = vcombine.high %v620_v58, %v624_v60  ;;  %v628_v4 = vld [vmem:[#allocation2 + $0xac0] sm:$0xff] }
 0x176   :  { %3467 = vmatprep.subr.bf16.mxu0 %v7386_v19  ;;  %3631 = vmatprep.subr.bf16.mxu1 %v7388_v22  ;;  %v7435_v19 = vcombine.low %v573_v5, %v577_v7  ;;  %v589_v22 = vld [vmem:[#allocation2 + $0x988] sm:$0xff]  ;;  %v632_v5 = vld [vmem:[#allocation2 + $0xae0] sm:$0xff] }
 0x179   :  { %3468 = vmatpush1.bf16.msra.mxu0 %v7385_v24  ;;  %3632 = vmatpush1.bf16.msra.mxu1 %v7387_v26  ;;  %v7444_v24 = vcombine.high %v581_v14, %v585_v17  ;;  %v593_v26 = vld [vmem:[#allocation2 + $0x9a8] sm:$0xff]  ;;  %v640_v14 = vld [vmem:[#allocation2 + $0xb20] sm:$0xff] }
 0x17a   :  { %3469 = vmatprep.subr.bf16.mxu0 %v7394_v27  ;;  %3633 = vmatprep.subr.bf16.mxu1 %v7396_v31  ;;  %v7441_v27 = vcombine.low %v580_v12, %v584_v13  ;;  %v600_v31 = vld [vmem:[#allocation2 + $0x9e0] sm:$0xff]  ;;  %v7451_v37 = vcombine.low %v589_v22, %v593_v26  ;;  %v7490_v12 = vcombine.high %v628_v4, %v632_v5 }
 0x17b   :  { %v7458_v38 = vcombine.high %v596_v30, %v600_v31  ;;  %v636_v13 = vld [vmem:[#allocation2 + $0xb00] sm:$0xff] }
 0x17d   :  { %3470 = vmatpush1.bf16.msra.mxu0 %v7393_v34  ;;  %3634 = vmatpush1.bf16.msra.mxu1 %v7395_v35  ;;  %v7452_v34 = vcombine.high %v589_v22, %v593_v26  ;;  %v601_v35 = vld [vmem:[#allocation2 + $0x9e8] sm:$0xff]  ;;  %v648_v22 = vld [vmem:[#allocation2 + $0xb60] sm:$0xff] }
 0x17e   :  { %3480 = vmatprep.subr.bf16.mxu0 %v7402_v63  ;;  %3644 = vmatprep.subr.bf16.mxu1 %v7404_v40  ;;  %v7449_v63 = vcombine.low %v588_v20, %v592_v21  ;;  %v608_v40 = vld [vmem:[#allocation2 + $0xa20] sm:$0xff]  ;;  %v7460_v42 = vcombine.high %v597_v32, %v601_v35  ;;  %v7498_v20 = vcombine.high %v636_v13, %v640_v14 }
 0x17f   :  { %v7466_v48 = vcombine.high %v604_v39, %v608_v40  ;;  %v644_v21 = vld [vmem:[#allocation2 + $0xb40] sm:$0xff] }
 0x180   :  { %3472 = vmatmul.mubr.bf16.vlgmr.msra.gmra.mrb[0].mxu0 %v9512_v43  ;;  %3636 = vmatmul.mubr.bf16.vlgmr.msra.gmra.mrb[0].mxu1 %v9512_v43 }
 0x181   :  { %3481 = vmatpush1.bf16.msra.mxu0 %v7401_v45  ;;  %3645 = vmatpush1.bf16.msra.mxu1 %v7403_v46  ;;  %v609_v45 = vld [vmem:[#allocation2 + $0xa28] sm:$0xff]  ;;  %v7457_v46 = vcombine.low %v596_v30, %v600_v31  ;;  %v7506_v30 = vcombine.high %v644_v21, %v648_v22  ;;  %v652_v31 = vld [vmem:[#allocation2 + $0xb80] sm:$0xff] }
 0x182   :  { %3482 = vmatprep.subr.bf16.mxu0 %v7410_v47  ;;  %3646 = vmatprep.subr.bf16.mxu1 %v7412_v51  ;;  %v7459_v47 = vcombine.low %v597_v32, %v601_v35  ;;  %v613_v51 = vld [vmem:[#allocation2 + $0xa48] sm:$0xff]  ;;  %v7468_v52 = vcombine.high %v605_v41, %v609_v45  ;;  %v656_v32 = vld [vmem:[#allocation2 + $0xba0] sm:$0xff] }
 0x183   :  { %3512 = vmatprep.mubr.bf16.mxu0 %v9514_v54  ;;  %3676 = vmatprep.mubr.bf16.mxu1 %v9514_v54 }
 0x185   :  { %3483 = vmatpush1.bf16.msra.mxu0 %v7409_v16  ;;  %3647 = vmatpush1.bf16.msra.mxu1 %v7411_v55  ;;  %v617_v16 = vld [vmem:[#allocation2 + $0xa68] sm:$0xff]  ;;  %v7465_v55 = vcombine.low %v604_v39, %v608_v40  ;;  %v7514_v39 = vcombine.high %v652_v31, %v656_v32  ;;  %v660_v40 = vld [vmem:[#allocation2 + $0xbc0] sm:$0xff] }
 0x186   :  { %3484 = vmatprep.subr.bf16.mxu0 %v7418_v56  ;;  %3648 = vmatprep.subr.bf16.mxu1 %v7420_v61  ;;  %v7467_v56 = vcombine.low %v605_v41, %v609_v45  ;;  %v621_v61 = vld [vmem:[#allocation2 + $0xa88] sm:$0xff]  ;;  %v7476_v62 = vcombine.high %v613_v51, %v617_v16  ;;  %v664_v41 = vld [vmem:[#allocation2 + $0xbe0] sm:$0xff] }
 0x189   :  { %3485 = vmatpush1.bf16.msra.mxu0 %v7417_v0  ;;  %3649 = vmatpush1.bf16.msra.mxu1 %v7419_v1  ;;  %v625_v0 = vld [vmem:[#allocation2 + $0xaa8] sm:$0xff]  ;;  %v7473_v1 = vcombine.low %v612_v49, %v616_v50  ;;  %v7522_v50 = vcombine.high %v660_v40, %v664_v41 }
 0x18a   :  { %3486 = vmatprep.subr.bf16.mxu0 %v7426_v2  ;;  %3650 = vmatprep.subr.bf16.mxu1 %v7428_v6  ;;  %v7475_v2 = vcombine.low %v613_v51, %v617_v16  ;;  %v629_v6 = vld [vmem:[#allocation2 + $0xac8] sm:$0xff]  ;;  %v7484_v7 = vcombine.high %v621_v61, %v625_v0  ;;  %v668_v51 = vld [vmem:[#allocation2 + $0xc00] sm:$0xff] }
 0x18b   :  { %v669_v16 = vld [vmem:[#allocation2 + $0xc08] sm:$0xff] }
 0x18d   :  { %3487 = vmatpush1.bf16.msra.mxu0 %v7425_v8  ;;  %3651 = vmatpush1.bf16.msra.mxu1 %v7427_v10  ;;  %v633_v8 = vld [vmem:[#allocation2 + $0xae8] sm:$0xff]  ;;  %v7481_v10 = vcombine.low %v620_v58, %v624_v60  ;;  %v7521_v58 = vcombine.low %v660_v40, %v664_v41 }
 0x18e   :  { %3488 = vmatprep.subr.bf16.mxu0 %v7434_v11  ;;  %3652 = vmatprep.subr.bf16.mxu1 %v7436_v15  ;;  %v7483_v11 = vcombine.low %v621_v61, %v625_v0  ;;  %v637_v15 = vld [vmem:[#allocation2 + $0xb08] sm:$0xff]  ;;  %v7492_v17 = vcombine.high %v629_v6, %v633_v8  ;;  %v676_v61 = vld [vmem:[#allocation2 + $0xc40] sm:$0xff] }
 0x18f   :  { %v677_v0 = vld [vmem:[#allocation2 + $0xc48] sm:$0xff] }
 0x191   :  { %3489 = vmatpush1.bf16.msra.mxu0 %v7433_v18  ;;  %3653 = vmatpush1.bf16.msra.mxu1 %v7435_v19  ;;  %v641_v18 = vld [vmem:[#allocation2 + $0xb28] sm:$0xff]  ;;  %v7489_v19 = vcombine.low %v628_v4, %v632_v5  ;;  %v9529_v4 = vpack.c.bf16 %v9506_v33, %v9506_v33 }
 0x192   :  { %3490 = vmatprep.subr.bf16.mxu0 %v7442_v59  ;;  %3654 = vmatprep.subr.bf16.mxu1 %v7444_v24  ;;  %v7491_v59 = vcombine.low %v629_v6, %v633_v8  ;;  %v645_v24 = vld [vmem:[#allocation2 + $0xb48] sm:$0xff]  ;;  %v7500_v26 = vcombine.high %v637_v15, %v641_v18  ;;  %v688_v8 = vld [vmem:[#allocation2 + $0xca0] sm:$0xff] }
 0x195   :  { %3491 = vmatpush1.bf16.msra.mxu0 %v7441_v27  ;;  %3655 = vmatpush1.bf16.msra.mxu1 %v7443_v28  ;;  %v649_v27 = vld [vmem:[#allocation2 + $0xb68] sm:$0xff]  ;;  %v7497_v28 = vcombine.low %v636_v13, %v640_v14 }
 0x196   :  { %3492 = vmatprep.subr.bf16.mxu0 %v7450_v29  ;;  %3656 = vmatprep.subr.bf16.mxu1 %v7452_v34  ;;  %v7499_v29 = vcombine.low %v637_v15, %v641_v18  ;;  %v653_v34 = vld [vmem:[#allocation2 + $0xb88] sm:$0xff]  ;;  %v7508_v35 = vcombine.high %v645_v24, %v649_v27  ;;  %v696_v18 = vld [vmem:[#allocation2 + $0xce0] sm:$0xff] }
 0x199   :  { %3493 = vmatpush1.bf16.msra.mxu0 %v7449_v63  ;;  %3657 = vmatpush1.bf16.msra.mxu1 %v7451_v37  ;;  %v657_v63 = vld [vmem:[#allocation2 + $0xba8] sm:$0xff]  ;;  %v7505_v37 = vcombine.low %v644_v21, %v648_v22 }
 0x19a   :  { %3494 = vmatprep.subr.bf16.mxu0 %v7458_v38  ;;  %3658 = vmatprep.subr.bf16.mxu1 %v7460_v42  ;;  %v7507_v38 = vcombine.low %v645_v24, %v649_v27  ;;  %v661_v42 = vld [vmem:[#allocation2 + $0xbc8] sm:$0xff]  ;;  %v7516_v45 = vcombine.high %v653_v34, %v657_v63  ;;  %v7515_v49 = vcombine.low %v653_v34, %v657_v63  ;;  %v704_v27 = vld [vmem:[#allocation2 + $0xd20] sm:$0xff] }
 0x19b   :  { %v712_v63 = vld [vmem:[#allocation2 + $0xd60] sm:$0xff] }
 0x19d   :  { %3495 = vmatpush1.bf16.msra.mxu0 %v7457_v46  ;;  %3659 = vmatpush1.bf16.msra.mxu1 %v7459_v47  ;;  %v665_v46 = vld [vmem:[#allocation2 + $0xbe8] sm:$0xff]  ;;  %v251_v47 = vcombine.high %v9502_v23, %v9502_v23 }
 0x19e   :  { %3496 = vmatprep.subr.bf16.mxu0 %v7466_v48  ;;  %3660 = vmatprep.subr.bf16.mxu1 %v7468_v52  ;;  %v7513_v48 = vcombine.low %v652_v31, %v656_v32  ;;  %v672_v52 = vld [vmem:[#allocation2 + $0xc20] sm:$0xff]  ;;  %v7523_v23 = vcombine.low %v661_v42, %v665_v46 }
 0x19f   :  { %v7530_v60 = vcombine.high %v668_v51, %v672_v52 }
 0x1a1   :  { %3497 = vmatpush1.bf16.msra.mxu0 %v7465_v55  ;;  %3661 = vmatpush1.bf16.msra.mxu1 %v7467_v56  ;;  %v7524_v55 = vcombine.high %v661_v42, %v665_v46  ;;  %v673_v56 = vld [vmem:[#allocation2 + $0xc28] sm:$0xff]  ;;  %v720_v46 = vld [vmem:[#allocation2 + $0xda0] sm:$0xff] }
 0x1a2   :  { %3498 = vmatprep.subr.bf16.mxu0 %v7474_v57  ;;  %3662 = vmatprep.subr.bf16.mxu1 %v7476_v62  ;;  %v9523_v57 = vrot.slane %v251_v47, %v9465_v53  ;;  %v680_v62 = vld [vmem:[#allocation2 + $0xc60] sm:$0xff]  ;;  %v7529_v53 = vcombine.low %v668_v51, %v672_v52  ;;  %v7531_v5 = vcombine.low %v669_v16, %v673_v56  ;;  %v717_v47 = vld [vmem:[#allocation2 + $0xd88] sm:$0xff] }
 0x1a3   :  { %v7538_v6 = vcombine.high %v676_v61, %v680_v62  ;;  %v7537_v33 = vcombine.low %v676_v61, %v680_v62 }
 0x1a5   :  { %3499 = vmatpush1.bf16.msra.mxu0 %v7473_v1  ;;  %3663 = vmatpush1.bf16.msra.mxu1 %v7475_v2  ;;  %v7532_v1 = vcombine.high %v669_v16, %v673_v56  ;;  %v681_v2 = vld [vmem:[#allocation2 + $0xc68] sm:$0xff]  ;;  %v724_v16 = vld [vmem:[#allocation2 + $0xdc0] sm:$0xff] }
 0x1a6   :  { %3500 = vmatprep.subr.bf16.mxu0 %v7482_v3  ;;  %3664 = vmatprep.subr.bf16.mxu1 %v7484_v7  ;;  %v267_v3 = vcombine.high %v9523_v57, %v9523_v57  ;;  %v684_v7 = vld [vmem:[#allocation2 + $0xc80] sm:$0xff]  ;;  %v7539_v14 = vcombine.low %v677_v0, %v681_v2  ;;  %v725_v56 = vld [vmem:[#allocation2 + $0xdc8] sm:$0xff] }
 0x1a7   :  { %v7546_v15 = vcombine.high %v684_v7, %v688_v8  ;;  %v7545_v21 = vcombine.low %v684_v7, %v688_v8  ;;  %v740_v8 = vld [vmem:[#allocation2 + $0xe40] sm:$0xff] }
 0x1a8   :  { %v9531_v13 = vpack.c.bf16 %v267_v3, %v267_v3 }
 0x1a9   :  { %3501 = vmatpush1.bf16.msra.mxu0 %v7481_v10  ;;  %3665 = vmatpush1.bf16.msra.mxu1 %v7483_v11  ;;  %v685_v10 = vld [vmem:[#allocation2 + $0xc88] sm:$0xff]  ;;  %v7540_v11 = vcombine.high %v677_v0, %v681_v2  ;;  %v732_v0 = vld [vmem:[#allocation2 + $0xe00] sm:$0xff] }
 0x1aa   :  { %3502 = vmatprep.subr.bf16.mxu0 %v7490_v12  ;;  %3666 = vmatprep.subr.bf16.mxu1 %v7492_v17  ;;  %v689_v12 = vld [vmem:[#allocation2 + $0xca8] sm:$0xff]  ;;  %v692_v17 = vld [vmem:[#allocation2 + $0xcc0] sm:$0xff] }
 0x1ab   :  { %v7547_v22 = vcombine.low %v685_v10, %v689_v12  ;;  %v7554_v24 = vcombine.high %v692_v17, %v696_v18  ;;  %v7553_v31 = vcombine.low %v692_v17, %v696_v18  ;;  %v733_v2 = vld [vmem:[#allocation2 + $0xe08] sm:$0xff]  ;;  %v748_v18 = vld [vmem:[#allocation2 + $0xe80] sm:$0xff] }
 0x1ad   :  { %3503 = vmatpush1.bf16.msra.mxu0 %v7489_v19  ;;  %3667 = vmatpush1.bf16.msra.mxu1 %v7491_v59  ;;  %v693_v19 = vld [vmem:[#allocation2 + $0xcc8] sm:$0xff]  ;;  %v7548_v59 = vcombine.high %v685_v10, %v689_v12  ;;  %v744_v10 = vld [vmem:[#allocation2 + $0xe60] sm:$0xff] }
 0x1ae   :  { %3504 = vmatprep.subr.bf16.mxu0 %v7498_v20  ;;  %3668 = vmatprep.subr.bf16.mxu1 %v7500_v26  ;;  %v697_v20 = vld [vmem:[#allocation2 + $0xce8] sm:$0xff]  ;;  %v700_v26 = vld [vmem:[#allocation2 + $0xd00] sm:$0xff]  ;;  %v7602_v17 = vcombine.high %v740_v8, %v744_v10 }
 0x1af   :  { %v7555_v32 = vcombine.low %v693_v19, %v697_v20  ;;  %v7562_v34 = vcombine.high %v700_v26, %v704_v27  ;;  %v7561_v40 = vcombine.low %v700_v26, %v704_v27  ;;  %v756_v27 = vld [vmem:[#allocation2 + $0xec0] sm:$0xff] }
 0x1b1   :  { %3505 = vmatpush1.bf16.msra.mxu0 %v7497_v28  ;;  %3669 = vmatpush1.bf16.msra.mxu1 %v7499_v29  ;;  %v701_v28 = vld [vmem:[#allocation2 + $0xd08] sm:$0xff]  ;;  %v7556_v29 = vcombine.high %v693_v19, %v697_v20  ;;  %v752_v19 = vld [vmem:[#allocation2 + $0xea0] sm:$0xff] }
 0x1b2   :  { %3506 = vmatprep.subr.bf16.mxu0 %v7506_v30  ;;  %3670 = vmatprep.subr.bf16.mxu1 %v7508_v35  ;;  %v705_v30 = vld [vmem:[#allocation2 + $0xd28] sm:$0xff]  ;;  %v708_v35 = vld [vmem:[#allocation2 + $0xd40] sm:$0xff]  ;;  %v7610_v26 = vcombine.high %v748_v18, %v752_v19 }
 0x1b3   :  { %v7563_v41 = vcombine.low %v701_v28, %v705_v30  ;;  %v7570_v42 = vcombine.high %v708_v35, %v712_v63 }
 0x1b5   :  { %3507 = vmatpush1.bf16.msra.mxu0 %v7505_v37  ;;  %3671 = vmatpush1.bf16.msra.mxu1 %v7507_v38  ;;  %v709_v37 = vld [vmem:[#allocation2 + $0xd48] sm:$0xff]  ;;  %v7564_v38 = vcombine.high %v701_v28, %v705_v30  ;;  %v760_v28 = vld [vmem:[#allocation2 + $0xee0] sm:$0xff] }
 0x1b6   :  { %3508 = vmatprep.subr.bf16.mxu0 %v7514_v39  ;;  %3672 = vmatprep.subr.bf16.mxu1 %v7516_v45  ;;  %v713_v39 = vld [vmem:[#allocation2 + $0xd68] sm:$0xff]  ;;  %v716_v45 = vld [vmem:[#allocation2 + $0xd80] sm:$0xff] }
 0x1b7   :  { %v7571_v51 = vcombine.low %v709_v37, %v713_v39  ;;  %v7578_v52 = vcombine.high %v716_v45, %v720_v46 }
 0x1b9   :  { %3509 = vmatpush1.bf16.msra.mxu0 %v7513_v48  ;;  %3673 = vmatpush1.bf16.msra.mxu1 %v7515_v49  ;;  %v7572_v48 = vcombine.high %v709_v37, %v713_v39  ;;  %v721_v49 = vld [vmem:[#allocation2 + $0xda8] sm:$0xff]  ;;  %v768_v37 = vld [vmem:[#allocation2 + $0xf20] sm:$0xff] }
 0x1ba   :  { %3510 = vmatprep.subr.bf16.mxu0 %v7522_v50  ;;  %3674 = vmatprep.subr.bf16.mxu1 %v7524_v55  ;;  %v7569_v50 = vcombine.low %v708_v35, %v712_v63  ;;  %v728_v55 = vld [vmem:[#allocation2 + $0xde0] sm:$0xff]  ;;  %v7579_v61 = vcombine.low %v717_v47, %v721_v49  ;;  %v7618_v35 = vcombine.high %v756_v27, %v760_v28 }
 0x1bb   :  { %v7586_v62 = vcombine.high %v724_v16, %v728_v55  ;;  %v764_v63 = vld [vmem:[#allocation2 + $0xf00] sm:$0xff] }
 0x1bd   :  { %3511 = vmatpush1.bf16.msra.mxu0 %v7521_v58  ;;  %3675 = vmatpush1.bf16.msra.mxu1 %v7523_v23  ;;  %v7580_v58 = vcombine.high %v717_v47, %v721_v49  ;;  %v729_v23 = vld [vmem:[#allocation2 + $0xde8] sm:$0xff]  ;;  %v776_v47 = vld [vmem:[#allocation2 + $0xf60] sm:$0xff] }
 0x1be   :  { %3521 = vmatprep.subr.bf16.mxu0 %v7530_v60  ;;  %3685 = vmatprep.subr.bf16.mxu1 %v7532_v1  ;;  %v7577_v60 = vcombine.low %v716_v45, %v720_v46  ;;  %v736_v1 = vld [vmem:[#allocation2 + $0xe20] sm:$0xff]  ;;  %v7588_v3 = vcombine.high %v725_v56, %v729_v23  ;;  %v7626_v45 = vcombine.high %v764_v63, %v768_v37 }
 0x1bf   :  { %v7594_v7 = vcombine.high %v732_v0, %v736_v1  ;;  %v772_v46 = vld [vmem:[#allocation2 + $0xf40] sm:$0xff] }
 0x1c0   :  { %3513 = vmatmul.mubr.bf16.vlgmr.msra.gmra.mrb[0].mxu0 %v9529_v4  ;;  %3677 = vmatmul.mubr.bf16.vlgmr.msra.gmra.mrb[0].mxu1 %v9529_v4 }
 0x1c1   :  { %3522 = vmatpush1.bf16.msra.mxu0 %v7529_v53  ;;  %3686 = vmatpush1.bf16.msra.mxu1 %v7531_v5  ;;  %v737_v53 = vld [vmem:[#allocation2 + $0xe28] sm:$0xff]  ;;  %v7585_v5 = vcombine.low %v724_v16, %v728_v55  ;;  %v7634_v16 = vcombine.high %v772_v46, %v776_v47 }
 0x1c2   :  { %3523 = vmatprep.subr.bf16.mxu0 %v7538_v6  ;;  %3687 = vmatprep.subr.bf16.mxu1 %v7540_v11  ;;  %v7587_v6 = vcombine.low %v725_v56, %v729_v23  ;;  %v741_v11 = vld [vmem:[#allocation2 + $0xe48] sm:$0xff]  ;;  %v7596_v12 = vcombine.high %v733_v2, %v737_v53  ;;  %v780_v56 = vld [vmem:[#allocation2 + $0xf80] sm:$0xff] }
 0x1c3   :  { %3553 = vmatprep.mubr.bf16.mxu0 %v9531_v13  ;;  %3717 = vmatprep.mubr.bf16.mxu1 %v9531_v13  ;;  %v781_v23 = vld [vmem:[#allocation2 + $0xf88] sm:$0xff] }
 0x1c5   :  { %3524 = vmatpush1.bf16.msra.mxu0 %v7537_v33  ;;  %3688 = vmatpush1.bf16.msra.mxu1 %v7539_v14  ;;  %v745_v33 = vld [vmem:[#allocation2 + $0xe68] sm:$0xff]  ;;  %v7593_v14 = vcombine.low %v732_v0, %v736_v1 }
 0x1c6   :  { %3525 = vmatprep.subr.bf16.mxu0 %v7546_v15  ;;  %3689 = vmatprep.subr.bf16.mxu1 %v7548_v59  ;;  %v7595_v15 = vcombine.low %v733_v2, %v737_v53  ;;  %v749_v59 = vld [vmem:[#allocation2 + $0xe88] sm:$0xff]  ;;  %v7604_v20 = vcombine.high %v741_v11, %v745_v33  ;;  %v788_v2 = vld [vmem:[#allocation2 + $0xfc0] sm:$0xff] }
 0x1c7   :  { %v789_v53 = vld [vmem:[#allocation2 + $0xfc8] sm:$0xff] }
 0x1c9   :  { %3526 = vmatpush1.bf16.msra.mxu0 %v7545_v21  ;;  %3690 = vmatpush1.bf16.msra.mxu1 %v7547_v22  ;;  %v753_v21 = vld [vmem:[#allocation2 + $0xea8] sm:$0xff]  ;;  %v7601_v22 = vcombine.low %v740_v8, %v744_v10 }
 0x1ca   :  { %3527 = vmatprep.subr.bf16.mxu0 %v7554_v24  ;;  %3691 = vmatprep.subr.bf16.mxu1 %v7556_v29  ;;  %v7603_v24 = vcombine.low %v741_v11, %v745_v33  ;;  %v757_v29 = vld [vmem:[#allocation2 + $0xec8] sm:$0xff]  ;;  %v7612_v30 = vcombine.high %v749_v59, %v753_v21  ;;  %v286_v11 = vld [vmem:[#allocation2 + $0x10] sm:$0xff]  ;;  %v287_v33 = vld [vmem:[#allocation2 + $0x18] sm:$0xff] }
 0x1cd   :  { %3528 = vmatpush1.bf16.msra.mxu0 %v7553_v31  ;;  %3692 = vmatpush1.bf16.msra.mxu1 %v7555_v32  ;;  %v761_v31 = vld [vmem:[#allocation2 + $0xee8] sm:$0xff]  ;;  %v7609_v32 = vcombine.low %v748_v18, %v752_v19 }
 0x1ce   :  { %3529 = vmatprep.subr.bf16.mxu0 %v7562_v34  ;;  %3693 = vmatprep.subr.bf16.mxu1 %v7564_v38  ;;  %v7611_v34 = vcombine.low %v749_v59, %v753_v21  ;;  %v765_v38 = vld [vmem:[#allocation2 + $0xf08] sm:$0xff]  ;;  %v7620_v39 = vcombine.high %v757_v29, %v761_v31  ;;  %v294_v59 = vld [vmem:[#allocation2 + $0x50] sm:$0xff]  ;;  %v9539_v21 = vpack.c.bf16 %v9523_v57, %v9523_v57 }
 0x1d1   :  { %3530 = vmatpush1.bf16.msra.mxu0 %v7561_v40  ;;  %3694 = vmatpush1.bf16.msra.mxu1 %v7563_v41  ;;  %v769_v40 = vld [vmem:[#allocation2 + $0xf28] sm:$0xff]  ;;  %v7617_v41 = vcombine.low %v756_v27, %v760_v28 }
 0x1d2   :  { %3531 = vmatprep.subr.bf16.mxu0 %v7570_v42  ;;  %3695 = vmatprep.subr.bf16.mxu1 %v7572_v48  ;;  %v7619_v42 = vcombine.low %v757_v29, %v761_v31  ;;  %v773_v48 = vld [vmem:[#allocation2 + $0xf48] sm:$0xff]  ;;  %v7628_v49 = vcombine.high %v765_v38, %v769_v40  ;;  %v306_v31 = vld [vmem:[#allocation2 + $0xb0] sm:$0xff] }
 0x1d5   :  { %3532 = vmatpush1.bf16.msra.mxu0 %v7569_v50  ;;  %3696 = vmatpush1.bf16.msra.mxu1 %v7571_v51  ;;  %v777_v50 = vld [vmem:[#allocation2 + $0xf68] sm:$0xff]  ;;  %v7625_v51 = vcombine.low %v764_v63, %v768_v37 }
 0x1d6   :  { %3533 = vmatprep.subr.bf16.mxu0 %v7578_v52  ;;  %3697 = vmatprep.subr.bf16.mxu1 %v7580_v58  ;;  %v7627_v52 = vcombine.low %v765_v38, %v769_v40  ;;  %v7636_v55 = vcombine.high %v773_v48, %v777_v50  ;;  %v784_v58 = vld [vmem:[#allocation2 + $0xfa0] sm:$0xff]  ;;  %v310_v38 = vld [vmem:[#allocation2 + $0xd0] sm:$0xff]  ;;  %v311_v40 = vld [vmem:[#allocation2 + $0xd8] sm:$0xff] }
 0x1d7   :  { %v7642_v0 = vcombine.high %v780_v56, %v784_v58 }
 0x1d9   :  { %3534 = vmatpush1.bf16.msra.mxu0 %v7577_v60  ;;  %3698 = vmatpush1.bf16.msra.mxu1 %v7579_v61  ;;  %v785_v60 = vld [vmem:[#allocation2 + $0xfa8] sm:$0xff]  ;;  %v7633_v61 = vcombine.low %v772_v46, %v776_v47 }
 0x1da   :  { %3535 = vmatprep.subr.bf16.mxu0 %v7586_v62  ;;  %3699 = vmatprep.subr.bf16.mxu1 %v7588_v3  ;;  %v7635_v62 = vcombine.low %v773_v48, %v777_v50  ;;  %v7644_v1 = vcombine.high %v781_v23, %v785_v60  ;;  %v792_v3 = vld [vmem:[#allocation2 + $0xfe0] sm:$0xff]  ;;  %v318_v48 = vld [vmem:[#allocation2 + $0x110] sm:$0xff]  ;;  %v319_v50 = vld [vmem:[#allocation2 + $0x118] sm:$0xff] }
 0x1db   :  { %v7650_v8 = vcombine.high %v788_v2, %v792_v3 }
 0x1dd   :  { %3536 = vmatpush1.bf16.msra.mxu0 %v7585_v5  ;;  %3700 = vmatpush1.bf16.msra.mxu1 %v7587_v6  ;;  %v793_v5 = vld [vmem:[#allocation2 + $0xfe8] sm:$0xff]  ;;  %v7641_v6 = vcombine.low %v780_v56, %v784_v58  ;;  %v326_v56 = vld [vmem:[#allocation2 + $0x150] sm:$0xff] }
 0x1de   :  { %3537 = vmatprep.subr.bf16.mxu0 %v7594_v7  ;;  %3701 = vmatprep.subr.bf16.mxu1 %v7596_v12  ;;  %v7643_v7 = vcombine.low %v781_v23, %v785_v60  ;;  %v7652_v10 = vcombine.high %v789_v53, %v793_v5  ;;  %v290_v12 = vld [vmem:[#allocation2 + $0x30] sm:$0xff]  ;;  %v327_v23 = vld [vmem:[#allocation2 + $0x158] sm:$0xff] }
 0x1df   :  { %v7150_v18 = vcombine.high %v286_v11, %v290_v12  ;;  %v330_v58 = vld [vmem:[#allocation2 + $0x170] sm:$0xff]  ;;  %v331_v60 = vld [vmem:[#allocation2 + $0x178] sm:$0xff] }
 0x1e1   :  { %3538 = vmatpush1.bf16.msra.mxu0 %v7593_v14  ;;  %3702 = vmatpush1.bf16.msra.mxu1 %v7595_v15  ;;  %v291_v14 = vld [vmem:[#allocation2 + $0x38] sm:$0xff]  ;;  %v7649_v15 = vcombine.low %v788_v2, %v792_v3  ;;  %v334_v2 = vld [vmem:[#allocation2 + $0x190] sm:$0xff] }
 0x1e2   :  { %3539 = vmatprep.subr.bf16.mxu0 %v7602_v17  ;;  %3703 = vmatprep.subr.bf16.mxu1 %v7604_v20  ;;  %v7651_v17 = vcombine.low %v789_v53, %v793_v5  ;;  %v7152_v19 = vcombine.high %v287_v33, %v291_v14  ;;  %v298_v20 = vld [vmem:[#allocation2 + $0x70] sm:$0xff]  ;;  %v7151_v27 = vcombine.low %v287_v33, %v291_v14  ;;  %v335_v53 = vld [vmem:[#allocation2 + $0x198] sm:$0xff] }
 0x1e3   :  { %v7158_v28 = vcombine.high %v294_v59, %v298_v20  ;;  %v7157_v57 = vcombine.low %v294_v59, %v298_v20  ;;  %v338_v3 = vld [vmem:[#allocation2 + $0x1b0] sm:$0xff]  ;;  %v339_v5 = vld [vmem:[#allocation2 + $0x1b8] sm:$0xff] }
 0x1e4   :  { %v343_v33 = vld [vmem:[#allocation2 + $0x1d8] sm:$0xff]  ;;  %v350_v59 = vld [vmem:[#allocation2 + $0x210] sm:$0xff] }
 0x1e5   :  { %3540 = vmatpush1.bf16.msra.mxu0 %v7601_v22  ;;  %3704 = vmatpush1.bf16.msra.mxu1 %v7603_v24  ;;  %v295_v22 = vld [vmem:[#allocation2 + $0x58] sm:$0xff]  ;;  %v354_v20 = vld [vmem:[#allocation2 + $0x230] sm:$0xff] }
 0x1e6   :  { %3541 = vmatprep.subr.bf16.mxu0 %v7610_v26  ;;  %3705 = vmatprep.subr.bf16.mxu1 %v7612_v30  ;;  %v299_v24 = vld [vmem:[#allocation2 + $0x78] sm:$0xff]  ;;  %v7149_v26 = vcombine.low %v286_v11, %v290_v12  ;;  %v302_v30 = vld [vmem:[#allocation2 + $0x90] sm:$0xff] }
 0x1e7   :  { %v7160_v29 = vcombine.high %v295_v22, %v299_v24  ;;  %v7166_v63 = vcombine.high %v302_v30, %v306_v31  ;;  %v342_v11 = vld [vmem:[#allocation2 + $0x1d0] sm:$0xff]  ;;  %v347_v14 = vld [vmem:[#allocation2 + $0x1f8] sm:$0xff] }
 0x1e8   :  { %v346_v12 = vld [vmem:[#allocation2 + $0x1f0] sm:$0xff] }
 0x1e9   :  { %3542 = vmatpush1.bf16.msra.mxu0 %v7609_v32  ;;  %3706 = vmatpush1.bf16.msra.mxu1 %v7611_v34  ;;  %v303_v32 = vld [vmem:[#allocation2 + $0x98] sm:$0xff] }
 0x1ea   :  { %3543 = vmatprep.subr.bf16.mxu0 %v7618_v35  ;;  %3707 = vmatprep.subr.bf16.mxu1 %v7620_v39  ;;  %v307_v34 = vld [vmem:[#allocation2 + $0xb8] sm:$0xff]  ;;  %v7159_v35 = vcombine.low %v295_v22, %v299_v24  ;;  %v314_v39 = vld [vmem:[#allocation2 + $0xf0] sm:$0xff] }
 0x1eb   :  { %v7168_v37 = vcombine.high %v303_v32, %v307_v34  ;;  %v7174_v46 = vcombine.high %v310_v38, %v314_v39  ;;  %v351_v22 = vld [vmem:[#allocation2 + $0x218] sm:$0xff] }
 0x1ec   :  { %v355_v24 = vld [vmem:[#allocation2 + $0x238] sm:$0xff] }
 0x1ed   :  { %3544 = vmatpush1.bf16.msra.mxu0 %v7617_v41  ;;  %3708 = vmatpush1.bf16.msra.mxu1 %v7619_v42  ;;  %v315_v41 = vld [vmem:[#allocation2 + $0xf8] sm:$0xff]  ;;  %v7165_v42 = vcombine.low %v302_v30, %v306_v31  ;;  %v358_v30 = vld [vmem:[#allocation2 + $0x250] sm:$0xff] }
 0x1ee   :  { %3545 = vmatprep.subr.bf16.mxu0 %v7626_v45  ;;  %3709 = vmatprep.subr.bf16.mxu1 %v7628_v49  ;;  %v7167_v45 = vcombine.low %v303_v32, %v307_v34  ;;  %v7176_v47 = vcombine.high %v311_v40, %v315_v41  ;;  %v322_v49 = vld [vmem:[#allocation2 + $0x130] sm:$0xff]  ;;  %v359_v32 = vld [vmem:[#allocation2 + $0x258] sm:$0xff] }
 0x1ef   :  { %v362_v31 = vld [vmem:[#allocation2 + $0x270] sm:$0xff]  ;;  %v363_v34 = vld [vmem:[#allocation2 + $0x278] sm:$0xff] }
 0x1f1   :  { %3546 = vmatpush1.bf16.msra.mxu0 %v7625_v51  ;;  %3710 = vmatpush1.bf16.msra.mxu1 %v7627_v52  ;;  %v323_v51 = vld [vmem:[#allocation2 + $0x138] sm:$0xff]  ;;  %v7173_v52 = vcombine.low %v310_v38, %v314_v39  ;;  %v366_v38 = vld [vmem:[#allocation2 + $0x290] sm:$0xff] }
 0x1f2   :  { %3547 = vmatprep.subr.bf16.mxu0 %v7634_v16  ;;  %3711 = vmatprep.subr.bf16.mxu1 %v7636_v55  ;;  %v7175_v16 = vcombine.low %v311_v40, %v315_v41  ;;  %v7182_v55 = vcombine.high %v318_v48, %v322_v49  ;;  %v370_v39 = vld [vmem:[#allocation2 + $0x2b0] sm:$0xff]  ;;  %v367_v40 = vld [vmem:[#allocation2 + $0x298] sm:$0xff] }
 0x1f3   :  { %v371_v41 = vld [vmem:[#allocation2 + $0x2b8] sm:$0xff] }
 0x1f5   :  { %3548 = vmatpush1.bf16.msra.mxu0 %v7633_v61  ;;  %3712 = vmatpush1.bf16.msra.mxu1 %v7635_v62  ;;  %v7181_v61 = vcombine.low %v318_v48, %v322_v49  ;;  %v7183_v62 = vcombine.low %v319_v50, %v323_v51  ;;  %v374_v48 = vld [vmem:[#allocation2 + $0x2d0] sm:$0xff] }
 0x1f6   :  { %3549 = vmatprep.subr.bf16.mxu0 %v7642_v0  ;;  %3713 = vmatprep.subr.bf16.mxu1 %v7644_v1  ;;  %v7190_v0 = vcombine.high %v326_v56, %v330_v58  ;;  %v7192_v1 = vcombine.high %v327_v23, %v331_v60  ;;  %v378_v49 = vld [vmem:[#allocation2 + $0x2f0] sm:$0xff] }
 0x1f9   :  { %3550 = vmatpush1.bf16.msra.mxu0 %v7641_v6  ;;  %3714 = vmatpush1.bf16.msra.mxu1 %v7643_v7  ;;  %v7189_v6 = vcombine.low %v326_v56, %v330_v58  ;;  %v7191_v7 = vcombine.low %v327_v23, %v331_v60  ;;  %v382_v56 = vld [vmem:[#allocation2 + $0x310] sm:$0xff]  ;;  %v383_v23 = vld [vmem:[#allocation2 + $0x318] sm:$0xff] }
 0x1fa   :  { %3551 = vmatprep.subr.bf16.mxu0 %v7650_v8  ;;  %3715 = vmatprep.subr.bf16.mxu1 %v7652_v10  ;;  %v7198_v8 = vcombine.high %v334_v2, %v338_v3  ;;  %v7200_v10 = vcombine.high %v335_v53, %v339_v5  ;;  %v386_v58 = vld [vmem:[#allocation2 + $0x330] sm:$0xff]  ;;  %v387_v60 = vld [vmem:[#allocation2 + $0x338] sm:$0xff] }
 0x1fd   :  { %3552 = vmatpush1.bf16.msra.mxu0 %v7649_v15  ;;  %3716 = vmatpush1.bf16.msra.mxu1 %v7651_v17  ;;  %v7197_v15 = vcombine.low %v334_v2, %v338_v3  ;;  %v7199_v17 = vcombine.low %v335_v53, %v339_v5  ;;  %v390_v2 = vld [vmem:[#allocation2 + $0x350] sm:$0xff]  ;;  %v391_v53 = vld [vmem:[#allocation2 + $0x358] sm:$0xff] }
 0x1fe   :  { %3726 = vmatprep.subr.bf16.mxu0 %v7150_v18  ;;  %3890 = vmatprep.subr.bf16.mxu1 %v7152_v19  ;;  %v7206_v18 = vcombine.high %v342_v11, %v346_v12  ;;  %v7208_v19 = vcombine.high %v343_v33, %v347_v14  ;;  %v394_v3 = vld [vmem:[#allocation2 + $0x370] sm:$0xff]  ;;  %v395_v5 = vld [vmem:[#allocation2 + $0x378] sm:$0xff] }
 0x200   :  { %3554 = vmatmul.mubr.bf16.vlgmr.msra.gmra.mrb[0].mxu0 %v9539_v21  ;;  %3718 = vmatmul.mubr.bf16.vlgmr.msra.gmra.mrb[0].mxu1 %v9539_v21 }
 0x201   :  { %3727 = vmatpush1.bf16.msra.mxu0 %v7149_v26  ;;  %3891 = vmatpush1.bf16.msra.mxu1 %v7151_v27  ;;  %v7205_v26 = vcombine.low %v342_v11, %v346_v12  ;;  %v7207_v27 = vcombine.low %v343_v33, %v347_v14  ;;  %v398_v11 = vld [vmem:[#allocation2 + $0x390] sm:$0xff]  ;;  %v399_v33 = vld [vmem:[#allocation2 + $0x398] sm:$0xff] }
 0x202   :  { %3728 = vmatprep.subr.bf16.mxu0 %v7158_v28  ;;  %3892 = vmatprep.subr.bf16.mxu1 %v7160_v29  ;;  %v7214_v28 = vcombine.high %v350_v59, %v354_v20  ;;  %v7216_v29 = vcombine.high %v351_v22, %v355_v24  ;;  %v402_v12 = vld [vmem:[#allocation2 + $0x3b0] sm:$0xff]  ;;  %v403_v14 = vld [vmem:[#allocation2 + $0x3b8] sm:$0xff] }
 0x203   :  { %3758 = vmatprep.mubr.bf16.mxu0 %v9478_v9  ;;  %3922 = vmatprep.mubr.bf16.mxu1 %v9478_v9  ;;  %v7184_v9 = vcombine.high %v319_v50, %v323_v51  ;;  %v375_v50 = vld [vmem:[#allocation2 + $0x2d8] sm:$0xff] }
 0x204   :  { %v379_v51 = vld [vmem:[#allocation2 + $0x2f8] sm:$0xff] }
 0x205   :  { %3729 = vmatpush1.bf16.msra.mxu0 %v7157_v57  ;;  %3893 = vmatpush1.bf16.msra.mxu1 %v7159_v35  ;;  %v7213_v57 = vcombine.low %v350_v59, %v354_v20  ;;  %v7215_v35 = vcombine.low %v351_v22, %v355_v24  ;;  %v406_v59 = vld [vmem:[#allocation2 + $0x3d0] sm:$0xff]  ;;  %v407_v22 = vld [vmem:[#allocation2 + $0x3d8] sm:$0xff] }
 0x206   :  { %3730 = vmatprep.subr.bf16.mxu0 %v7166_v63  ;;  %3894 = vmatprep.subr.bf16.mxu1 %v7168_v37  ;;  %v7222_v63 = vcombine.high %v358_v30, %v362_v31  ;;  %v7224_v37 = vcombine.high %v359_v32, %v363_v34  ;;  %v410_v20 = vld [vmem:[#allocation2 + $0x3f0] sm:$0xff]  ;;  %v411_v24 = vld [vmem:[#allocation2 + $0x3f8] sm:$0xff] }
 0x209   :  { %3731 = vmatpush1.bf16.msra.mxu0 %v7165_v42  ;;  %3895 = vmatpush1.bf16.msra.mxu1 %v7167_v45  ;;  %v7221_v42 = vcombine.low %v358_v30, %v362_v31  ;;  %v7223_v45 = vcombine.low %v359_v32, %v363_v34  ;;  %v414_v30 = vld [vmem:[#allocation2 + $0x410] sm:$0xff]  ;;  %v415_v32 = vld [vmem:[#allocation2 + $0x418] sm:$0xff] }
 0x20a   :  { %3732 = vmatprep.subr.bf16.mxu0 %v7174_v46  ;;  %3896 = vmatprep.subr.bf16.mxu1 %v7176_v47  ;;  %v7230_v46 = vcombine.high %v366_v38, %v370_v39  ;;  %v7232_v47 = vcombine.high %v367_v40, %v371_v41  ;;  %v418_v31 = vld [vmem:[#allocation2 + $0x430] sm:$0xff]  ;;  %v419_v34 = vld [vmem:[#allocation2 + $0x438] sm:$0xff] }
 0x20d   :  { %3733 = vmatpush1.bf16.msra.mxu0 %v7173_v52  ;;  %3897 = vmatpush1.bf16.msra.mxu1 %v7175_v16  ;;  %v7229_v52 = vcombine.low %v366_v38, %v370_v39  ;;  %v7231_v16 = vcombine.low %v367_v40, %v371_v41  ;;  %v422_v38 = vld [vmem:[#allocation2 + $0x450] sm:$0xff]  ;;  %v423_v40 = vld [vmem:[#allocation2 + $0x458] sm:$0xff] }
 0x20e   :  { %3734 = vmatprep.subr.bf16.mxu0 %v7182_v55  ;;  %3898 = vmatprep.subr.bf16.mxu1 %v7184_v9  ;;  %v7238_v55 = vcombine.high %v374_v48, %v378_v49  ;;  %v7240_v9 = vcombine.high %v375_v50, %v379_v51  ;;  %v426_v39 = vld [vmem:[#allocation2 + $0x470] sm:$0xff]  ;;  %v427_v41 = vld [vmem:[#allocation2 + $0x478] sm:$0xff] }
 0x211   :  { %3735 = vmatpush1.bf16.msra.mxu0 %v7181_v61  ;;  %3899 = vmatpush1.bf16.msra.mxu1 %v7183_v62  ;;  %v7237_v61 = vcombine.low %v374_v48, %v378_v49  ;;  %v7239_v62 = vcombine.low %v375_v50, %v379_v51  ;;  %v430_v48 = vld [vmem:[#allocation2 + $0x490] sm:$0xff]  ;;  %v431_v50 = vld [vmem:[#allocation2 + $0x498] sm:$0xff] }
 0x212   :  { %3736 = vmatprep.subr.bf16.mxu0 %v7190_v0  ;;  %3900 = vmatprep.subr.bf16.mxu1 %v7192_v1  ;;  %v7246_v0 = vcombine.high %v382_v56, %v386_v58  ;;  %v7248_v1 = vcombine.high %v383_v23, %v387_v60  ;;  %v434_v49 = vld [vmem:[#allocation2 + $0x4b0] sm:$0xff]  ;;  %v435_v51 = vld [vmem:[#allocation2 + $0x4b8] sm:$0xff] }
 0x215   :  { %3737 = vmatpush1.bf16.msra.mxu0 %v7189_v6  ;;  %3901 = vmatpush1.bf16.msra.mxu1 %v7191_v7  ;;  %v7245_v6 = vcombine.low %v382_v56, %v386_v58  ;;  %v7247_v7 = vcombine.low %v383_v23, %v387_v60  ;;  %v438_v56 = vld [vmem:[#allocation2 + $0x4d0] sm:$0xff]  ;;  %v439_v23 = vld [vmem:[#allocation2 + $0x4d8] sm:$0xff] }
 0x216   :  { %3738 = vmatprep.subr.bf16.mxu0 %v7198_v8  ;;  %3902 = vmatprep.subr.bf16.mxu1 %v7200_v10  ;;  %v7254_v8 = vcombine.high %v390_v2, %v394_v3  ;;  %v7256_v10 = vcombine.high %v391_v53, %v395_v5  ;;  %v442_v58 = vld [vmem:[#allocation2 + $0x4f0] sm:$0xff]  ;;  %v443_v60 = vld [vmem:[#allocation2 + $0x4f8] sm:$0xff] }
 0x219   :  { %3739 = vmatpush1.bf16.msra.mxu0 %v7197_v15  ;;  %3903 = vmatpush1.bf16.msra.mxu1 %v7199_v17  ;;  %v7253_v15 = vcombine.low %v390_v2, %v394_v3  ;;  %v7255_v17 = vcombine.low %v391_v53, %v395_v5  ;;  %v450_v2 = vld [vmem:[#allocation2 + $0x530] sm:$0xff]  ;;  %v447_v3 = vld [vmem:[#allocation2 + $0x518] sm:$0xff]  ;;  %v7301_v5 = vcombine.low %v438_v56, %v442_v58 }
 0x21a   :  { %3740 = vmatprep.subr.bf16.mxu0 %v7206_v18  ;;  %3904 = vmatprep.subr.bf16.mxu1 %v7208_v19  ;;  %v7262_v18 = vcombine.high %v398_v11, %v402_v12  ;;  %v7264_v19 = vcombine.high %v399_v33, %v403_v14  ;;  %v451_v53 = vld [vmem:[#allocation2 + $0x538] sm:$0xff] }
 0x21d   :  { %3741 = vmatpush1.bf16.msra.mxu0 %v7205_v26  ;;  %3905 = vmatpush1.bf16.msra.mxu1 %v7207_v27  ;;  %v7261_v26 = vcombine.low %v398_v11, %v402_v12  ;;  %v7263_v27 = vcombine.low %v399_v33, %v403_v14  ;;  %v455_v11 = vld [vmem:[#allocation2 + $0x558] sm:$0xff]  ;;  %v7311_v14 = vcombine.low %v447_v3, %v451_v53 }
 0x21e   :  { %3742 = vmatprep.subr.bf16.mxu0 %v7214_v28  ;;  %3906 = vmatprep.subr.bf16.mxu1 %v7216_v29  ;;  %v7270_v28 = vcombine.high %v406_v59, %v410_v20  ;;  %v7272_v29 = vcombine.high %v407_v22, %v411_v24  ;;  %v459_v12 = vld [vmem:[#allocation2 + $0x578] sm:$0xff] }
 0x221   :  { %3743 = vmatpush1.bf16.msra.mxu0 %v7213_v57  ;;  %3907 = vmatpush1.bf16.msra.mxu1 %v7215_v35  ;;  %v7269_v57 = vcombine.low %v406_v59, %v410_v20  ;;  %v7271_v35 = vcombine.low %v407_v22, %v411_v24  ;;  %v463_v59 = vld [vmem:[#allocation2 + $0x598] sm:$0xff]  ;;  %v7319_v24 = vcombine.low %v455_v11, %v459_v12 }
 0x222   :  { %3744 = vmatprep.subr.bf16.mxu0 %v7222_v63  ;;  %3908 = vmatprep.subr.bf16.mxu1 %v7224_v37  ;;  %v7278_v63 = vcombine.high %v414_v30, %v418_v31  ;;  %v7280_v37 = vcombine.high %v415_v32, %v419_v34  ;;  %v467_v20 = vld [vmem:[#allocation2 + $0x5b8] sm:$0xff] }
 0x225   :  { %3745 = vmatpush1.bf16.msra.mxu0 %v7221_v42  ;;  %3909 = vmatpush1.bf16.msra.mxu1 %v7223_v45  ;;  %v7277_v42 = vcombine.low %v414_v30, %v418_v31  ;;  %v7279_v45 = vcombine.low %v415_v32, %v419_v34  ;;  %v471_v30 = vld [vmem:[#allocation2 + $0x5d8] sm:$0xff]  ;;  %v7327_v34 = vcombine.low %v463_v59, %v467_v20 }
 0x226   :  { %3746 = vmatprep.subr.bf16.mxu0 %v7230_v46  ;;  %3910 = vmatprep.subr.bf16.mxu1 %v7232_v47  ;;  %v7286_v46 = vcombine.high %v422_v38, %v426_v39  ;;  %v7288_v47 = vcombine.high %v423_v40, %v427_v41  ;;  %v475_v31 = vld [vmem:[#allocation2 + $0x5f8] sm:$0xff] }
 0x229   :  { %3747 = vmatpush1.bf16.msra.mxu0 %v7229_v52  ;;  %3911 = vmatpush1.bf16.msra.mxu1 %v7231_v16  ;;  %v7285_v52 = vcombine.low %v422_v38, %v426_v39  ;;  %v7287_v16 = vcombine.low %v423_v40, %v427_v41  ;;  %v479_v38 = vld [vmem:[#allocation2 + $0x618] sm:$0xff]  ;;  %v7335_v41 = vcombine.low %v471_v30, %v475_v31 }
 0x22a   :  { %3748 = vmatprep.subr.bf16.mxu0 %v7238_v55  ;;  %3912 = vmatprep.subr.bf16.mxu1 %v7240_v9  ;;  %v7294_v55 = vcombine.high %v430_v48, %v434_v49  ;;  %v7296_v9 = vcombine.high %v431_v50, %v435_v51  ;;  %v483_v39 = vld [vmem:[#allocation2 + $0x638] sm:$0xff] }
 0x22d   :  { %3749 = vmatpush1.bf16.msra.mxu0 %v7237_v61  ;;  %3913 = vmatpush1.bf16.msra.mxu1 %v7239_v62  ;;  %v7293_v61 = vcombine.low %v430_v48, %v434_v49  ;;  %v7302_v62 = vcombine.high %v438_v56, %v442_v58  ;;  %v487_v48 = vld [vmem:[#allocation2 + $0x658] sm:$0xff] }
 0x22e   :  { %3750 = vmatprep.subr.bf16.mxu0 %v7246_v0  ;;  %3914 = vmatprep.subr.bf16.mxu1 %v7248_v1  ;;  %v7304_v0 = vcombine.high %v439_v23, %v443_v60  ;;  %v446_v1 = vld [vmem:[#allocation2 + $0x510] sm:$0xff]  ;;  %v491_v49 = vld [vmem:[#allocation2 + $0x678] sm:$0xff] }
 0x22f   :  { %v7309_v33 = vcombine.low %v446_v1, %v450_v2  ;;  %v495_v56 = vld [vmem:[#allocation2 + $0x698] sm:$0xff] }
 0x230   :  { %v499_v58 = vld [vmem:[#allocation2 + $0x6b8] sm:$0xff] }
 0x231   :  { %3751 = vmatpush1.bf16.msra.mxu0 %v7245_v6  ;;  %3915 = vmatpush1.bf16.msra.mxu1 %v7247_v7  ;;  %v7303_v6 = vcombine.low %v439_v23, %v443_v60  ;;  %v7310_v7 = vcombine.high %v446_v1, %v450_v2  ;;  %v7351_v60 = vcombine.low %v487_v48, %v491_v49  ;;  %v503_v1 = vld [vmem:[#allocation2 + $0x6d8] sm:$0xff] }
 0x232   :  { %3752 = vmatprep.subr.bf16.mxu0 %v7254_v8  ;;  %3916 = vmatprep.subr.bf16.mxu1 %v7256_v10  ;;  %v454_v8 = vld [vmem:[#allocation2 + $0x550] sm:$0xff]  ;;  %v507_v2 = vld [vmem:[#allocation2 + $0x6f8] sm:$0xff] }
 0x233   :  { %v458_v10 = vld [vmem:[#allocation2 + $0x570] sm:$0xff] }
 0x234   :  { %v7317_v22 = vcombine.low %v454_v8, %v458_v10 }
 0x235   :  { %3753 = vmatpush1.bf16.msra.mxu0 %v7253_v15  ;;  %3917 = vmatpush1.bf16.msra.mxu1 %v7255_v17  ;;  %v7318_v15 = vcombine.high %v454_v8, %v458_v10  ;;  %v7320_v17 = vcombine.high %v455_v11, %v459_v12  ;;  %v511_v8 = vld [vmem:[#allocation2 + $0x718] sm:$0xff]  ;;  %v7367_v12 = vcombine.low %v503_v1, %v507_v2 }
 0x236   :  { %3754 = vmatprep.subr.bf16.mxu0 %v7262_v18  ;;  %3918 = vmatprep.subr.bf16.mxu1 %v7264_v19  ;;  %v462_v18 = vld [vmem:[#allocation2 + $0x590] sm:$0xff]  ;;  %v515_v10 = vld [vmem:[#allocation2 + $0x738] sm:$0xff] }
 0x237   :  { %v466_v19 = vld [vmem:[#allocation2 + $0x5b0] sm:$0xff] }
 0x238   :  { %v7325_v32 = vcombine.low %v462_v18, %v466_v19 }
 0x239   :  { %3755 = vmatpush1.bf16.msra.mxu0 %v7261_v26  ;;  %3919 = vmatpush1.bf16.msra.mxu1 %v7263_v27  ;;  %v7326_v26 = vcombine.high %v462_v18, %v466_v19  ;;  %v7328_v27 = vcombine.high %v463_v59, %v467_v20  ;;  %v519_v18 = vld [vmem:[#allocation2 + $0x758] sm:$0xff]  ;;  %v7375_v20 = vcombine.low %v511_v8, %v515_v10 }
 0x23a   :  { %3756 = vmatprep.subr.bf16.mxu0 %v7270_v28  ;;  %3920 = vmatprep.subr.bf16.mxu1 %v7272_v29  ;;  %v470_v28 = vld [vmem:[#allocation2 + $0x5d0] sm:$0xff]  ;;  %v523_v19 = vld [vmem:[#allocation2 + $0x778] sm:$0xff] }
 0x23b   :  { %v474_v29 = vld [vmem:[#allocation2 + $0x5f0] sm:$0xff] }
 0x23c   :  { %v7333_v40 = vcombine.low %v470_v28, %v474_v29 }
 0x23d   :  { %3757 = vmatpush1.bf16.msra.mxu0 %v7269_v57  ;;  %3921 = vmatpush1.bf16.msra.mxu1 %v7271_v35  ;;  %v7334_v57 = vcombine.high %v470_v28, %v474_v29  ;;  %v7336_v35 = vcombine.high %v471_v30, %v475_v31  ;;  %v527_v28 = vld [vmem:[#allocation2 + $0x798] sm:$0xff]  ;;  %v7383_v31 = vcombine.low %v519_v18, %v523_v19 }
 0x23e   :  { %3767 = vmatprep.subr.bf16.mxu0 %v7278_v63  ;;  %3931 = vmatprep.subr.bf16.mxu1 %v7280_v37  ;;  %v478_v63 = vld [vmem:[#allocation2 + $0x610] sm:$0xff]  ;;  %v531_v29 = vld [vmem:[#allocation2 + $0x7b8] sm:$0xff] }
 0x23f   :  { %v482_v37 = vld [vmem:[#allocation2 + $0x630] sm:$0xff] }
 0x240   :  { %3759 = vmatmul.mubr.bf16.vlgmr.msra.gmra.mrb[4].mxu0 %v9491_v25  ;;  %3923 = vmatmul.mubr.bf16.vlgmr.msra.gmra.mrb[4].mxu1 %v9491_v25  ;;  %v7295_v25 = vcombine.low %v431_v50, %v435_v51  ;;  %v7341_v50 = vcombine.low %v478_v63, %v482_v37  ;;  %v7343_v51 = vcombine.low %v479_v38, %v483_v39 }
 0x241   :  { %3768 = vmatpush1.bf16.msra.mxu0 %v7277_v42  ;;  %3932 = vmatpush1.bf16.msra.mxu1 %v7279_v45  ;;  %v7342_v42 = vcombine.high %v478_v63, %v482_v37  ;;  %v7344_v45 = vcombine.high %v479_v38, %v483_v39  ;;  %v535_v63 = vld [vmem:[#allocation2 + $0x7d8] sm:$0xff]  ;;  %v7391_v39 = vcombine.low %v527_v28, %v531_v29 }
 0x242   :  { %3769 = vmatprep.subr.bf16.mxu0 %v7286_v46  ;;  %3933 = vmatprep.subr.bf16.mxu1 %v7288_v47  ;;  %v486_v46 = vld [vmem:[#allocation2 + $0x650] sm:$0xff]  ;;  %v539_v37 = vld [vmem:[#allocation2 + $0x7f8] sm:$0xff] }
 0x243   :  { %3799 = vmatprep.mubr.bf16.mxu0 %v9493_v36  ;;  %3963 = vmatprep.mubr.bf16.mxu1 %v9493_v36  ;;  %v7312_v36 = vcombine.high %v447_v3, %v451_v53  ;;  %v490_v47 = vld [vmem:[#allocation2 + $0x670] sm:$0xff]  ;;  %v7359_v53 = vcombine.low %v495_v56, %v499_v58 }
 0x244   :  { %v7349_v23 = vcombine.low %v486_v46, %v490_v47 }
 0x245   :  { %3770 = vmatpush1.bf16.msra.mxu0 %v7285_v52  ;;  %3934 = vmatpush1.bf16.msra.mxu1 %v7287_v16  ;;  %v7350_v52 = vcombine.high %v486_v46, %v490_v47  ;;  %v7352_v16 = vcombine.high %v487_v48, %v491_v49  ;;  %v543_v46 = vld [vmem:[#allocation2 + $0x818] sm:$0xff]  ;;  %v7399_v49 = vcombine.low %v535_v63, %v539_v37 }
 0x246   :  { %3771 = vmatprep.subr.bf16.mxu0 %v7294_v55  ;;  %3935 = vmatprep.subr.bf16.mxu1 %v7296_v9  ;;  %v494_v55 = vld [vmem:[#allocation2 + $0x690] sm:$0xff]  ;;  %v547_v47 = vld [vmem:[#allocation2 + $0x838] sm:$0xff] }
 0x247   :  { %v498_v9 = vld [vmem:[#allocation2 + $0x6b0] sm:$0xff] }
 0x248   :  { %v7357_v3 = vcombine.low %v494_v55, %v498_v9 }
 0x249   :  { %3772 = vmatpush1.bf16.msra.mxu0 %v7293_v61  ;;  %3936 = vmatpush1.bf16.msra.mxu1 %v7295_v25  ;;  %v7358_v61 = vcombine.high %v494_v55, %v498_v9  ;;  %v7360_v25 = vcombine.high %v495_v56, %v499_v58  ;;  %v551_v55 = vld [vmem:[#allocation2 + $0x858] sm:$0xff]  ;;  %v7407_v58 = vcombine.low %v543_v46, %v547_v47 }
 0x24a   :  { %3773 = vmatprep.subr.bf16.mxu0 %v7302_v62  ;;  %3937 = vmatprep.subr.bf16.mxu1 %v7304_v0  ;;  %v502_v62 = vld [vmem:[#allocation2 + $0x6d0] sm:$0xff]  ;;  %v555_v9 = vld [vmem:[#allocation2 + $0x878] sm:$0xff] }
 0x24b   :  { %v506_v0 = vld [vmem:[#allocation2 + $0x6f0] sm:$0xff] }
 0x24c   :  { %v7365_v11 = vcombine.low %v502_v62, %v506_v0 }
 0x24d   :  { %3774 = vmatpush1.bf16.msra.mxu0 %v7301_v5  ;;  %3938 = vmatpush1.bf16.msra.mxu1 %v7303_v6  ;;  %v7366_v5 = vcombine.high %v502_v62, %v506_v0  ;;  %v7368_v6 = vcombine.high %v503_v1, %v507_v2  ;;  %v559_v62 = vld [vmem:[#allocation2 + $0x898] sm:$0xff]  ;;  %v7415_v2 = vcombine.low %v551_v55, %v555_v9 }
 0x24e   :  { %3775 = vmatprep.subr.bf16.mxu0 %v7310_v7  ;;  %3939 = vmatprep.subr.bf16.mxu1 %v7312_v36  ;;  %v510_v7 = vld [vmem:[#allocation2 + $0x710] sm:$0xff]  ;;  %v563_v0 = vld [vmem:[#allocation2 + $0x8b8] sm:$0xff] }
 0x24f   :  { %v514_v36 = vld [vmem:[#allocation2 + $0x730] sm:$0xff] }
 0x250   :  { %v7373_v59 = vcombine.low %v510_v7, %v514_v36 }
 0x251   :  { %3776 = vmatpush1.bf16.msra.mxu0 %v7309_v33  ;;  %3940 = vmatpush1.bf16.msra.mxu1 %v7311_v14  ;;  %v7374_v33 = vcombine.high %v510_v7, %v514_v36  ;;  %v7376_v14 = vcombine.high %v511_v8, %v515_v10  ;;  %v567_v7 = vld [vmem:[#allocation2 + $0x8d8] sm:$0xff] }
 0x252   :  { %3777 = vmatprep.subr.bf16.mxu0 %v7318_v15  ;;  %3941 = vmatprep.subr.bf16.mxu1 %v7320_v17  ;;  %v518_v15 = vld [vmem:[#allocation2 + $0x750] sm:$0xff]  ;;  %v571_v36 = vld [vmem:[#allocation2 + $0x8f8] sm:$0xff] }
 0x253   :  { %v522_v17 = vld [vmem:[#allocation2 + $0x770] sm:$0xff] }
 0x254   :  { %v7381_v30 = vcombine.low %v518_v15, %v522_v17 }
 0x255   :  { %3778 = vmatpush1.bf16.msra.mxu0 %v7317_v22  ;;  %3942 = vmatpush1.bf16.msra.mxu1 %v7319_v24  ;;  %v7382_v22 = vcombine.high %v518_v15, %v522_v17  ;;  %v7384_v24 = vcombine.high %v519_v18, %v523_v19  ;;  %v579_v15 = vld [vmem:[#allocation2 + $0x938] sm:$0xff]  ;;  %v7431_v18 = vcombine.low %v567_v7, %v571_v36 }
 0x256   :  { %3779 = vmatprep.subr.bf16.mxu0 %v7326_v26  ;;  %3943 = vmatprep.subr.bf16.mxu1 %v7328_v27  ;;  %v526_v26 = vld [vmem:[#allocation2 + $0x790] sm:$0xff] }
 0x257   :  { %v530_v27 = vld [vmem:[#allocation2 + $0x7b0] sm:$0xff] }
 0x258   :  { %v7389_v38 = vcombine.low %v526_v26, %v530_v27 }
 0x259   :  { %3780 = vmatpush1.bf16.msra.mxu0 %v7325_v32  ;;  %3944 = vmatpush1.bf16.msra.mxu1 %v7327_v34  ;;  %v7390_v32 = vcombine.high %v526_v26, %v530_v27  ;;  %v7392_v34 = vcombine.high %v527_v28, %v531_v29 }
 0x25a   :  { %3781 = vmatprep.subr.bf16.mxu0 %v7334_v57  ;;  %3945 = vmatprep.subr.bf16.mxu1 %v7336_v35  ;;  %v534_v57 = vld [vmem:[#allocation2 + $0x7d0] sm:$0xff] }
 0x25b   :  { %v538_v35 = vld [vmem:[#allocation2 + $0x7f0] sm:$0xff] }
 0x25c   :  { %v7397_v48 = vcombine.low %v534_v57, %v538_v35 }
 0x25d   :  { %3782 = vmatpush1.bf16.msra.mxu0 %v7333_v40  ;;  %3946 = vmatpush1.bf16.msra.mxu1 %v7335_v41  ;;  %v7398_v40 = vcombine.high %v534_v57, %v538_v35  ;;  %v7400_v41 = vcombine.high %v535_v63, %v539_v37 }
 0x25e   :  { %3783 = vmatprep.subr.bf16.mxu0 %v7342_v42  ;;  %3947 = vmatprep.subr.bf16.mxu1 %v7344_v45  ;;  %v542_v42 = vld [vmem:[#allocation2 + $0x810] sm:$0xff] }
 0x25f   :  { %v546_v45 = vld [vmem:[#allocation2 + $0x830] sm:$0xff] }
 0x260   :  { %v7405_v56 = vcombine.low %v542_v42, %v546_v45 }
 0x261   :  { %3784 = vmatpush1.bf16.msra.mxu0 %v7341_v50  ;;  %3948 = vmatpush1.bf16.msra.mxu1 %v7343_v51  ;;  %v7406_v50 = vcombine.high %v542_v42, %v546_v45  ;;  %v7408_v51 = vcombine.high %v543_v46, %v547_v47 }
 0x262   :  { %3785 = vmatprep.subr.bf16.mxu0 %v7350_v52  ;;  %3949 = vmatprep.subr.bf16.mxu1 %v7352_v16  ;;  %v550_v52 = vld [vmem:[#allocation2 + $0x850] sm:$0xff] }
 0x263   :  { %v554_v16 = vld [vmem:[#allocation2 + $0x870] sm:$0xff] }
 0x264   :  { %v7413_v1 = vcombine.low %v550_v52, %v554_v16 }
 0x265   :  { %3786 = vmatpush1.bf16.msra.mxu0 %v7349_v23  ;;  %3950 = vmatpush1.bf16.msra.mxu1 %v7351_v60  ;;  %v7414_v23 = vcombine.high %v550_v52, %v554_v16  ;;  %v7416_v60 = vcombine.high %v551_v55, %v555_v9 }
 0x266   :  { %3787 = vmatprep.subr.bf16.mxu0 %v7358_v61  ;;  %3951 = vmatprep.subr.bf16.mxu1 %v7360_v25  ;;  %v558_v61 = vld [vmem:[#allocation2 + $0x890] sm:$0xff] }
 0x267   :  { %v562_v25 = vld [vmem:[#allocation2 + $0x8b0] sm:$0xff] }
 0x268   :  { %v7421_v8 = vcombine.low %v558_v61, %v562_v25 }
 0x269   :  { %3788 = vmatpush1.bf16.msra.mxu0 %v7357_v3  ;;  %3952 = vmatpush1.bf16.msra.mxu1 %v7359_v53  ;;  %v7422_v3 = vcombine.high %v558_v61, %v562_v25  ;;  %v7424_v53 = vcombine.high %v559_v62, %v563_v0 }
 0x26a   :  { %3789 = vmatprep.subr.bf16.mxu0 %v7366_v5  ;;  %3953 = vmatprep.subr.bf16.mxu1 %v7368_v6  ;;  %v566_v5 = vld [vmem:[#allocation2 + $0x8d0] sm:$0xff] }
 0x26b   :  { %v570_v6 = vld [vmem:[#allocation2 + $0x8f0] sm:$0xff] }
 0x26c   :  { %v7430_v10 = vcombine.high %v566_v5, %v570_v6  ;;  %v7429_v17 = vcombine.low %v566_v5, %v570_v6 }
 0x26d   :  { %3790 = vmatpush1.bf16.msra.mxu0 %v7365_v11  ;;  %3954 = vmatpush1.bf16.msra.mxu1 %v7367_v12  ;;  %v7432_v11 = vcombine.high %v567_v7, %v571_v36  ;;  %v574_v12 = vld [vmem:[#allocation2 + $0x910] sm:$0xff] }
 0x26e   :  { %3791 = vmatprep.subr.bf16.mxu0 %v7374_v33  ;;  %3955 = vmatprep.subr.bf16.mxu1 %v7376_v14  ;;  %v578_v33 = vld [vmem:[#allocation2 + $0x930] sm:$0xff]  ;;  %v575_v14 = vld [vmem:[#allocation2 + $0x918] sm:$0xff] }
 0x26f   :  { %v7438_v19 = vcombine.high %v574_v12, %v578_v33  ;;  %v7437_v26 = vcombine.low %v574_v12, %v578_v33  ;;  %v7439_v27 = vcombine.low %v575_v14, %v579_v15 }
 0x271   :  { %3792 = vmatpush1.bf16.msra.mxu0 %v7373_v59  ;;  %3956 = vmatpush1.bf16.msra.mxu1 %v7375_v20  ;;  %v582_v59 = vld [vmem:[#allocation2 + $0x950] sm:$0xff] }
 0x272   :  { %3793 = vmatprep.subr.bf16.mxu0 %v7382_v22  ;;  %3957 = vmatprep.subr.bf16.mxu1 %v7384_v24  ;;  %v586_v20 = vld [vmem:[#allocation2 + $0x970] sm:$0xff]  ;;  %v583_v22 = vld [vmem:[#allocation2 + $0x958] sm:$0xff] }
 0x273   :  { %v587_v24 = vld [vmem:[#allocation2 + $0x978] sm:$0xff]  ;;  %v7446_v28 = vcombine.high %v582_v59, %v586_v20  ;;  %v7445_v57 = vcombine.low %v582_v59, %v586_v20 }
 0x274   :  { %v7448_v29 = vcombine.high %v583_v22, %v587_v24  ;;  %v7447_v35 = vcombine.low %v583_v22, %v587_v24 }
 0x275   :  { %3794 = vmatpush1.bf16.msra.mxu0 %v7381_v30  ;;  %3958 = vmatpush1.bf16.msra.mxu1 %v7383_v31  ;;  %v590_v30 = vld [vmem:[#allocation2 + $0x990] sm:$0xff] }
 0x276   :  { %3795 = vmatprep.subr.bf16.mxu0 %v7390_v32  ;;  %3959 = vmatprep.subr.bf16.mxu1 %v7392_v34  ;;  %v594_v31 = vld [vmem:[#allocation2 + $0x9b0] sm:$0xff]  ;;  %v591_v32 = vld [vmem:[#allocation2 + $0x998] sm:$0xff] }
 0x277   :  { %v595_v34 = vld [vmem:[#allocation2 + $0x9b8] sm:$0xff]  ;;  %v7454_v63 = vcombine.high %v590_v30, %v594_v31  ;;  %v7453_v42 = vcombine.low %v590_v30, %v594_v31 }
 0x278   :  { %v7456_v37 = vcombine.high %v591_v32, %v595_v34  ;;  %v7455_v45 = vcombine.low %v591_v32, %v595_v34 }
 0x279   :  { %3796 = vmatpush1.bf16.msra.mxu0 %v7389_v38  ;;  %3960 = vmatpush1.bf16.msra.mxu1 %v7391_v39  ;;  %v598_v38 = vld [vmem:[#allocation2 + $0x9d0] sm:$0xff] }
 0x27a   :  { %3797 = vmatprep.subr.bf16.mxu0 %v7398_v40  ;;  %3961 = vmatprep.subr.bf16.mxu1 %v7400_v41  ;;  %v602_v39 = vld [vmem:[#allocation2 + $0x9f0] sm:$0xff]  ;;  %v599_v40 = vld [vmem:[#allocation2 + $0x9d8] sm:$0xff] }
 0x27b   :  { %v603_v41 = vld [vmem:[#allocation2 + $0x9f8] sm:$0xff]  ;;  %v7462_v46 = vcombine.high %v598_v38, %v602_v39  ;;  %v7461_v52 = vcombine.low %v598_v38, %v602_v39 }
 0x27c   :  { %v7464_v47 = vcombine.high %v599_v40, %v603_v41  ;;  %v7463_v16 = vcombine.low %v599_v40, %v603_v41 }
 0x27d   :  { %3798 = vmatpush1.bf16.msra.mxu0 %v7397_v48  ;;  %3962 = vmatpush1.bf16.msra.mxu1 %v7399_v49  ;;  %v606_v48 = vld [vmem:[#allocation2 + $0xa10] sm:$0xff] }
 0x27e   :  { %3808 = vmatprep.subr.bf16.mxu0 %v7406_v50  ;;  %3972 = vmatprep.subr.bf16.mxu1 %v7408_v51  ;;  %v610_v49 = vld [vmem:[#allocation2 + $0xa30] sm:$0xff]  ;;  %v607_v50 = vld [vmem:[#allocation2 + $0xa18] sm:$0xff] }
 0x27f   :  { %v611_v51 = vld [vmem:[#allocation2 + $0xa38] sm:$0xff]  ;;  %v7470_v55 = vcombine.high %v606_v48, %v610_v49  ;;  %v7469_v61 = vcombine.low %v606_v48, %v610_v49 }
 0x280   :  { %3800 = vmatmul.mubr.bf16.vlgmr.msra.gmra.mrb[4].mxu0 %v9512_v43  ;;  %3964 = vmatmul.mubr.bf16.vlgmr.msra.gmra.mrb[4].mxu1 %v9512_v43  ;;  %v7423_v43 = vcombine.low %v559_v62, %v563_v0  ;;  %v7472_v9 = vcombine.high %v607_v50, %v611_v51  ;;  %v7471_v25 = vcombine.low %v607_v50, %v611_v51 }
 0x281   :  { %3809 = vmatpush1.bf16.msra.mxu0 %v7405_v56  ;;  %3973 = vmatpush1.bf16.msra.mxu1 %v7407_v58  ;;  %v614_v56 = vld [vmem:[#allocation2 + $0xa50] sm:$0xff] }
 0x282   :  { %3810 = vmatprep.subr.bf16.mxu0 %v7414_v23  ;;  %3974 = vmatprep.subr.bf16.mxu1 %v7416_v60  ;;  %v618_v58 = vld [vmem:[#allocation2 + $0xa70] sm:$0xff]  ;;  %v615_v23 = vld [vmem:[#allocation2 + $0xa58] sm:$0xff] }
 0x283   :  { %3840 = vmatprep.mubr.bf16.mxu0 %v9514_v54  ;;  %4004 = vmatprep.mubr.bf16.mxu1 %v9514_v54  ;;  %v7440_v54 = vcombine.high %v575_v14, %v579_v15  ;;  %v619_v60 = vld [vmem:[#allocation2 + $0xa78] sm:$0xff]  ;;  %v7478_v62 = vcombine.high %v614_v56, %v618_v58  ;;  %v7477_v5 = vcombine.low %v614_v56, %v618_v58 }
 0x284   :  { %v7480_v0 = vcombine.high %v615_v23, %v619_v60  ;;  %v7479_v6 = vcombine.low %v615_v23, %v619_v60 }
 0x285   :  { %3811 = vmatpush1.bf16.msra.mxu0 %v7413_v1  ;;  %3975 = vmatpush1.bf16.msra.mxu1 %v7415_v2  ;;  %v622_v1 = vld [vmem:[#allocation2 + $0xa90] sm:$0xff] }
 0x286   :  { %3812 = vmatprep.subr.bf16.mxu0 %v7422_v3  ;;  %3976 = vmatprep.subr.bf16.mxu1 %v7424_v53  ;;  %v626_v2 = vld [vmem:[#allocation2 + $0xab0] sm:$0xff]  ;;  %v623_v3 = vld [vmem:[#allocation2 + $0xa98] sm:$0xff] }
 0x287   :  { %v627_v53 = vld [vmem:[#allocation2 + $0xab8] sm:$0xff]  ;;  %v7486_v7 = vcombine.high %v622_v1, %v626_v2  ;;  %v7485_v12 = vcombine.low %v622_v1, %v626_v2 }
 0x288   :  { %v7488_v36 = vcombine.high %v623_v3, %v627_v53  ;;  %v7487_v33 = vcombine.low %v623_v3, %v627_v53 }
 0x289   :  { %3813 = vmatpush1.bf16.msra.mxu0 %v7421_v8  ;;  %3977 = vmatpush1.bf16.msra.mxu1 %v7423_v43  ;;  %v630_v8 = vld [vmem:[#allocation2 + $0xad0] sm:$0xff] }
 0x28a   :  { %3814 = vmatprep.subr.bf16.mxu0 %v7430_v10  ;;  %3978 = vmatprep.subr.bf16.mxu1 %v7432_v11  ;;  %v634_v43 = vld [vmem:[#allocation2 + $0xaf0] sm:$0xff]  ;;  %v631_v10 = vld [vmem:[#allocation2 + $0xad8] sm:$0xff] }
 0x28b   :  { %v635_v11 = vld [vmem:[#allocation2 + $0xaf8] sm:$0xff]  ;;  %v7494_v14 = vcombine.high %v630_v8, %v634_v43  ;;  %v7493_v59 = vcombine.low %v630_v8, %v634_v43 }
 0x28c   :  { %v7496_v15 = vcombine.high %v631_v10, %v635_v11  ;;  %v7495_v20 = vcombine.low %v631_v10, %v635_v11 }
 0x28d   :  { %3815 = vmatpush1.bf16.msra.mxu0 %v7429_v17  ;;  %3979 = vmatpush1.bf16.msra.mxu1 %v7431_v18  ;;  %v638_v17 = vld [vmem:[#allocation2 + $0xb10] sm:$0xff] }
 0x28e   :  { %3816 = vmatprep.subr.bf16.mxu0 %v7438_v19  ;;  %3980 = vmatprep.subr.bf16.mxu1 %v7440_v54  ;;  %v642_v18 = vld [vmem:[#allocation2 + $0xb30] sm:$0xff]  ;;  %v639_v19 = vld [vmem:[#allocation2 + $0xb18] sm:$0xff] }
 0x28f   :  { %v643_v54 = vld [vmem:[#allocation2 + $0xb38] sm:$0xff]  ;;  %v7502_v22 = vcombine.high %v638_v17, %v642_v18  ;;  %v7501_v30 = vcombine.low %v638_v17, %v642_v18 }
 0x290   :  { %v7504_v24 = vcombine.high %v639_v19, %v643_v54  ;;  %v7503_v31 = vcombine.low %v639_v19, %v643_v54  ;;  %v702_v54 = vld [vmem:[#allocation2 + $0xd10] sm:$0xff] }
 0x291   :  { %3817 = vmatpush1.bf16.msra.mxu0 %v7437_v26  ;;  %3981 = vmatpush1.bf16.msra.mxu1 %v7439_v27  ;;  %v646_v26 = vld [vmem:[#allocation2 + $0xb50] sm:$0xff] }
 0x292   :  { %3818 = vmatprep.subr.bf16.mxu0 %v7446_v28  ;;  %3982 = vmatprep.subr.bf16.mxu1 %v7448_v29  ;;  %v650_v27 = vld [vmem:[#allocation2 + $0xb70] sm:$0xff]  ;;  %v647_v28 = vld [vmem:[#allocation2 + $0xb58] sm:$0xff] }
 0x293   :  { %v651_v29 = vld [vmem:[#allocation2 + $0xb78] sm:$0xff]  ;;  %v7510_v32 = vcombine.high %v646_v26, %v650_v27  ;;  %v7509_v38 = vcombine.low %v646_v26, %v650_v27 }
 0x294   :  { %v7512_v34 = vcombine.high %v647_v28, %v651_v29  ;;  %v7511_v39 = vcombine.low %v647_v28, %v651_v29  ;;  %v710_v28 = vld [vmem:[#allocation2 + $0xd50] sm:$0xff] }
 0x295   :  { %3819 = vmatpush1.bf16.msra.mxu0 %v7445_v57  ;;  %3983 = vmatpush1.bf16.msra.mxu1 %v7447_v35  ;;  %v654_v57 = vld [vmem:[#allocation2 + $0xb90] sm:$0xff] }
 0x296   :  { %3820 = vmatprep.subr.bf16.mxu0 %v7454_v63  ;;  %3984 = vmatprep.subr.bf16.mxu1 %v7456_v37  ;;  %v658_v35 = vld [vmem:[#allocation2 + $0xbb0] sm:$0xff]  ;;  %v655_v63 = vld [vmem:[#allocation2 + $0xb98] sm:$0xff] }
 0x297   :  { %v659_v37 = vld [vmem:[#allocation2 + $0xbb8] sm:$0xff]  ;;  %v7518_v40 = vcombine.high %v654_v57, %v658_v35  ;;  %v7517_v48 = vcombine.low %v654_v57, %v658_v35  ;;  %v714_v29 = vld [vmem:[#allocation2 + $0xd70] sm:$0xff] }
 0x298   :  { %v7520_v41 = vcombine.high %v655_v63, %v659_v37  ;;  %v7519_v49 = vcombine.low %v655_v63, %v659_v37  ;;  %v7574_v57 = vcombine.high %v710_v28, %v714_v29  ;;  %v718_v63 = vld [vmem:[#allocation2 + $0xd90] sm:$0xff] }
 0x299   :  { %3821 = vmatpush1.bf16.msra.mxu0 %v7453_v42  ;;  %3985 = vmatpush1.bf16.msra.mxu1 %v7455_v45  ;;  %v662_v42 = vld [vmem:[#allocation2 + $0xbd0] sm:$0xff] }
 0x29a   :  { %3822 = vmatprep.subr.bf16.mxu0 %v7462_v46  ;;  %3986 = vmatprep.subr.bf16.mxu1 %v7464_v47  ;;  %v666_v45 = vld [vmem:[#allocation2 + $0xbf0] sm:$0xff]  ;;  %v663_v46 = vld [vmem:[#allocation2 + $0xbd8] sm:$0xff] }
 0x29b   :  { %v667_v47 = vld [vmem:[#allocation2 + $0xbf8] sm:$0xff]  ;;  %v7526_v50 = vcombine.high %v662_v42, %v666_v45  ;;  %v7525_v56 = vcombine.low %v662_v42, %v666_v45  ;;  %v722_v37 = vld [vmem:[#allocation2 + $0xdb0] sm:$0xff] }
 0x29c   :  { %v7528_v51 = vcombine.high %v663_v46, %v667_v47  ;;  %v7527_v58 = vcombine.low %v663_v46, %v667_v47  ;;  %v7582_v42 = vcombine.high %v718_v63, %v722_v37  ;;  %v726_v47 = vld [vmem:[#allocation2 + $0xdd0] sm:$0xff] }
 0x29d   :  { %3823 = vmatpush1.bf16.msra.mxu0 %v7461_v52  ;;  %3987 = vmatpush1.bf16.msra.mxu1 %v7463_v16  ;;  %v670_v52 = vld [vmem:[#allocation2 + $0xc10] sm:$0xff] }
 0x29e   :  { %3824 = vmatprep.subr.bf16.mxu0 %v7470_v55  ;;  %3988 = vmatprep.subr.bf16.mxu1 %v7472_v9  ;;  %v674_v16 = vld [vmem:[#allocation2 + $0xc30] sm:$0xff]  ;;  %v671_v55 = vld [vmem:[#allocation2 + $0xc18] sm:$0xff] }
 0x29f   :  { %v675_v9 = vld [vmem:[#allocation2 + $0xc38] sm:$0xff]  ;;  %v7534_v23 = vcombine.high %v670_v52, %v674_v16  ;;  %v7533_v1 = vcombine.low %v670_v52, %v674_v16 }
 0x2a0   :  { %v7536_v60 = vcombine.high %v671_v55, %v675_v9  ;;  %v7535_v2 = vcombine.low %v671_v55, %v675_v9  ;;  %v731_v52 = vld [vmem:[#allocation2 + $0xdf8] sm:$0xff]  ;;  %v7581_v9 = vcombine.low %v718_v63, %v722_v37 }
 0x2a1   :  { %3825 = vmatpush1.bf16.msra.mxu0 %v7469_v61  ;;  %3989 = vmatpush1.bf16.msra.mxu1 %v7471_v25  ;;  %v678_v61 = vld [vmem:[#allocation2 + $0xc50] sm:$0xff] }
 0x2a2   :  { %3826 = vmatprep.subr.bf16.mxu0 %v7478_v62  ;;  %3990 = vmatprep.subr.bf16.mxu1 %v7480_v0  ;;  %v682_v25 = vld [vmem:[#allocation2 + $0xc70] sm:$0xff]  ;;  %v679_v62 = vld [vmem:[#allocation2 + $0xc58] sm:$0xff] }
 0x2a3   :  { %v683_v0 = vld [vmem:[#allocation2 + $0xc78] sm:$0xff]  ;;  %v7542_v3 = vcombine.high %v678_v61, %v682_v25  ;;  %v7541_v8 = vcombine.low %v678_v61, %v682_v25 }
 0x2a4   :  { %v7544_v53 = vcombine.high %v679_v62, %v683_v0  ;;  %v7543_v43 = vcombine.low %v679_v62, %v683_v0  ;;  %v734_v62 = vld [vmem:[#allocation2 + $0xe10] sm:$0xff] }
 0x2a5   :  { %3827 = vmatpush1.bf16.msra.mxu0 %v7477_v5  ;;  %3991 = vmatpush1.bf16.msra.mxu1 %v7479_v6  ;;  %v686_v5 = vld [vmem:[#allocation2 + $0xc90] sm:$0xff] }
 0x2a6   :  { %3828 = vmatprep.subr.bf16.mxu0 %v7486_v7  ;;  %3992 = vmatprep.subr.bf16.mxu1 %v7488_v36  ;;  %v690_v6 = vld [vmem:[#allocation2 + $0xcb0] sm:$0xff]  ;;  %v687_v7 = vld [vmem:[#allocation2 + $0xc98] sm:$0xff] }
 0x2a7   :  { %v691_v36 = vld [vmem:[#allocation2 + $0xcb8] sm:$0xff]  ;;  %v7550_v10 = vcombine.high %v686_v5, %v690_v6  ;;  %v7549_v17 = vcombine.low %v686_v5, %v690_v6  ;;  %v738_v0 = vld [vmem:[#allocation2 + $0xe30] sm:$0xff] }
 0x2a8   :  { %v7552_v11 = vcombine.high %v687_v7, %v691_v36  ;;  %v7598_v5 = vcombine.high %v734_v62, %v738_v0 }
 0x2a9   :  { %3829 = vmatpush1.bf16.msra.mxu0 %v7485_v12  ;;  %3993 = vmatpush1.bf16.msra.mxu1 %v7487_v33  ;;  %v694_v12 = vld [vmem:[#allocation2 + $0xcd0] sm:$0xff] }
 0x2aa   :  { %3830 = vmatprep.subr.bf16.mxu0 %v7494_v14  ;;  %3994 = vmatprep.subr.bf16.mxu1 %v7496_v15  ;;  %v698_v33 = vld [vmem:[#allocation2 + $0xcf0] sm:$0xff]  ;;  %v695_v14 = vld [vmem:[#allocation2 + $0xcd8] sm:$0xff] }
 0x2ab   :  { %v699_v15 = vld [vmem:[#allocation2 + $0xcf8] sm:$0xff]  ;;  %v7558_v18 = vcombine.high %v694_v12, %v698_v33 }
 0x2ac   :  { %v7560_v19 = vcombine.high %v695_v14, %v699_v15  ;;  %v7559_v26 = vcombine.low %v695_v14, %v699_v15  ;;  %v750_v14 = vld [vmem:[#allocation2 + $0xe90] sm:$0xff] }
 0x2ad   :  { %3831 = vmatpush1.bf16.msra.mxu0 %v7493_v59  ;;  %3995 = vmatpush1.bf16.msra.mxu1 %v7495_v20  ;;  %v706_v59 = vld [vmem:[#allocation2 + $0xd30] sm:$0xff]  ;;  %v703_v20 = vld [vmem:[#allocation2 + $0xd18] sm:$0xff] }
 0x2ae   :  { %3832 = vmatprep.subr.bf16.mxu0 %v7502_v22  ;;  %3996 = vmatprep.subr.bf16.mxu1 %v7504_v24  ;;  %v707_v22 = vld [vmem:[#allocation2 + $0xd38] sm:$0xff]  ;;  %v7557_v24 = vcombine.low %v694_v12, %v698_v33  ;;  %v7566_v27 = vcombine.high %v702_v54, %v706_v59  ;;  %v754_v15 = vld [vmem:[#allocation2 + $0xeb0] sm:$0xff] }
 0x2b1   :  { %3833 = vmatpush1.bf16.msra.mxu0 %v7501_v30  ;;  %3997 = vmatpush1.bf16.msra.mxu1 %v7503_v31  ;;  %v711_v30 = vld [vmem:[#allocation2 + $0xd58] sm:$0xff] }
 0x2b2   :  { %3834 = vmatprep.subr.bf16.mxu0 %v7510_v32  ;;  %3998 = vmatprep.subr.bf16.mxu1 %v7512_v34  ;;  %v715_v31 = vld [vmem:[#allocation2 + $0xd78] sm:$0xff]  ;;  %v7565_v32 = vcombine.low %v702_v54, %v706_v59  ;;  %v7567_v34 = vcombine.low %v703_v20, %v707_v22  ;;  %v7614_v54 = vcombine.high %v750_v14, %v754_v15 }
 0x2b3   :  { %v7576_v35 = vcombine.high %v711_v30, %v715_v31 }
 0x2b5   :  { %3835 = vmatpush1.bf16.msra.mxu0 %v7509_v38  ;;  %3999 = vmatpush1.bf16.msra.mxu1 %v7511_v39  ;;  %v719_v38 = vld [vmem:[#allocation2 + $0xd98] sm:$0xff] }
 0x2b6   :  { %3836 = vmatprep.subr.bf16.mxu0 %v7518_v40  ;;  %4000 = vmatprep.subr.bf16.mxu1 %v7520_v41  ;;  %v723_v39 = vld [vmem:[#allocation2 + $0xdb8] sm:$0xff]  ;;  %v7573_v40 = vcombine.low %v710_v28, %v714_v29  ;;  %v7575_v41 = vcombine.low %v711_v30, %v715_v31  ;;  %v766_v30 = vld [vmem:[#allocation2 + $0xf10] sm:$0xff] }
 0x2b7   :  { %v7584_v46 = vcombine.high %v719_v38, %v723_v39  ;;  %v770_v31 = vld [vmem:[#allocation2 + $0xf30] sm:$0xff] }
 0x2b8   :  { %v7630_v63 = vcombine.high %v766_v30, %v770_v31 }
 0x2b9   :  { %3837 = vmatpush1.bf16.msra.mxu0 %v7517_v48  ;;  %4001 = vmatpush1.bf16.msra.mxu1 %v7519_v49  ;;  %v730_v48 = vld [vmem:[#allocation2 + $0xdf0] sm:$0xff] }
 0x2ba   :  { %3838 = vmatprep.subr.bf16.mxu0 %v7526_v50  ;;  %4002 = vmatprep.subr.bf16.mxu1 %v7528_v51  ;;  %v727_v51 = vld [vmem:[#allocation2 + $0xdd8] sm:$0xff] }
 0x2bb   :  { %v7592_v25 = vcombine.high %v727_v51, %v731_v52 }
 0x2bd   :  { %3839 = vmatpush1.bf16.msra.mxu0 %v7525_v56  ;;  %4003 = vmatpush1.bf16.msra.mxu1 %v7527_v58 }
 0x2be   :  { %3849 = vmatprep.subr.bf16.mxu0 %v7534_v23  ;;  %4013 = vmatprep.subr.bf16.mxu1 %v7536_v60  ;;  %v7583_v23 = vcombine.low %v719_v38, %v723_v39  ;;  %v7590_v60 = vcombine.high %v726_v47, %v730_v48  ;;  %v774_v38 = vld [vmem:[#allocation2 + $0xf50] sm:$0xff] }
 0x2bf   :  { %v778_v39 = vld [vmem:[#allocation2 + $0xf70] sm:$0xff] }
 0x2c0   :  { %3841 = vmatmul.mubr.bf16.vlgmr.msra.gmra.mrb[4].mxu0 %v9529_v4  ;;  %4005 = vmatmul.mubr.bf16.vlgmr.msra.gmra.mrb[4].mxu1 %v9529_v4  ;;  %v7551_v4 = vcombine.low %v687_v7, %v691_v36  ;;  %v742_v7 = vld [vmem:[#allocation2 + $0xe50] sm:$0xff] }
 0x2c1   :  { %3850 = vmatpush1.bf16.msra.mxu0 %v7533_v1  ;;  %4014 = vmatpush1.bf16.msra.mxu1 %v7535_v2  ;;  %v735_v1 = vld [vmem:[#allocation2 + $0xe18] sm:$0xff]  ;;  %v746_v36 = vld [vmem:[#allocation2 + $0xe70] sm:$0xff] }
 0x2c2   :  { %3851 = vmatprep.subr.bf16.mxu0 %v7542_v3  ;;  %4015 = vmatprep.subr.bf16.mxu1 %v7544_v53  ;;  %v739_v2 = vld [vmem:[#allocation2 + $0xe38] sm:$0xff]  ;;  %v7589_v3 = vcombine.low %v726_v47, %v730_v48  ;;  %v7591_v53 = vcombine.low %v727_v51, %v731_v52  ;;  %v7606_v12 = vcombine.high %v742_v7, %v746_v36  ;;  %v782_v51 = vld [vmem:[#allocation2 + $0xf90] sm:$0xff] }
 0x2c3   :  { %3881 = vmatprep.mubr.bf16.mxu0 %v9531_v13  ;;  %4045 = vmatprep.mubr.bf16.mxu1 %v9531_v13  ;;  %v7568_v13 = vcombine.high %v703_v20, %v707_v22  ;;  %v7600_v6 = vcombine.high %v735_v1, %v739_v2  ;;  %v758_v20 = vld [vmem:[#allocation2 + $0xed0] sm:$0xff]  ;;  %v7638_v47 = vcombine.high %v774_v38, %v778_v39 }
 0x2c4   :  { %v762_v22 = vld [vmem:[#allocation2 + $0xef0] sm:$0xff] }
 0x2c5   :  { %3852 = vmatpush1.bf16.msra.mxu0 %v7541_v8  ;;  %4016 = vmatpush1.bf16.msra.mxu1 %v7543_v43  ;;  %v743_v8 = vld [vmem:[#allocation2 + $0xe58] sm:$0xff]  ;;  %v7622_v28 = vcombine.high %v758_v20, %v762_v22  ;;  %v786_v52 = vld [vmem:[#allocation2 + $0xfb0] sm:$0xff] }
 0x2c6   :  { %3853 = vmatprep.subr.bf16.mxu0 %v7550_v10  ;;  %4017 = vmatprep.subr.bf16.mxu1 %v7552_v11  ;;  %v747_v43 = vld [vmem:[#allocation2 + $0xe78] sm:$0xff]  ;;  %v7597_v10 = vcombine.low %v734_v62, %v738_v0  ;;  %v7599_v11 = vcombine.low %v735_v1, %v739_v2  ;;  %v790_v62 = vld [vmem:[#allocation2 + $0xfd0] sm:$0xff] }
 0x2c7   :  { %v7608_v33 = vcombine.high %v743_v8, %v747_v43  ;;  %v794_v0 = vld [vmem:[#allocation2 + $0xff0] sm:$0xff]  ;;  %v791_v2 = vld [vmem:[#allocation2 + $0xfd8] sm:$0xff] }
 0x2c9   :  { %3854 = vmatpush1.bf16.msra.mxu0 %v7549_v17  ;;  %4018 = vmatpush1.bf16.msra.mxu1 %v7551_v4  ;;  %v751_v17 = vld [vmem:[#allocation2 + $0xe98] sm:$0xff] }
 0x2ca   :  { %3855 = vmatprep.subr.bf16.mxu0 %v7558_v18  ;;  %4019 = vmatprep.subr.bf16.mxu1 %v7560_v19  ;;  %v755_v4 = vld [vmem:[#allocation2 + $0xeb8] sm:$0xff]  ;;  %v7605_v18 = vcombine.low %v742_v7, %v746_v36  ;;  %v7607_v19 = vcombine.low %v743_v8, %v747_v43  ;;  %v7653_v8 = vcombine.low %v790_v62, %v794_v0 }
 0x2cb   :  { %v7616_v59 = vcombine.high %v751_v17, %v755_v4 }
 0x2cd   :  { %3856 = vmatpush1.bf16.msra.mxu0 %v7557_v24  ;;  %4020 = vmatpush1.bf16.msra.mxu1 %v7559_v26  ;;  %v759_v24 = vld [vmem:[#allocation2 + $0xed8] sm:$0xff] }
 0x2ce   :  { %3857 = vmatprep.subr.bf16.mxu0 %v7566_v27  ;;  %4021 = vmatprep.subr.bf16.mxu1 %v7568_v13  ;;  %v763_v26 = vld [vmem:[#allocation2 + $0xef8] sm:$0xff]  ;;  %v7613_v27 = vcombine.low %v750_v14, %v754_v15  ;;  %v7615_v13 = vcombine.low %v751_v17, %v755_v4  ;;  %v8288_v14 = vld [vmem:[#allocation7 + $0x8] ss:$16 sps:$4 sm:$0xff]  }
 0x2cf   :  { %v7624_v29 = vcombine.high %v759_v24, %v763_v26  ;;  %v8293_v15 = vld [vmem:[#allocation7 + $0x24] ss:$16 sps:$4 sm:$0xff]   ;;  %v8291_v4 = vld [vmem:[#allocation7 + $0x20] ss:$16 sps:$4 sm:$0xff]  }
 0x2d1   :  { %3858 = vmatpush1.bf16.msra.mxu0 %v7565_v32  ;;  %4022 = vmatpush1.bf16.msra.mxu1 %v7567_v34  ;;  %v767_v32 = vld [vmem:[#allocation2 + $0xf18] sm:$0xff] }
 0x2d2   :  { %3859 = vmatprep.subr.bf16.mxu0 %v7574_v57  ;;  %4023 = vmatprep.subr.bf16.mxu1 %v7576_v35  ;;  %v771_v34 = vld [vmem:[#allocation2 + $0xf38] sm:$0xff]  ;;  %v7621_v57 = vcombine.low %v758_v20, %v762_v22  ;;  %v7623_v35 = vcombine.low %v759_v24, %v763_v26  ;;  %v8300_v20 = vld [vmem:[#allocation7 + $0x48] ss:$16 sps:$4 sm:$0xff]   ;;  %v8308_v24 = vld [vmem:[#allocation7 + $0x6c] ss:$16 sps:$4 sm:$0xff]  }
 0x2d3   :  { %v9557_v45 = vpop.f32.mrb[0].mxu0  ;;  %v9559_v49 = vpop.f32.mrb[0].mxu1  ;;  %v7632_v37 = vcombine.high %v767_v32, %v771_v34  ;;  %v8305_v22 = vld [vmem:[#allocation7 + $0x64] ss:$16 sps:$4 sm:$0xff]   ;;  %v8306_v26 = vld [vmem:[#allocation7 + $0x68] ss:$16 sps:$4 sm:$0xff]  }
 0x2d4   :  { %v9561_v50 = vpop.f32.mrb[1].mxu0  ;;  %v9563_v16 = vpop.f32.mrb[1].mxu1 }
 0x2d5   :  { %v3559_v55 = vpop.f32.mrb[2].mxu0  ;;  %3860 = vmatpush1.bf16.msra.mxu0 %v7573_v40  ;;  %v3723_v56 = vpop.f32.mrb[2].mxu1  ;;  %4024 = vmatpush1.bf16.msra.mxu1 %v7575_v41  ;;  %v775_v40 = vld [vmem:[#allocation2 + $0xf58] sm:$0xff] }
 0x2d6   :  { %v3560_v58 = vpop.f32.mrb[3].mxu0  ;;  %3861 = vmatprep.subr.bf16.mxu0 %v7582_v42  ;;  %v3724_v61 = vpop.f32.mrb[3].mxu1  ;;  %4025 = vmatprep.subr.bf16.mxu1 %v7584_v46  ;;  %v779_v41 = vld [vmem:[#allocation2 + $0xf78] sm:$0xff]  ;;  %v7629_v42 = vcombine.low %v766_v30, %v770_v31  ;;  %v7631_v46 = vcombine.low %v767_v32, %v771_v34  ;;  %v9566_v55 = vsub.s32 1, %v9462_v44  ;;  %v8320_v31 = vld [vmem:[#allocation7 + $0xac] ss:$16 sps:$4 sm:$0xff]  }
 0x2d7   :  { %v7640_v48 = vcombine.high %v775_v40, %v779_v41  ;;  %v787_v56 = vld [vmem:[#allocation2 + $0xfb8] sm:$0xff]  ;;  %v9568_v58 = vld [vmem:[#allocation5] sm:$0xff]  ;;  %v7646_v61 = vcombine.high %v782_v51, %v786_v52 }
 0x2d8   :  { %v805_v1 = vrot.slane %v9568_v58, %v9566_v55  ;;  %v8317_v30 = vld [vmem:[#allocation7 + $0xa4] ss:$16 sps:$4 sm:$0xff]   ;;  %v8315_v32 = vld [vmem:[#allocation7 + $0xa0] ss:$16 sps:$4 sm:$0xff]   ;;  %v8318_v34 = vld [vmem:[#allocation7 + $0xa8] ss:$16 sps:$4 sm:$0xff]  }
 0x2d9   :  { %3862 = vmatpush1.bf16.msra.mxu0 %v7581_v9  ;;  %4026 = vmatpush1.bf16.msra.mxu1 %v7583_v23  ;;  %v783_v9 = vld [vmem:[#allocation2 + $0xf98] sm:$0xff]  ;;  %v7637_v23 = vcombine.low %v774_v38, %v778_v39  ;;  %v8332_v39 = vld [vmem:[#allocation7 + $0xec] ss:$16 sps:$4 sm:$0xff]  }
 0x2da   :  { %3863 = vmatprep.subr.bf16.mxu0 %v7590_v60  ;;  %4027 = vmatprep.subr.bf16.mxu1 %v7592_v25  ;;  %v7639_v60 = vcombine.low %v775_v40, %v779_v41  ;;  %v7648_v25 = vcombine.high %v783_v9, %v787_v56  ;;  %v8171_v36 = vadd.f32 %v9561_v50, %v805_v1  ;;  %v8296_v50 = vld [vmem:[#allocation7 + $0x2c] ss:$16 sps:$4 sm:$0xff]   ;;  %v8329_v38 = vld [vmem:[#allocation7 + $0xe4] ss:$16 sps:$4 sm:$0xff]   ;;  %v8327_v40 = vld [vmem:[#allocation7 + $0xe0] ss:$16 sps:$4 sm:$0xff]  }
 0x2db   :  { %v8330_v41 = vld [vmem:[#allocation7 + $0xe8] ss:$16 sps:$4 sm:$0xff]   ;;  %v8351_v1 = vld [vmem:[#allocation7 + $0x160] ss:$16 sps:$4 sm:$0xff]  }
 0x2dd   :  { %3864 = vmatpush1.bf16.msra.mxu0 %v7589_v3  ;;  %4028 = vmatpush1.bf16.msra.mxu1 %v7591_v53  ;;  %v795_v3 = vld [vmem:[#allocation2 + $0xff8] sm:$0xff]  ;;  %v7645_v53 = vcombine.low %v782_v51, %v786_v52  ;;  %v8344_v52 = vld [vmem:[#allocation7 + $0x12c] ss:$16 sps:$4 sm:$0xff]  }
 0x2de   :  { %3865 = vmatprep.subr.bf16.mxu0 %v7598_v5  ;;  %4029 = vmatprep.subr.bf16.mxu1 %v7600_v6  ;;  %v7647_v5 = vcombine.low %v783_v9, %v787_v56  ;;  %v7654_v6 = vcombine.high %v790_v62, %v794_v0  ;;  %v7656_v7 = vcombine.high %v791_v2, %v795_v3  ;;  %v8341_v51 = vld [vmem:[#allocation7 + $0x124] ss:$16 sps:$4 sm:$0xff]   ;;  %v8339_v9 = vld [vmem:[#allocation7 + $0x120] ss:$16 sps:$4 sm:$0xff]   ;;  %v8342_v56 = vld [vmem:[#allocation7 + $0x128] ss:$16 sps:$4 sm:$0xff]  }
 0x2df   :  { %v7655_v43 = vcombine.low %v791_v2, %v795_v3  ;;  %v8353_v62 = vld [vmem:[#allocation7 + $0x164] ss:$16 sps:$4 sm:$0xff]   ;;  %v8356_v0 = vld [vmem:[#allocation7 + $0x16c] ss:$16 sps:$4 sm:$0xff]   ;;  %v8354_v2 = vld [vmem:[#allocation7 + $0x168] ss:$16 sps:$4 sm:$0xff]  }
 0x2e0   :  { %v8359_v3 = vld [vmem:[#allocation7 + $0x184] ss:$16 sps:$4 sm:$0xff]  }
 0x2e1   :  { %3866 = vmatpush1.bf16.msra.mxu0 %v7597_v10  ;;  %4030 = vmatpush1.bf16.msra.mxu1 %v7599_v11  ;;  %v8287_v10 = vld [vmem:[#allocation7 + $0x4] ss:$16 sps:$4 sm:$0xff]   ;;  %v8290_v11 = vld [vmem:[#allocation7 + $0xc] ss:$16 sps:$4 sm:$0xff]  }
 0x2e2   :  { %3867 = vmatprep.subr.bf16.mxu0 %v7606_v12  ;;  %4031 = vmatprep.subr.bf16.mxu1 %v7608_v33  ;;  %v4055_v12 = vmax.f32 %v8171_v36, 0.0  ;;  %v8285_v33 = vld [vmem:[#allocation7] ss:$16 sps:$4 sm:$0xff]   ;;  %v8365_v36 = vld [vmem:[#allocation7 + $0x1a4] ss:$16 sps:$4 sm:$0xff]  }
 0x2e4   :  { %v4063_v17 = vpack.c.bf16 %v4055_v12, %v4055_v12  ;;  %v8366_v12 = vld [vmem:[#allocation7 + $0x1a8] ss:$16 sps:$4 sm:$0xff]  }
 0x2e5   :  { %3868 = vmatpush1.bf16.msra.mxu0 %v7605_v18  ;;  %4032 = vmatpush1.bf16.msra.mxu1 %v7607_v19  ;;  %v8294_v18 = vld [vmem:[#allocation7 + $0x28] ss:$16 sps:$4 sm:$0xff]   ;;  %v8299_v19 = vld [vmem:[#allocation7 + $0x44] ss:$16 sps:$4 sm:$0xff]  }
 0x2e6   :  { %3869 = vmatprep.subr.bf16.mxu0 %v7614_v54  ;;  %4033 = vmatprep.subr.bf16.mxu1 %v7616_v59  ;;  %v8302_v54 = vld [vmem:[#allocation7 + $0x4c] ss:$16 sps:$4 sm:$0xff]   ;;  %v8297_v59 = vld [vmem:[#allocation7 + $0x40] ss:$16 sps:$4 sm:$0xff]  }
 0x2e9   :  { %3870 = vmatpush1.bf16.msra.mxu0 %v7613_v27  ;;  %4034 = vmatpush1.bf16.msra.mxu1 %v7615_v13  ;;  %v8311_v27 = vld [vmem:[#allocation7 + $0x84] ss:$16 sps:$4 sm:$0xff]   ;;  %v8314_v13 = vld [vmem:[#allocation7 + $0x8c] ss:$16 sps:$4 sm:$0xff]  }
 0x2ea   :  { %3871 = vmatprep.subr.bf16.mxu0 %v7622_v28  ;;  %4035 = vmatprep.subr.bf16.mxu1 %v7624_v29  ;;  %v8309_v28 = vld [vmem:[#allocation7 + $0x80] ss:$16 sps:$4 sm:$0xff]   ;;  %v8312_v29 = vld [vmem:[#allocation7 + $0x88] ss:$16 sps:$4 sm:$0xff]  }
 0x2ed   :  { %3872 = vmatpush1.bf16.msra.mxu0 %v7621_v57  ;;  %4036 = vmatpush1.bf16.msra.mxu1 %v7623_v35  ;;  %v8323_v57 = vld [vmem:[#allocation7 + $0xc4] ss:$16 sps:$4 sm:$0xff]   ;;  %v8326_v35 = vld [vmem:[#allocation7 + $0xcc] ss:$16 sps:$4 sm:$0xff]  }
 0x2ee   :  { %3873 = vmatprep.subr.bf16.mxu0 %v7630_v63  ;;  %4037 = vmatprep.subr.bf16.mxu1 %v7632_v37  ;;  %v8321_v63 = vld [vmem:[#allocation7 + $0xc0] ss:$16 sps:$4 sm:$0xff]   ;;  %v8324_v37 = vld [vmem:[#allocation7 + $0xc8] ss:$16 sps:$4 sm:$0xff]  }
 0x2f1   :  { %3874 = vmatpush1.bf16.msra.mxu0 %v7629_v42  ;;  %4038 = vmatpush1.bf16.msra.mxu1 %v7631_v46  ;;  %v8335_v42 = vld [vmem:[#allocation7 + $0x104] ss:$16 sps:$4 sm:$0xff]   ;;  %v8338_v46 = vld [vmem:[#allocation7 + $0x10c] ss:$16 sps:$4 sm:$0xff]  }
 0x2f2   :  { %3875 = vmatprep.subr.bf16.mxu0 %v7638_v47  ;;  %4039 = vmatprep.subr.bf16.mxu1 %v7640_v48  ;;  %v8333_v47 = vld [vmem:[#allocation7 + $0x100] ss:$16 sps:$4 sm:$0xff]   ;;  %v8336_v48 = vld [vmem:[#allocation7 + $0x108] ss:$16 sps:$4 sm:$0xff]  }
 0x2f5   :  { %3876 = vmatpush1.bf16.msra.mxu0 %v7637_v23  ;;  %4040 = vmatpush1.bf16.msra.mxu1 %v7639_v60  ;;  %v8347_v23 = vld [vmem:[#allocation7 + $0x144] ss:$16 sps:$4 sm:$0xff]   ;;  %v8350_v60 = vld [vmem:[#allocation7 + $0x14c] ss:$16 sps:$4 sm:$0xff]  }
 0x2f6   :  { %3877 = vmatprep.subr.bf16.mxu0 %v7646_v61  ;;  %4041 = vmatprep.subr.bf16.mxu1 %v7648_v25  ;;  %v8345_v61 = vld [vmem:[#allocation7 + $0x140] ss:$16 sps:$4 sm:$0xff]   ;;  %v8348_v25 = vld [vmem:[#allocation7 + $0x148] ss:$16 sps:$4 sm:$0xff]  }
 0x2f9   :  { %3878 = vmatpush1.bf16.msra.mxu0 %v7645_v53  ;;  %4042 = vmatpush1.bf16.msra.mxu1 %v7647_v5  ;;  %v8362_v53 = vld [vmem:[#allocation7 + $0x18c] ss:$16 sps:$4 sm:$0xff]   ;;  %v8357_v5 = vld [vmem:[#allocation7 + $0x180] ss:$16 sps:$4 sm:$0xff]  }
 0x2fa   :  { %3879 = vmatprep.subr.bf16.mxu0 %v7654_v6  ;;  %4043 = vmatprep.subr.bf16.mxu1 %v7656_v7  ;;  %v9576_v6 = vsub.s32 0, %v9462_v44  ;;  %v8360_v7 = vld [vmem:[#allocation7 + $0x188] ss:$16 sps:$4 sm:$0xff]  }
 0x2fd   :  { %3880 = vmatpush1.bf16.msra.mxu0 %v7653_v8  ;;  %4044 = vmatpush1.bf16.msra.mxu1 %v7655_v43  ;;  %v8368_v8 = vld [vmem:[#allocation7 + $0x1ac] ss:$16 sps:$4 sm:$0xff]   ;;  %v812_v43 = vsub.s32 3, %v9462_v44 }
 0x2fe   :  { %5628 = vmatprep.subr.bf16.mxu0 %v8287_v10  ;;  %5792 = vmatprep.subr.bf16.mxu1 %v8290_v11  ;;  %v8363_v10 = vld [vmem:[#allocation7 + $0x1a0] ss:$16 sps:$4 sm:$0xff]   ;;  %v801_v11 = vrot.slane %v9568_v58, %v9576_v6 }
 0x300   :  { %3882 = vmatmul.mubr.bf16.vlgmr.msra.gmra.mrb[4].mxu0 %v9539_v21  ;;  %4046 = vmatmul.mubr.bf16.vlgmr.msra.gmra.mrb[4].mxu1 %v9539_v21  ;;  %v8303_v21 = vld [vmem:[#allocation7 + $0x60] ss:$16 sps:$4 sm:$0xff]  }
 0x301   :  { %5629 = vmatpush1.bf16.msra.mxu0 %v8285_v33  ;;  %5660 = vmatprep.mubr.bf16.mxu0 %v4063_v17  ;;  %v8371_v33 = vld [vmem:[#allocation7 + $0x1c4] ss:$16 sps:$4 sm:$0xff]  }
 0x302   :  { %5793 = vmatpush1.bf16.msra.mxu1 %v8288_v14  ;;  %5824 = vmatprep.mubr.bf16.mxu1 %v4063_v17  ;;  %v8374_v14 = vld [vmem:[#allocation7 + $0x1cc] ss:$16 sps:$4 sm:$0xff]   ;;  %v8369_v17 = vld [vmem:[#allocation7 + $0x1c0] ss:$16 sps:$4 sm:$0xff]  }
 0x303   :  { %5630 = vmatprep.subr.bf16.mxu0 %v8293_v15  ;;  %5794 = vmatprep.subr.bf16.mxu1 %v8296_v50  ;;  %v813_v15 = vrot.slane %v9568_v58, %v812_v43  ;;  %v8170_v50 = vadd.f32 %v9557_v45, %v801_v11  ;;  %v8381_v45 = vld [vmem:[#allocation7 + $0x200] ss:$16 sps:$4 sm:$0xff]   ;;  %v8446_v11 = vld [vmem:[#allocation7 + $0x34c] ss:$16 sps:$4 sm:$0xff]  }
 0x305   :  { %5631 = vmatpush1.bf16.msra.mxu0 %v8291_v4  ;;  %v8372_v4 = vld [vmem:[#allocation7 + $0x1c8] ss:$16 sps:$4 sm:$0xff]  }
 0x306   :  { %5795 = vmatpush1.bf16.msra.mxu1 %v8294_v18  ;;  %5632 = vmatprep.subr.bf16.mxu0 %v8299_v19  ;;  %v8377_v18 = vld [vmem:[#allocation7 + $0x1e4] ss:$16 sps:$4 sm:$0xff]   ;;  %v8380_v19 = vld [vmem:[#allocation7 + $0x1ec] ss:$16 sps:$4 sm:$0xff]  }
 0x307   :  { %5796 = vmatprep.subr.bf16.mxu1 %v8302_v54  ;;  %v8173_v54 = vadd.f32 %v9563_v16, %v813_v15  ;;  %v8392_v16 = vld [vmem:[#allocation7 + $0x22c] ss:$16 sps:$4 sm:$0xff]  }
 0x308   :  { %v8452_v15 = vld [vmem:[#allocation7 + $0x36c] ss:$16 sps:$4 sm:$0xff]  }
 0x309   :  { %5633 = vmatpush1.bf16.msra.mxu0 %v8297_v59  ;;  %v8375_v59 = vld [vmem:[#allocation7 + $0x1e0] ss:$16 sps:$4 sm:$0xff]  }
 0x30a   :  { %5797 = vmatpush1.bf16.msra.mxu1 %v8300_v20  ;;  %5634 = vmatprep.subr.bf16.mxu0 %v8305_v22  ;;  %v4054_v20 = vmax.f32 %v8170_v50, 0.0  ;;  %v8378_v22 = vld [vmem:[#allocation7 + $0x1e8] ss:$16 sps:$4 sm:$0xff]  }
 0x30b   :  { %5798 = vmatprep.subr.bf16.mxu1 %v8308_v24  ;;  %v8383_v24 = vld [vmem:[#allocation7 + $0x204] ss:$16 sps:$4 sm:$0xff]   ;;  %v8450_v50 = vld [vmem:[#allocation7 + $0x368] ss:$16 sps:$4 sm:$0xff]  }
 0x30d   :  { %5635 = vmatpush1.bf16.msra.mxu0 %v8303_v21  ;;  %v8386_v21 = vld [vmem:[#allocation7 + $0x20c] ss:$16 sps:$4 sm:$0xff]  }
 0x30e   :  { %5799 = vmatpush1.bf16.msra.mxu1 %v8306_v26  ;;  %5636 = vmatprep.subr.bf16.mxu0 %v8311_v27  ;;  %v4057_v26 = vmax.f32 %v8173_v54, 0.0  ;;  %v4062_v27 = vpack.c.bf16 %v4054_v20, %v4054_v20  ;;  %v808_v54 = vsub.s32 2, %v9462_v44  ;;  %v8461_v20 = vld [vmem:[#allocation7 + $0x3a4] ss:$16 sps:$4 sm:$0xff]  }
 0x30f   :  { %5800 = vmatprep.subr.bf16.mxu1 %v8314_v13  ;;  %v8384_v13 = vld [vmem:[#allocation7 + $0x208] ss:$16 sps:$4 sm:$0xff]  }
 0x311   :  { %5637 = vmatpush1.bf16.msra.mxu0 %v8309_v28  ;;  %v8389_v28 = vld [vmem:[#allocation7 + $0x224] ss:$16 sps:$4 sm:$0xff]  }
 0x312   :  { %5801 = vmatpush1.bf16.msra.mxu1 %v8312_v29  ;;  %5638 = vmatprep.subr.bf16.mxu0 %v8317_v30  ;;  %v4065_v29 = vpack.c.bf16 %v4057_v26, %v4057_v26  ;;  %v8387_v30 = vld [vmem:[#allocation7 + $0x220] ss:$16 sps:$4 sm:$0xff]   ;;  %v8462_v26 = vld [vmem:[#allocation7 + $0x3a8] ss:$16 sps:$4 sm:$0xff]  }
 0x313   :  { %5802 = vmatprep.subr.bf16.mxu1 %v8320_v31  ;;  %v8390_v31 = vld [vmem:[#allocation7 + $0x228] ss:$16 sps:$4 sm:$0xff]  }
 0x315   :  { %5639 = vmatpush1.bf16.msra.mxu0 %v8315_v32  ;;  %v8395_v32 = vld [vmem:[#allocation7 + $0x244] ss:$16 sps:$4 sm:$0xff]  }
 0x316   :  { %5803 = vmatpush1.bf16.msra.mxu1 %v8318_v34  ;;  %5640 = vmatprep.subr.bf16.mxu0 %v8323_v57  ;;  %v8398_v34 = vld [vmem:[#allocation7 + $0x24c] ss:$16 sps:$4 sm:$0xff]   ;;  %v8393_v57 = vld [vmem:[#allocation7 + $0x240] ss:$16 sps:$4 sm:$0xff]  }
 0x317   :  { %5804 = vmatprep.subr.bf16.mxu1 %v8326_v35  ;;  %v8396_v35 = vld [vmem:[#allocation7 + $0x248] ss:$16 sps:$4 sm:$0xff]  }
 0x319   :  { %5641 = vmatpush1.bf16.msra.mxu0 %v8321_v63  ;;  %v8401_v63 = vld [vmem:[#allocation7 + $0x264] ss:$16 sps:$4 sm:$0xff]  }
 0x31a   :  { %5805 = vmatpush1.bf16.msra.mxu1 %v8324_v37  ;;  %5642 = vmatprep.subr.bf16.mxu0 %v8329_v38  ;;  %v8404_v37 = vld [vmem:[#allocation7 + $0x26c] ss:$16 sps:$4 sm:$0xff]   ;;  %v8399_v38 = vld [vmem:[#allocation7 + $0x260] ss:$16 sps:$4 sm:$0xff]  }
 0x31b   :  { %5806 = vmatprep.subr.bf16.mxu1 %v8332_v39  ;;  %v8402_v39 = vld [vmem:[#allocation7 + $0x268] ss:$16 sps:$4 sm:$0xff]  }
 0x31d   :  { %5643 = vmatpush1.bf16.msra.mxu0 %v8327_v40  ;;  %v8407_v40 = vld [vmem:[#allocation7 + $0x284] ss:$16 sps:$4 sm:$0xff]  }
 0x31e   :  { %5807 = vmatpush1.bf16.msra.mxu1 %v8330_v41  ;;  %5644 = vmatprep.subr.bf16.mxu0 %v8335_v42  ;;  %v8410_v41 = vld [vmem:[#allocation7 + $0x28c] ss:$16 sps:$4 sm:$0xff]   ;;  %v8405_v42 = vld [vmem:[#allocation7 + $0x280] ss:$16 sps:$4 sm:$0xff]  }
 0x31f   :  { %5808 = vmatprep.subr.bf16.mxu1 %v8338_v46  ;;  %v8408_v46 = vld [vmem:[#allocation7 + $0x288] ss:$16 sps:$4 sm:$0xff]  }
 0x321   :  { %5645 = vmatpush1.bf16.msra.mxu0 %v8333_v47  ;;  %v8413_v47 = vld [vmem:[#allocation7 + $0x2a4] ss:$16 sps:$4 sm:$0xff]  }
 0x322   :  { %5809 = vmatpush1.bf16.msra.mxu1 %v8336_v48  ;;  %5646 = vmatprep.subr.bf16.mxu0 %v8341_v51  ;;  %v8416_v48 = vld [vmem:[#allocation7 + $0x2ac] ss:$16 sps:$4 sm:$0xff]   ;;  %v8411_v51 = vld [vmem:[#allocation7 + $0x2a0] ss:$16 sps:$4 sm:$0xff]  }
 0x323   :  { %5810 = vmatprep.subr.bf16.mxu1 %v8344_v52  ;;  %v8414_v52 = vld [vmem:[#allocation7 + $0x2a8] ss:$16 sps:$4 sm:$0xff]  }
 0x325   :  { %5647 = vmatpush1.bf16.msra.mxu0 %v8339_v9  ;;  %v8419_v9 = vld [vmem:[#allocation7 + $0x2c4] ss:$16 sps:$4 sm:$0xff]  }
 0x326   :  { %5811 = vmatpush1.bf16.msra.mxu1 %v8342_v56  ;;  %5648 = vmatprep.subr.bf16.mxu0 %v8347_v23  ;;  %v8422_v56 = vld [vmem:[#allocation7 + $0x2cc] ss:$16 sps:$4 sm:$0xff]   ;;  %v8417_v23 = vld [vmem:[#allocation7 + $0x2c0] ss:$16 sps:$4 sm:$0xff]  }
 0x327   :  { %5812 = vmatprep.subr.bf16.mxu1 %v8350_v60  ;;  %v8420_v60 = vld [vmem:[#allocation7 + $0x2c8] ss:$16 sps:$4 sm:$0xff]  }
 0x329   :  { %5649 = vmatpush1.bf16.msra.mxu0 %v8345_v61  ;;  %v8425_v61 = vld [vmem:[#allocation7 + $0x2e4] ss:$16 sps:$4 sm:$0xff]  }
 0x32a   :  { %5813 = vmatpush1.bf16.msra.mxu1 %v8348_v25  ;;  %5650 = vmatprep.subr.bf16.mxu0 %v8353_v62  ;;  %v8428_v25 = vld [vmem:[#allocation7 + $0x2ec] ss:$16 sps:$4 sm:$0xff]   ;;  %v8423_v62 = vld [vmem:[#allocation7 + $0x2e0] ss:$16 sps:$4 sm:$0xff]  }
 0x32b   :  { %5814 = vmatprep.subr.bf16.mxu1 %v8356_v0  ;;  %v8426_v0 = vld [vmem:[#allocation7 + $0x2e8] ss:$16 sps:$4 sm:$0xff]  }
 0x32d   :  { %5651 = vmatpush1.bf16.msra.mxu0 %v8351_v1  ;;  %v8431_v1 = vld [vmem:[#allocation7 + $0x304] ss:$16 sps:$4 sm:$0xff]  }
 0x32e   :  { %5815 = vmatpush1.bf16.msra.mxu1 %v8354_v2  ;;  %5652 = vmatprep.subr.bf16.mxu0 %v8359_v3  ;;  %v8434_v2 = vld [vmem:[#allocation7 + $0x30c] ss:$16 sps:$4 sm:$0xff]   ;;  %v8429_v3 = vld [vmem:[#allocation7 + $0x300] ss:$16 sps:$4 sm:$0xff]  }
 0x32f   :  { %5816 = vmatprep.subr.bf16.mxu1 %v8362_v53  ;;  %v8432_v53 = vld [vmem:[#allocation7 + $0x308] ss:$16 sps:$4 sm:$0xff]  }
 0x331   :  { %5653 = vmatpush1.bf16.msra.mxu0 %v8357_v5  ;;  %v8437_v5 = vld [vmem:[#allocation7 + $0x324] ss:$16 sps:$4 sm:$0xff]  }
 0x332   :  { %5817 = vmatpush1.bf16.msra.mxu1 %v8360_v7  ;;  %5654 = vmatprep.subr.bf16.mxu0 %v8365_v36  ;;  %v8440_v7 = vld [vmem:[#allocation7 + $0x32c] ss:$16 sps:$4 sm:$0xff]   ;;  %v8435_v36 = vld [vmem:[#allocation7 + $0x320] ss:$16 sps:$4 sm:$0xff]  }
 0x333   :  { %5818 = vmatprep.subr.bf16.mxu1 %v8368_v8  ;;  %v8438_v8 = vld [vmem:[#allocation7 + $0x328] ss:$16 sps:$4 sm:$0xff]  }
 0x335   :  { %5655 = vmatpush1.bf16.msra.mxu0 %v8363_v10  ;;  %v8443_v10 = vld [vmem:[#allocation7 + $0x344] ss:$16 sps:$4 sm:$0xff]  }
 0x336   :  { %5819 = vmatpush1.bf16.msra.mxu1 %v8366_v12  ;;  %5656 = vmatprep.subr.bf16.mxu0 %v8371_v33  ;;  %v8441_v12 = vld [vmem:[#allocation7 + $0x340] ss:$16 sps:$4 sm:$0xff]   ;;  %v8444_v33 = vld [vmem:[#allocation7 + $0x348] ss:$16 sps:$4 sm:$0xff]  }
 0x337   :  { %5820 = vmatprep.subr.bf16.mxu1 %v8374_v14  ;;  %v8449_v14 = vld [vmem:[#allocation7 + $0x364] ss:$16 sps:$4 sm:$0xff]  }
 0x339   :  { %5657 = vmatpush1.bf16.msra.mxu0 %v8369_v17  ;;  %v8447_v17 = vld [vmem:[#allocation7 + $0x360] ss:$16 sps:$4 sm:$0xff]  }
 0x33a   :  { %5821 = vmatpush1.bf16.msra.mxu1 %v8372_v4  ;;  %5658 = vmatprep.subr.bf16.mxu0 %v8377_v18  ;;  %v8455_v4 = vld [vmem:[#allocation7 + $0x384] ss:$16 sps:$4 sm:$0xff]   ;;  %v8458_v18 = vld [vmem:[#allocation7 + $0x38c] ss:$16 sps:$4 sm:$0xff]  }
 0x33b   :  { %5822 = vmatprep.subr.bf16.mxu1 %v8380_v19  ;;  %v8453_v19 = vld [vmem:[#allocation7 + $0x380] ss:$16 sps:$4 sm:$0xff]  }
 0x33d   :  { %5659 = vmatpush1.bf16.msra.mxu0 %v8375_v59  ;;  %v8456_v59 = vld [vmem:[#allocation7 + $0x388] ss:$16 sps:$4 sm:$0xff]  }
 0x33e   :  { %5823 = vmatpush1.bf16.msra.mxu1 %v8378_v22  ;;  %5669 = vmatprep.subr.bf16.mxu0 %v8383_v24  ;;  %v8464_v22 = vld [vmem:[#allocation7 + $0x3ac] ss:$16 sps:$4 sm:$0xff]   ;;  %v8459_v24 = vld [vmem:[#allocation7 + $0x3a0] ss:$16 sps:$4 sm:$0xff]  }
 0x33f   :  { %5833 = vmatprep.subr.bf16.mxu1 %v8386_v21  ;;  %v809_v21 = vrot.slane %v9568_v58, %v808_v54 }
 0x340   :  { %5661 = vmatmul.mubr.bf16.vlgmr.msra.gmra.mrb[8].mxu0 %v4062_v27 }
 0x341   :  { %5825 = vmatmul.mubr.bf16.vlgmr.msra.gmra.mrb[8].mxu1 %v4062_v27  ;;  %5670 = vmatpush1.bf16.msra.mxu0 %v8381_v45  ;;  %v8467_v45 = vld [vmem:[#allocation7 + $0x3c4] ss:$16 sps:$4 sm:$0xff]   ;;  %v8470_v27 = vld [vmem:[#allocation7 + $0x3cc] ss:$16 sps:$4 sm:$0xff]  }
 0x342   :  { %5701 = vmatprep.mubr.bf16.mxu0 %v4065_v29  ;;  %5834 = vmatpush1.bf16.msra.mxu1 %v8384_v13  ;;  %v8465_v13 = vld [vmem:[#allocation7 + $0x3c0] ss:$16 sps:$4 sm:$0xff]  }
 0x343   :  { %5865 = vmatprep.mubr.bf16.mxu1 %v4065_v29  ;;  %5671 = vmatprep.subr.bf16.mxu0 %v8389_v28  ;;  %v8172_v28 = vadd.f32 %v9559_v49, %v809_v21  ;;  %v8468_v29 = vld [vmem:[#allocation7 + $0x3c8] ss:$16 sps:$4 sm:$0xff]   ;;  %v8548_v21 = vld [vmem:[#allocation7 + $0x56c] ss:$16 sps:$4 sm:$0xff]  }
 0x344   :  { %5835 = vmatprep.subr.bf16.mxu1 %v8392_v16  ;;  %v8473_v16 = vld [vmem:[#allocation7 + $0x3e4] ss:$16 sps:$4 sm:$0xff]   ;;  %v8480_v49 = vld [vmem:[#allocation7 + $0x408] ss:$16 sps:$4 sm:$0xff]  }
 0x345   :  { %5672 = vmatpush1.bf16.msra.mxu0 %v8387_v30  ;;  %v8476_v30 = vld [vmem:[#allocation7 + $0x3ec] ss:$16 sps:$4 sm:$0xff]  }
 0x346   :  { %5836 = vmatpush1.bf16.msra.mxu1 %v8390_v31  ;;  %5673 = vmatprep.subr.bf16.mxu0 %v8395_v32  ;;  %v8471_v31 = vld [vmem:[#allocation7 + $0x3e0] ss:$16 sps:$4 sm:$0xff]   ;;  %v4056_v32 = vmax.f32 %v8172_v28, 0.0 }
 0x347   :  { %5837 = vmatprep.subr.bf16.mxu1 %v8398_v34  ;;  %v8474_v34 = vld [vmem:[#allocation7 + $0x3e8] ss:$16 sps:$4 sm:$0xff]   ;;  %v8549_v28 = vld [vmem:[#allocation7 + $0x580] ss:$16 sps:$4 sm:$0xff]  }
 0x349   :  { %5674 = vmatpush1.bf16.msra.mxu0 %v8393_v57  ;;  %v8479_v57 = vld [vmem:[#allocation7 + $0x404] ss:$16 sps:$4 sm:$0xff]  }
 0x34a   :  { %5838 = vmatpush1.bf16.msra.mxu1 %v8396_v35  ;;  %5675 = vmatprep.subr.bf16.mxu0 %v8401_v63  ;;  %v8482_v35 = vld [vmem:[#allocation7 + $0x40c] ss:$16 sps:$4 sm:$0xff]   ;;  %v8477_v63 = vld [vmem:[#allocation7 + $0x400] ss:$16 sps:$4 sm:$0xff]  }
 0x34b   :  { %5839 = vmatprep.subr.bf16.mxu1 %v8404_v37  ;;  %v4064_v37 = vpack.c.bf16 %v4056_v32, %v4056_v32  ;;  %v8558_v32 = vld [vmem:[#allocation7 + $0x5a8] ss:$16 sps:$4 sm:$0xff]  }
 0x34d   :  { %5676 = vmatpush1.bf16.msra.mxu0 %v8399_v38  ;;  %v8485_v38 = vld [vmem:[#allocation7 + $0x424] ss:$16 sps:$4 sm:$0xff]  }
 0x34e   :  { %5840 = vmatpush1.bf16.msra.mxu1 %v8402_v39  ;;  %5677 = vmatprep.subr.bf16.mxu0 %v8407_v40  ;;  %v8488_v39 = vld [vmem:[#allocation7 + $0x42c] ss:$16 sps:$4 sm:$0xff]   ;;  %v8483_v40 = vld [vmem:[#allocation7 + $0x420] ss:$16 sps:$4 sm:$0xff]  }
 0x34f   :  { %5841 = vmatprep.subr.bf16.mxu1 %v8410_v41  ;;  %v8486_v41 = vld [vmem:[#allocation7 + $0x428] ss:$16 sps:$4 sm:$0xff]  }
 0x351   :  { %5678 = vmatpush1.bf16.msra.mxu0 %v8405_v42  ;;  %v8491_v42 = vld [vmem:[#allocation7 + $0x444] ss:$16 sps:$4 sm:$0xff]  }
 0x352   :  { %5842 = vmatpush1.bf16.msra.mxu1 %v8408_v46  ;;  %5679 = vmatprep.subr.bf16.mxu0 %v8413_v47  ;;  %v8494_v46 = vld [vmem:[#allocation7 + $0x44c] ss:$16 sps:$4 sm:$0xff]   ;;  %v8489_v47 = vld [vmem:[#allocation7 + $0x440] ss:$16 sps:$4 sm:$0xff]  }
 0x353   :  { %5843 = vmatprep.subr.bf16.mxu1 %v8416_v48  ;;  %v8492_v48 = vld [vmem:[#allocation7 + $0x448] ss:$16 sps:$4 sm:$0xff]  }
 0x355   :  { %5680 = vmatpush1.bf16.msra.mxu0 %v8411_v51  ;;  %v8497_v51 = vld [vmem:[#allocation7 + $0x464] ss:$16 sps:$4 sm:$0xff]  }
 0x356   :  { %5844 = vmatpush1.bf16.msra.mxu1 %v8414_v52  ;;  %5681 = vmatprep.subr.bf16.mxu0 %v8419_v9  ;;  %v8500_v52 = vld [vmem:[#allocation7 + $0x46c] ss:$16 sps:$4 sm:$0xff]   ;;  %v8495_v9 = vld [vmem:[#allocation7 + $0x460] ss:$16 sps:$4 sm:$0xff]  }
 0x357   :  { %5845 = vmatprep.subr.bf16.mxu1 %v8422_v56  ;;  %v8498_v56 = vld [vmem:[#allocation7 + $0x468] ss:$16 sps:$4 sm:$0xff]  }
 0x359   :  { %5682 = vmatpush1.bf16.msra.mxu0 %v8417_v23  ;;  %v8503_v23 = vld [vmem:[#allocation7 + $0x484] ss:$16 sps:$4 sm:$0xff]  }
 0x35a   :  { %5846 = vmatpush1.bf16.msra.mxu1 %v8420_v60  ;;  %5683 = vmatprep.subr.bf16.mxu0 %v8425_v61  ;;  %v8506_v60 = vld [vmem:[#allocation7 + $0x48c] ss:$16 sps:$4 sm:$0xff]   ;;  %v8501_v61 = vld [vmem:[#allocation7 + $0x480] ss:$16 sps:$4 sm:$0xff]  }
 0x35b   :  { %5847 = vmatprep.subr.bf16.mxu1 %v8428_v25  ;;  %v8504_v25 = vld [vmem:[#allocation7 + $0x488] ss:$16 sps:$4 sm:$0xff]  }
 0x35d   :  { %5684 = vmatpush1.bf16.msra.mxu0 %v8423_v62  ;;  %v8509_v62 = vld [vmem:[#allocation7 + $0x4a4] ss:$16 sps:$4 sm:$0xff]  }
 0x35e   :  { %5848 = vmatpush1.bf16.msra.mxu1 %v8426_v0  ;;  %5685 = vmatprep.subr.bf16.mxu0 %v8431_v1  ;;  %v8512_v0 = vld [vmem:[#allocation7 + $0x4ac] ss:$16 sps:$4 sm:$0xff]   ;;  %v8507_v1 = vld [vmem:[#allocation7 + $0x4a0] ss:$16 sps:$4 sm:$0xff]  }
 0x35f   :  { %5849 = vmatprep.subr.bf16.mxu1 %v8434_v2  ;;  %v8510_v2 = vld [vmem:[#allocation7 + $0x4a8] ss:$16 sps:$4 sm:$0xff]  }
 0x361   :  { %5686 = vmatpush1.bf16.msra.mxu0 %v8429_v3  ;;  %v8515_v3 = vld [vmem:[#allocation7 + $0x4c4] ss:$16 sps:$4 sm:$0xff]  }
 0x362   :  { %5850 = vmatpush1.bf16.msra.mxu1 %v8432_v53  ;;  %5687 = vmatprep.subr.bf16.mxu0 %v8437_v5  ;;  %v8518_v53 = vld [vmem:[#allocation7 + $0x4cc] ss:$16 sps:$4 sm:$0xff]   ;;  %v8513_v5 = vld [vmem:[#allocation7 + $0x4c0] ss:$16 sps:$4 sm:$0xff]  }
 0x363   :  { %5851 = vmatprep.subr.bf16.mxu1 %v8440_v7  ;;  %v8516_v7 = vld [vmem:[#allocation7 + $0x4c8] ss:$16 sps:$4 sm:$0xff]  }
 0x365   :  { %5688 = vmatpush1.bf16.msra.mxu0 %v8435_v36  ;;  %v8521_v36 = vld [vmem:[#allocation7 + $0x4e4] ss:$16 sps:$4 sm:$0xff]  }
 0x366   :  { %5852 = vmatpush1.bf16.msra.mxu1 %v8438_v8  ;;  %5689 = vmatprep.subr.bf16.mxu0 %v8443_v10  ;;  %v8524_v8 = vld [vmem:[#allocation7 + $0x4ec] ss:$16 sps:$4 sm:$0xff]   ;;  %v8519_v10 = vld [vmem:[#allocation7 + $0x4e0] ss:$16 sps:$4 sm:$0xff]  }
 0x367   :  { %5853 = vmatprep.subr.bf16.mxu1 %v8446_v11  ;;  %v8522_v11 = vld [vmem:[#allocation7 + $0x4e8] ss:$16 sps:$4 sm:$0xff]  }
 0x369   :  { %5690 = vmatpush1.bf16.msra.mxu0 %v8441_v12  ;;  %v8527_v12 = vld [vmem:[#allocation7 + $0x504] ss:$16 sps:$4 sm:$0xff]  }
 0x36a   :  { %5854 = vmatpush1.bf16.msra.mxu1 %v8444_v33  ;;  %5691 = vmatprep.subr.bf16.mxu0 %v8449_v14  ;;  %v8530_v33 = vld [vmem:[#allocation7 + $0x50c] ss:$16 sps:$4 sm:$0xff]   ;;  %v8525_v14 = vld [vmem:[#allocation7 + $0x500] ss:$16 sps:$4 sm:$0xff]  }
 0x36b   :  { %5855 = vmatprep.subr.bf16.mxu1 %v8452_v15  ;;  %v8528_v15 = vld [vmem:[#allocation7 + $0x508] ss:$16 sps:$4 sm:$0xff]  }
 0x36d   :  { %5692 = vmatpush1.bf16.msra.mxu0 %v8447_v17  ;;  %v8533_v17 = vld [vmem:[#allocation7 + $0x524] ss:$16 sps:$4 sm:$0xff]  }
 0x36e   :  { %5856 = vmatpush1.bf16.msra.mxu1 %v8450_v50  ;;  %5693 = vmatprep.subr.bf16.mxu0 %v8455_v4  ;;  %v8536_v50 = vld [vmem:[#allocation7 + $0x52c] ss:$16 sps:$4 sm:$0xff]   ;;  %v8531_v4 = vld [vmem:[#allocation7 + $0x520] ss:$16 sps:$4 sm:$0xff]  }
 0x36f   :  { %5857 = vmatprep.subr.bf16.mxu1 %v8458_v18  ;;  %v8534_v18 = vld [vmem:[#allocation7 + $0x528] ss:$16 sps:$4 sm:$0xff]  }
 0x371   :  { %5694 = vmatpush1.bf16.msra.mxu0 %v8453_v19  ;;  %v8539_v19 = vld [vmem:[#allocation7 + $0x544] ss:$16 sps:$4 sm:$0xff]  }
 0x372   :  { %5858 = vmatpush1.bf16.msra.mxu1 %v8456_v59  ;;  %5695 = vmatprep.subr.bf16.mxu0 %v8461_v20  ;;  %v8542_v59 = vld [vmem:[#allocation7 + $0x54c] ss:$16 sps:$4 sm:$0xff]   ;;  %v8537_v20 = vld [vmem:[#allocation7 + $0x540] ss:$16 sps:$4 sm:$0xff]  }
 0x373   :  { %5859 = vmatprep.subr.bf16.mxu1 %v8464_v22  ;;  %v8540_v22 = vld [vmem:[#allocation7 + $0x548] ss:$16 sps:$4 sm:$0xff]  }
 0x375   :  { %5696 = vmatpush1.bf16.msra.mxu0 %v8459_v24  ;;  %v8545_v24 = vld [vmem:[#allocation7 + $0x564] ss:$16 sps:$4 sm:$0xff]  }
 0x376   :  { %5860 = vmatpush1.bf16.msra.mxu1 %v8462_v26  ;;  %5697 = vmatprep.subr.bf16.mxu0 %v8467_v45  ;;  %v8543_v26 = vld [vmem:[#allocation7 + $0x560] ss:$16 sps:$4 sm:$0xff]   ;;  %v8546_v45 = vld [vmem:[#allocation7 + $0x568] ss:$16 sps:$4 sm:$0xff]  }
 0x377   :  { %5861 = vmatprep.subr.bf16.mxu1 %v8470_v27  ;;  %v8551_v27 = vld [vmem:[#allocation7 + $0x584] ss:$16 sps:$4 sm:$0xff]  }
 0x379   :  { %5698 = vmatpush1.bf16.msra.mxu0 %v8465_v13  ;;  %v8554_v13 = vld [vmem:[#allocation7 + $0x58c] ss:$16 sps:$4 sm:$0xff]  }
 0x37a   :  { %5862 = vmatpush1.bf16.msra.mxu1 %v8468_v29  ;;  %5699 = vmatprep.subr.bf16.mxu0 %v8473_v16  ;;  %v8552_v29 = vld [vmem:[#allocation7 + $0x588] ss:$16 sps:$4 sm:$0xff]   ;;  %v8557_v16 = vld [vmem:[#allocation7 + $0x5a4] ss:$16 sps:$4 sm:$0xff]  }
 0x37b   :  { %5863 = vmatprep.subr.bf16.mxu1 %v8476_v30  ;;  %v8560_v30 = vld [vmem:[#allocation7 + $0x5ac] ss:$16 sps:$4 sm:$0xff]  }
 0x37d   :  { %5700 = vmatpush1.bf16.msra.mxu0 %v8471_v31  ;;  %v8555_v31 = vld [vmem:[#allocation7 + $0x5a0] ss:$16 sps:$4 sm:$0xff]  }
 0x37e   :  { %5864 = vmatpush1.bf16.msra.mxu1 %v8474_v34  ;;  %5710 = vmatprep.subr.bf16.mxu0 %v8479_v57  ;;  %v8563_v34 = vld [vmem:[#allocation7 + $0x5c4] ss:$16 sps:$4 sm:$0xff]   ;;  %v8566_v57 = vld [vmem:[#allocation7 + $0x5cc] ss:$16 sps:$4 sm:$0xff]  }
 0x37f   :  { %5874 = vmatprep.subr.bf16.mxu1 %v8482_v35  ;;  %v8561_v35 = vld [vmem:[#allocation7 + $0x5c0] ss:$16 sps:$4 sm:$0xff]  }
 0x380   :  { %5702 = vmatmul.mubr.bf16.vlgmr.msra.gmra.mrb[8].mxu0 %v4064_v37 }
 0x381   :  { %5866 = vmatmul.mubr.bf16.vlgmr.msra.gmra.mrb[8].mxu1 %v4064_v37  ;;  %5711 = vmatpush1.bf16.msra.mxu0 %v8477_v63  ;;  %v8564_v63 = vld [vmem:[#allocation7 + $0x5c8] ss:$16 sps:$4 sm:$0xff]   ;;  %v8569_v37 = vld [vmem:[#allocation7 + $0x5e4] ss:$16 sps:$4 sm:$0xff]  }
 0x382   :  { %5875 = vmatpush1.bf16.msra.mxu1 %v8480_v49  ;;  %5712 = vmatprep.subr.bf16.mxu0 %v8485_v38  ;;  %v8572_v49 = vld [vmem:[#allocation7 + $0x5ec] ss:$16 sps:$4 sm:$0xff]   ;;  %v8567_v38 = vld [vmem:[#allocation7 + $0x5e0] ss:$16 sps:$4 sm:$0xff]  }
 0x383   :  { %5876 = vmatprep.subr.bf16.mxu1 %v8488_v39  ;;  %v8570_v39 = vld [vmem:[#allocation7 + $0x5e8] ss:$16 sps:$4 sm:$0xff]  }
 0x385   :  { %5713 = vmatpush1.bf16.msra.mxu0 %v8483_v40  ;;  %v8575_v40 = vld [vmem:[#allocation7 + $0x604] ss:$16 sps:$4 sm:$0xff]  }
 0x386   :  { %5877 = vmatpush1.bf16.msra.mxu1 %v8486_v41  ;;  %5714 = vmatprep.subr.bf16.mxu0 %v8491_v42  ;;  %v8578_v41 = vld [vmem:[#allocation7 + $0x60c] ss:$16 sps:$4 sm:$0xff]   ;;  %v816_v42 = vsub.s32 4, %v9462_v44 }
 0x387   :  { %5878 = vmatprep.subr.bf16.mxu1 %v8494_v46  ;;  %v820_v46 = vsub.s32 5, %v9462_v44 }
 0x389   :  { %5715 = vmatpush1.bf16.msra.mxu0 %v8489_v47  ;;  %v828_v47 = vsub.s32 7, %v9462_v44 }
 0x38a   :  { %5879 = vmatpush1.bf16.msra.mxu1 %v8492_v48  ;;  %5716 = vmatprep.subr.bf16.mxu0 %v8497_v51  ;;  %v817_v48 = vrot.slane %v9568_v58, %v816_v42  ;;  %v821_v51 = vrot.slane %v9568_v58, %v820_v46  ;;  %v8627_v42 = vld [vmem:[#allocation7 + $0x720] ss:$16 sps:$4 sm:$0xff]   ;;  %v8630_v46 = vld [vmem:[#allocation7 + $0x728] ss:$16 sps:$4 sm:$0xff]  }
 0x38b   :  { %5880 = vmatprep.subr.bf16.mxu1 %v8500_v52  ;;  %v829_v52 = vrot.slane %v9568_v58, %v828_v47  ;;  %v8581_v58 = vld [vmem:[#allocation7 + $0x624] ss:$16 sps:$4 sm:$0xff]  }
 0x38c   :  { %v8635_v47 = vld [vmem:[#allocation7 + $0x744] ss:$16 sps:$4 sm:$0xff]  }
 0x38d   :  { %5717 = vmatpush1.bf16.msra.mxu0 %v8495_v9 }
 0x38e   :  { %5881 = vmatpush1.bf16.msra.mxu1 %v8498_v56  ;;  %5718 = vmatprep.subr.bf16.mxu0 %v8503_v23 }
 0x38f   :  { %5882 = vmatprep.subr.bf16.mxu1 %v8506_v60 }
 0x391   :  { %5719 = vmatpush1.bf16.msra.mxu0 %v8501_v61 }
 0x392   :  { %5883 = vmatpush1.bf16.msra.mxu1 %v8504_v25  ;;  %5720 = vmatprep.subr.bf16.mxu0 %v8509_v62 }
 0x393   :  { %5884 = vmatprep.subr.bf16.mxu1 %v8512_v0 }
 0x395   :  { %5721 = vmatpush1.bf16.msra.mxu0 %v8507_v1 }
 0x396   :  { %5885 = vmatpush1.bf16.msra.mxu1 %v8510_v2  ;;  %5722 = vmatprep.subr.bf16.mxu0 %v8515_v3 }
 0x397   :  { %5886 = vmatprep.subr.bf16.mxu1 %v8518_v53 }
 0x399   :  { %5723 = vmatpush1.bf16.msra.mxu0 %v8513_v5 }
 0x39a   :  { %5887 = vmatpush1.bf16.msra.mxu1 %v8516_v7  ;;  %5724 = vmatprep.subr.bf16.mxu0 %v8521_v36 }
 0x39b   :  { %5888 = vmatprep.subr.bf16.mxu1 %v8524_v8  ;;  %v8573_v8 = vld [vmem:[#allocation7 + $0x600] ss:$16 sps:$4 sm:$0xff]  }
 0x39d   :  { %5725 = vmatpush1.bf16.msra.mxu0 %v8519_v10  ;;  %v8576_v10 = vld [vmem:[#allocation7 + $0x608] ss:$16 sps:$4 sm:$0xff]  }
 0x39e   :  { %5889 = vmatpush1.bf16.msra.mxu1 %v8522_v11  ;;  %5726 = vmatprep.subr.bf16.mxu0 %v8527_v12  ;;  %v8584_v12 = vld [vmem:[#allocation7 + $0x62c] ss:$16 sps:$4 sm:$0xff]  }
 0x39f   :  { %5890 = vmatprep.subr.bf16.mxu1 %v8530_v33 }
 0x3a1   :  { %5727 = vmatpush1.bf16.msra.mxu0 %v8525_v14  ;;  %v8579_v14 = vld [vmem:[#allocation7 + $0x620] ss:$16 sps:$4 sm:$0xff]  }
 0x3a2   :  { %5891 = vmatpush1.bf16.msra.mxu1 %v8528_v15  ;;  %5728 = vmatprep.subr.bf16.mxu0 %v8533_v17  ;;  %v8582_v15 = vld [vmem:[#allocation7 + $0x628] ss:$16 sps:$4 sm:$0xff]   ;;  %v8587_v17 = vld [vmem:[#allocation7 + $0x644] ss:$16 sps:$4 sm:$0xff]  }
 0x3a3   :  { %5892 = vmatprep.subr.bf16.mxu1 %v8536_v50  ;;  %v8590_v50 = vld [vmem:[#allocation7 + $0x64c] ss:$16 sps:$4 sm:$0xff]  }
 0x3a5   :  { %5729 = vmatpush1.bf16.msra.mxu0 %v8531_v4  ;;  %v8585_v4 = vld [vmem:[#allocation7 + $0x640] ss:$16 sps:$4 sm:$0xff]  }
 0x3a6   :  { %5893 = vmatpush1.bf16.msra.mxu1 %v8534_v18  ;;  %5730 = vmatprep.subr.bf16.mxu0 %v8539_v19  ;;  %v8588_v18 = vld [vmem:[#allocation7 + $0x648] ss:$16 sps:$4 sm:$0xff]   ;;  %v8593_v19 = vld [vmem:[#allocation7 + $0x664] ss:$16 sps:$4 sm:$0xff]  }
 0x3a7   :  { %5894 = vmatprep.subr.bf16.mxu1 %v8542_v59  ;;  %v8596_v59 = vld [vmem:[#allocation7 + $0x66c] ss:$16 sps:$4 sm:$0xff]  }
 0x3a9   :  { %5731 = vmatpush1.bf16.msra.mxu0 %v8537_v20  ;;  %v8591_v20 = vld [vmem:[#allocation7 + $0x660] ss:$16 sps:$4 sm:$0xff]  }
 0x3aa   :  { %5895 = vmatpush1.bf16.msra.mxu1 %v8540_v22  ;;  %5732 = vmatprep.subr.bf16.mxu0 %v8545_v24  ;;  %v8594_v22 = vld [vmem:[#allocation7 + $0x668] ss:$16 sps:$4 sm:$0xff]   ;;  %v8599_v24 = vld [vmem:[#allocation7 + $0x684] ss:$16 sps:$4 sm:$0xff]  }
 0x3ab   :  { %5896 = vmatprep.subr.bf16.mxu1 %v8548_v21  ;;  %v8602_v21 = vld [vmem:[#allocation7 + $0x68c] ss:$16 sps:$4 sm:$0xff]  }
 0x3ad   :  { %5733 = vmatpush1.bf16.msra.mxu0 %v8543_v26  ;;  %v8597_v26 = vld [vmem:[#allocation7 + $0x680] ss:$16 sps:$4 sm:$0xff]  }
 0x3ae   :  { %5897 = vmatpush1.bf16.msra.mxu1 %v8546_v45  ;;  %5734 = vmatprep.subr.bf16.mxu0 %v8551_v27  ;;  %v8600_v45 = vld [vmem:[#allocation7 + $0x688] ss:$16 sps:$4 sm:$0xff]   ;;  %v8605_v27 = vld [vmem:[#allocation7 + $0x6a4] ss:$16 sps:$4 sm:$0xff]  }
 0x3af   :  { %5898 = vmatprep.subr.bf16.mxu1 %v8554_v13  ;;  %v8608_v13 = vld [vmem:[#allocation7 + $0x6ac] ss:$16 sps:$4 sm:$0xff]  }
 0x3b1   :  { %5735 = vmatpush1.bf16.msra.mxu0 %v8549_v28  ;;  %v8603_v28 = vld [vmem:[#allocation7 + $0x6a0] ss:$16 sps:$4 sm:$0xff]  }
 0x3b2   :  { %5899 = vmatpush1.bf16.msra.mxu1 %v8552_v29  ;;  %5736 = vmatprep.subr.bf16.mxu0 %v8557_v16  ;;  %v8606_v29 = vld [vmem:[#allocation7 + $0x6a8] ss:$16 sps:$4 sm:$0xff]   ;;  %v8611_v16 = vld [vmem:[#allocation7 + $0x6c4] ss:$16 sps:$4 sm:$0xff]  }
 0x3b3   :  { %5900 = vmatprep.subr.bf16.mxu1 %v8560_v30  ;;  %v8614_v30 = vld [vmem:[#allocation7 + $0x6cc] ss:$16 sps:$4 sm:$0xff]  }
 0x3b5   :  { %5737 = vmatpush1.bf16.msra.mxu0 %v8555_v31  ;;  %v8609_v31 = vld [vmem:[#allocation7 + $0x6c0] ss:$16 sps:$4 sm:$0xff]  }
 0x3b6   :  { %5901 = vmatpush1.bf16.msra.mxu1 %v8558_v32  ;;  %5738 = vmatprep.subr.bf16.mxu0 %v8563_v34  ;;  %v8612_v32 = vld [vmem:[#allocation7 + $0x6c8] ss:$16 sps:$4 sm:$0xff]   ;;  %v8617_v34 = vld [vmem:[#allocation7 + $0x6e4] ss:$16 sps:$4 sm:$0xff]  }
 0x3b7   :  { %5902 = vmatprep.subr.bf16.mxu1 %v8566_v57  ;;  %v8620_v57 = vld [vmem:[#allocation7 + $0x6ec] ss:$16 sps:$4 sm:$0xff]  }
 0x3b9   :  { %5739 = vmatpush1.bf16.msra.mxu0 %v8561_v35  ;;  %v8615_v35 = vld [vmem:[#allocation7 + $0x6e0] ss:$16 sps:$4 sm:$0xff]  }
 0x3ba   :  { %5903 = vmatpush1.bf16.msra.mxu1 %v8564_v63  ;;  %5740 = vmatprep.subr.bf16.mxu0 %v8569_v37  ;;  %v8618_v63 = vld [vmem:[#allocation7 + $0x6e8] ss:$16 sps:$4 sm:$0xff]   ;;  %v8623_v37 = vld [vmem:[#allocation7 + $0x704] ss:$16 sps:$4 sm:$0xff]  }
 0x3bb   :  { %5904 = vmatprep.subr.bf16.mxu1 %v8572_v49  ;;  %v8626_v49 = vld [vmem:[#allocation7 + $0x70c] ss:$16 sps:$4 sm:$0xff]  }
 0x3bd   :  { %5741 = vmatpush1.bf16.msra.mxu0 %v8567_v38  ;;  %v8621_v38 = vld [vmem:[#allocation7 + $0x700] ss:$16 sps:$4 sm:$0xff]  }
 0x3be   :  { %5905 = vmatpush1.bf16.msra.mxu1 %v8570_v39  ;;  %5751 = vmatprep.subr.bf16.mxu0 %v8575_v40  ;;  %v8624_v39 = vld [vmem:[#allocation7 + $0x708] ss:$16 sps:$4 sm:$0xff]   ;;  %v8629_v40 = vld [vmem:[#allocation7 + $0x724] ss:$16 sps:$4 sm:$0xff]  }
 0x3bf   :  { %5915 = vmatprep.subr.bf16.mxu1 %v8578_v41  ;;  %v8632_v41 = vld [vmem:[#allocation7 + $0x72c] ss:$16 sps:$4 sm:$0xff]  }
 0x3d3   :  { %v3883_v9 = vpop.f32.mrb[4].mxu0  ;;  %v9597_v23 = vpop.f32.mrb[4].mxu1 }
 0x3d4   :  { %v8174_v56 = vadd.f32 %v3883_v9, %v817_v48  ;;  %v3885_v60 = vpop.f32.mrb[5].mxu0  ;;  %v4049_v25 = vpop.f32.mrb[5].mxu1  ;;  %v8638_v48 = vld [vmem:[#allocation7 + $0x74c] ss:$16 sps:$4 sm:$0xff]   ;;  %v8641_v9 = vld [vmem:[#allocation7 + $0x764] ss:$16 sps:$4 sm:$0xff]  }
 0x3d5   :  { %v8175_v61 = vadd.f32 %v3885_v60, %v821_v51  ;;  %v3887_v62 = vpop.f32.mrb[6].mxu0  ;;  %v8177_v1 = vadd.f32 %v4049_v25, %v829_v52  ;;  %v4051_v2 = vpop.f32.mrb[6].mxu1  ;;  %v8633_v51 = vld [vmem:[#allocation7 + $0x740] ss:$16 sps:$4 sm:$0xff]   ;;  %v8636_v52 = vld [vmem:[#allocation7 + $0x748] ss:$16 sps:$4 sm:$0xff]  }
 0x3d6   :  { %v4058_v0 = vmax.f32 %v8174_v56, 0.0  ;;  %v3888_v3 = vpop.f32.mrb[7].mxu0  ;;  %v4052_v5 = vpop.f32.mrb[7].mxu1  ;;  %v8644_v56 = vld [vmem:[#allocation7 + $0x76c] ss:$16 sps:$4 sm:$0xff]   ;;  %v824_v2 = vsub.s32 6, %v9462_v44 }
 0x3d7   :  { %v4059_v53 = vmax.f32 %v8175_v61, 0.0  ;;  %v4061_v7 = vmax.f32 %v8177_v1, 0.0  ;;  %v8639_v60 = vld [vmem:[#allocation7 + $0x760] ss:$16 sps:$4 sm:$0xff]   ;;  %v8642_v61 = vld [vmem:[#allocation7 + $0x768] ss:$16 sps:$4 sm:$0xff]  }
 0x3d8   :  { %v4066_v11 = vpack.c.bf16 %v4058_v0, %v4058_v0  ;;  %v8647_v25 = vld [vmem:[#allocation7 + $0x784] ss:$16 sps:$4 sm:$0xff]   ;;  %v8650_v62 = vld [vmem:[#allocation7 + $0x78c] ss:$16 sps:$4 sm:$0xff]   ;;  %v8645_v0 = vld [vmem:[#allocation7 + $0x780] ss:$16 sps:$4 sm:$0xff]  }
 0x3d9   :  { %v4067_v36 = vpack.c.bf16 %v4059_v53, %v4059_v53  ;;  %v4069_v33 = vpack.c.bf16 %v4061_v7, %v4061_v7  ;;  %v8648_v1 = vld [vmem:[#allocation7 + $0x788] ss:$16 sps:$4 sm:$0xff]   ;;  %v8653_v3 = vld [vmem:[#allocation7 + $0x7a4] ss:$16 sps:$4 sm:$0xff]   ;;  %v8656_v53 = vld [vmem:[#allocation7 + $0x7ac] ss:$16 sps:$4 sm:$0xff]  }
 0x3da   :  { %v8651_v5 = vld [vmem:[#allocation7 + $0x7a0] ss:$16 sps:$4 sm:$0xff]   ;;  %v8654_v7 = vld [vmem:[#allocation7 + $0x7a8] ss:$16 sps:$4 sm:$0xff]  }
 0x3db   :  { %5742 = vmatprep.mubr.bf16.mxu0 %v4067_v36  ;;  %5906 = vmatprep.mubr.bf16.mxu1 %v4067_v36  ;;  %v8825_v36 = vld [vmem:[#allocation5] sm:$0xff] }
 0x3dc   :  { %5743 = vmatmul.mubr.bf16.vlgmr.msra.gmra.mrb[8].mxu0 %v4066_v11  ;;  %5907 = vmatmul.mubr.bf16.vlgmr.msra.gmra.mrb[8].mxu1 %v4066_v11  ;;  %v8662_v11 = vld [vmem:[#allocation7 + $0x7cc] ss:$16 sps:$4 sm:$0xff]  }
 0x3dd   :  { %5752 = vmatpush1.bf16.msra.mxu0 %v8573_v8  ;;  %5916 = vmatpush1.bf16.msra.mxu1 %v8576_v10  ;;  %v825_v8 = vrot.slane %v8825_v36, %v824_v2  ;;  %v8659_v10 = vld [vmem:[#allocation7 + $0x7c4] ss:$16 sps:$4 sm:$0xff]  }
 0x3de   :  { %5783 = vmatprep.mubr.bf16.mxu0 %v4069_v33  ;;  %5947 = vmatprep.mubr.bf16.mxu1 %v4069_v33  ;;  %v8779_v2 = vld [vmem:[#allocation13 + $0x44] ss:$8 sps:$4 sm:$0xff]   ;;  %v8783_v36 = vld [vmem:[#allocation13 + $0x60] ss:$8 sps:$4 sm:$0xff]   ;;  %v8812_v44 = vld [vmem:[#allocation13 + $0xf4] ss:$8 sps:$4 sm:$0xff]  }
 0x3df   :  { %5753 = vmatprep.subr.bf16.mxu0 %v8581_v58  ;;  %5917 = vmatprep.subr.bf16.mxu1 %v8584_v12  ;;  %v8657_v58 = vld [vmem:[#allocation7 + $0x7c0] ss:$16 sps:$4 sm:$0xff]   ;;  %v8660_v12 = vld [vmem:[#allocation7 + $0x7c8] ss:$16 sps:$4 sm:$0xff]   ;;  %v8176_v33 = vadd.f32 %v9597_v23, %v825_v8  ;;  %v8672_v23 = vld [vmem:[#allocation10 + $0x10] ss:$8 sps:$4 sm:$0xff]  }
 0x3e0   :  { %v8788_v8 = vld [vmem:[#allocation13 + $0x74] ss:$8 sps:$4 sm:$0xff]  }
 0x3e1   :  { %5754 = vmatpush1.bf16.msra.mxu0 %v8579_v14  ;;  %5918 = vmatpush1.bf16.msra.mxu1 %v8582_v15  ;;  %v8665_v14 = vld [vmem:[#allocation7 + $0x7e4] ss:$16 sps:$4 sm:$0xff]   ;;  %v8668_v15 = vld [vmem:[#allocation7 + $0x7ec] ss:$16 sps:$4 sm:$0xff]  }
 0x3e2   :  { %5755 = vmatprep.subr.bf16.mxu0 %v8587_v17  ;;  %5919 = vmatprep.subr.bf16.mxu1 %v8590_v50  ;;  %v8663_v17 = vld [vmem:[#allocation7 + $0x7e0] ss:$16 sps:$4 sm:$0xff]   ;;  %v8666_v50 = vld [vmem:[#allocation7 + $0x7e8] ss:$16 sps:$4 sm:$0xff]  }
 0x3e5   :  { %5756 = vmatpush1.bf16.msra.mxu0 %v8585_v4  ;;  %5920 = vmatpush1.bf16.msra.mxu1 %v8588_v18  ;;  %v4060_v4 = vmax.f32 %v8176_v33, 0.0  ;;  %v8671_v18 = vld [vmem:[#allocation10 + $0x4] ss:$8 sps:$4 sm:$0xff]   ;;  %v8792_v33 = vld [vmem:[#allocation13 + $0x90] ss:$8 sps:$4 sm:$0xff]  }
 0x3e6   :  { %5757 = vmatprep.subr.bf16.mxu0 %v8593_v19  ;;  %5921 = vmatprep.subr.bf16.mxu1 %v8596_v59  ;;  %v8669_v19 = vld [vmem:[#allocation10] ss:$8 sps:$4 sm:$0xff]  }
 0x3e7   :  { %v4068_v59 = vpack.c.bf16 %v4060_v4, %v4060_v4  ;;  %v8803_v4 = vld [vmem:[#allocation13 + $0xc4] ss:$8 sps:$4 sm:$0xff]  }
 0x3e9   :  { %5758 = vmatpush1.bf16.msra.mxu0 %v8591_v20  ;;  %5922 = vmatpush1.bf16.msra.mxu1 %v8594_v22  ;;  %v8674_v20 = vld [vmem:[#allocation10 + $0x14] ss:$8 sps:$4 sm:$0xff]   ;;  %v8677_v22 = vld [vmem:[#allocation10 + $0x24] ss:$8 sps:$4 sm:$0xff]  }
 0x3ea   :  { %5759 = vmatprep.subr.bf16.mxu0 %v8599_v24  ;;  %5923 = vmatprep.subr.bf16.mxu1 %v8602_v21  ;;  %v8675_v24 = vld [vmem:[#allocation10 + $0x20] ss:$8 sps:$4 sm:$0xff]   ;;  %v8680_v21 = vld [vmem:[#allocation10 + $0x34] ss:$8 sps:$4 sm:$0xff]  }
 0x3ed   :  { %5760 = vmatpush1.bf16.msra.mxu0 %v8597_v26  ;;  %5924 = vmatpush1.bf16.msra.mxu1 %v8600_v45  ;;  %v8678_v26 = vld [vmem:[#allocation10 + $0x30] ss:$8 sps:$4 sm:$0xff]   ;;  %v8683_v45 = vld [vmem:[#allocation10 + $0x44] ss:$8 sps:$4 sm:$0xff]  }
 0x3ee   :  { %5761 = vmatprep.subr.bf16.mxu0 %v8605_v27  ;;  %5925 = vmatprep.subr.bf16.mxu1 %v8608_v13  ;;  %v8681_v27 = vld [vmem:[#allocation10 + $0x40] ss:$8 sps:$4 sm:$0xff]   ;;  %v8686_v13 = vld [vmem:[#allocation10 + $0x54] ss:$8 sps:$4 sm:$0xff]  }
 0x3f1   :  { %5762 = vmatpush1.bf16.msra.mxu0 %v8603_v28  ;;  %5926 = vmatpush1.bf16.msra.mxu1 %v8606_v29  ;;  %v8684_v28 = vld [vmem:[#allocation10 + $0x50] ss:$8 sps:$4 sm:$0xff]   ;;  %v8689_v29 = vld [vmem:[#allocation10 + $0x64] ss:$8 sps:$4 sm:$0xff]  }
 0x3f2   :  { %5763 = vmatprep.subr.bf16.mxu0 %v8611_v16  ;;  %5927 = vmatprep.subr.bf16.mxu1 %v8614_v30  ;;  %v8687_v16 = vld [vmem:[#allocation10 + $0x60] ss:$8 sps:$4 sm:$0xff]   ;;  %v8692_v30 = vld [vmem:[#allocation10 + $0x74] ss:$8 sps:$4 sm:$0xff]  }
 0x3f5   :  { %5764 = vmatpush1.bf16.msra.mxu0 %v8609_v31  ;;  %5928 = vmatpush1.bf16.msra.mxu1 %v8612_v32  ;;  %v8690_v31 = vld [vmem:[#allocation10 + $0x70] ss:$8 sps:$4 sm:$0xff]   ;;  %v8695_v32 = vld [vmem:[#allocation10 + $0x84] ss:$8 sps:$4 sm:$0xff]  }
 0x3f6   :  { %5765 = vmatprep.subr.bf16.mxu0 %v8617_v34  ;;  %5929 = vmatprep.subr.bf16.mxu1 %v8620_v57  ;;  %v8693_v34 = vld [vmem:[#allocation10 + $0x80] ss:$8 sps:$4 sm:$0xff]   ;;  %v8698_v57 = vld [vmem:[#allocation10 + $0x94] ss:$8 sps:$4 sm:$0xff]  }
 0x3f9   :  { %5766 = vmatpush1.bf16.msra.mxu0 %v8615_v35  ;;  %5930 = vmatpush1.bf16.msra.mxu1 %v8618_v63  ;;  %v8696_v35 = vld [vmem:[#allocation10 + $0x90] ss:$8 sps:$4 sm:$0xff]   ;;  %v8701_v63 = vld [vmem:[#allocation10 + $0xa4] ss:$8 sps:$4 sm:$0xff]  }
 0x3fa   :  { %5767 = vmatprep.subr.bf16.mxu0 %v8623_v37  ;;  %5931 = vmatprep.subr.bf16.mxu1 %v8626_v49  ;;  %v8699_v37 = vld [vmem:[#allocation10 + $0xa0] ss:$8 sps:$4 sm:$0xff]   ;;  %v8704_v49 = vld [vmem:[#allocation10 + $0xb4] ss:$8 sps:$4 sm:$0xff]  }
 0x3fd   :  { %5768 = vmatpush1.bf16.msra.mxu0 %v8621_v38  ;;  %5932 = vmatpush1.bf16.msra.mxu1 %v8624_v39  ;;  %v8702_v38 = vld [vmem:[#allocation10 + $0xb0] ss:$8 sps:$4 sm:$0xff]   ;;  %v8707_v39 = vld [vmem:[#allocation10 + $0xc4] ss:$8 sps:$4 sm:$0xff]  }
 0x3fe   :  { %5769 = vmatprep.subr.bf16.mxu0 %v8629_v40  ;;  %5933 = vmatprep.subr.bf16.mxu1 %v8632_v41  ;;  %v8705_v40 = vld [vmem:[#allocation10 + $0xc0] ss:$8 sps:$4 sm:$0xff]   ;;  %v8710_v41 = vld [vmem:[#allocation10 + $0xd4] ss:$8 sps:$4 sm:$0xff]  }
 0x401   :  { %5770 = vmatpush1.bf16.msra.mxu0 %v8627_v42  ;;  %5934 = vmatpush1.bf16.msra.mxu1 %v8630_v46  ;;  %v8708_v42 = vld [vmem:[#allocation10 + $0xd0] ss:$8 sps:$4 sm:$0xff]   ;;  %v8713_v46 = vld [vmem:[#allocation10 + $0xe4] ss:$8 sps:$4 sm:$0xff]  }
 0x402   :  { %5771 = vmatprep.subr.bf16.mxu0 %v8635_v47  ;;  %5935 = vmatprep.subr.bf16.mxu1 %v8638_v48  ;;  %v8711_v47 = vld [vmem:[#allocation10 + $0xe0] ss:$8 sps:$4 sm:$0xff]   ;;  %v8716_v48 = vld [vmem:[#allocation10 + $0xf4] ss:$8 sps:$4 sm:$0xff]  }
 0x405   :  { %5772 = vmatpush1.bf16.msra.mxu0 %v8633_v51  ;;  %5936 = vmatpush1.bf16.msra.mxu1 %v8636_v52  ;;  %v8714_v51 = vld [vmem:[#allocation10 + $0xf0] ss:$8 sps:$4 sm:$0xff]   ;;  %v8719_v52 = vld [vmem:[#allocation10 + $0x104] ss:$8 sps:$4 sm:$0xff]  }
 0x406   :  { %5773 = vmatprep.subr.bf16.mxu0 %v8641_v9  ;;  %5937 = vmatprep.subr.bf16.mxu1 %v8644_v56  ;;  %v8765_v9 = vld [vmem:[#allocation13] ss:$8 sps:$4 sm:$0xff]   ;;  %v8767_v56 = vld [vmem:[#allocation13 + $0x4] ss:$8 sps:$4 sm:$0xff]  }
 0x409   :  { %5774 = vmatpush1.bf16.msra.mxu0 %v8639_v60  ;;  %5938 = vmatpush1.bf16.msra.mxu1 %v8642_v61  ;;  %v8770_v60 = vld [vmem:[#allocation13 + $0x14] ss:$8 sps:$4 sm:$0xff]   ;;  %v8768_v61 = vld [vmem:[#allocation13 + $0x10] ss:$8 sps:$4 sm:$0xff]  }
 0x40a   :  { %5775 = vmatprep.subr.bf16.mxu0 %v8647_v25  ;;  %5939 = vmatprep.subr.bf16.mxu1 %v8650_v62  ;;  %v8773_v25 = vld [vmem:[#allocation13 + $0x24] ss:$8 sps:$4 sm:$0xff]   ;;  %v8771_v62 = vld [vmem:[#allocation13 + $0x20] ss:$8 sps:$4 sm:$0xff]  }
 0x40d   :  { %5776 = vmatpush1.bf16.msra.mxu0 %v8645_v0  ;;  %5940 = vmatpush1.bf16.msra.mxu1 %v8648_v1  ;;  %v8776_v0 = vld [vmem:[#allocation13 + $0x34] ss:$8 sps:$4 sm:$0xff]   ;;  %v8774_v1 = vld [vmem:[#allocation13 + $0x30] ss:$8 sps:$4 sm:$0xff]  }
 0x40e   :  { %5777 = vmatprep.subr.bf16.mxu0 %v8653_v3  ;;  %5941 = vmatprep.subr.bf16.mxu1 %v8656_v53  ;;  %v8777_v3 = vld [vmem:[#allocation13 + $0x40] ss:$8 sps:$4 sm:$0xff]   ;;  %v8782_v53 = vld [vmem:[#allocation13 + $0x54] ss:$8 sps:$4 sm:$0xff]  }
 0x411   :  { %5778 = vmatpush1.bf16.msra.mxu0 %v8651_v5  ;;  %5942 = vmatpush1.bf16.msra.mxu1 %v8654_v7  ;;  %v8780_v5 = vld [vmem:[#allocation13 + $0x50] ss:$8 sps:$4 sm:$0xff]   ;;  %v8785_v7 = vld [vmem:[#allocation13 + $0x64] ss:$8 sps:$4 sm:$0xff]  }
 0x412   :  { %5779 = vmatprep.subr.bf16.mxu0 %v8659_v10  ;;  %5943 = vmatprep.subr.bf16.mxu1 %v8662_v11  ;;  %v8786_v10 = vld [vmem:[#allocation13 + $0x70] ss:$8 sps:$4 sm:$0xff]   ;;  %v8791_v11 = vld [vmem:[#allocation13 + $0x84] ss:$8 sps:$4 sm:$0xff]  }
 0x415   :  { %5780 = vmatpush1.bf16.msra.mxu0 %v8657_v58  ;;  %5944 = vmatpush1.bf16.msra.mxu1 %v8660_v12  ;;  %v8789_v58 = vld [vmem:[#allocation13 + $0x80] ss:$8 sps:$4 sm:$0xff]   ;;  %v8794_v12 = vld [vmem:[#allocation13 + $0x94] ss:$8 sps:$4 sm:$0xff]  }
 0x416   :  { %5781 = vmatprep.subr.bf16.mxu0 %v8665_v14  ;;  %5945 = vmatprep.subr.bf16.mxu1 %v8668_v15  ;;  %v8797_v14 = vld [vmem:[#allocation13 + $0xa4] ss:$8 sps:$4 sm:$0xff]   ;;  %v8795_v15 = vld [vmem:[#allocation13 + $0xa0] ss:$8 sps:$4 sm:$0xff]  }
 0x419   :  { %5782 = vmatpush1.bf16.msra.mxu0 %v8663_v17  ;;  %5946 = vmatpush1.bf16.msra.mxu1 %v8666_v50  ;;  %v8800_v17 = vld [vmem:[#allocation13 + $0xb4] ss:$8 sps:$4 sm:$0xff]   ;;  %v8798_v50 = vld [vmem:[#allocation13 + $0xb0] ss:$8 sps:$4 sm:$0xff]  }
 0x41a   :  { %6360 = vmatprep.subr.bf16.mxu0 %v8671_v18  ;;  %6650 = vmatprep.subr.bf16.mxu1 %v8767_v56  ;;  %v8801_v18 = vld [vmem:[#allocation13 + $0xc0] ss:$8 sps:$4 sm:$0xff]  }
 0x41b   :  { %v8735_v56 = vld [vmem:[#allocation10 + $0x160] ss:$8 sps:$4 sm:$0xff]  }
 0x41c   :  { %5784 = vmatmul.mubr.bf16.vlgmr.msra.gmra.mrb[8].mxu0 %v4068_v59  ;;  %5948 = vmatmul.mubr.bf16.vlgmr.msra.gmra.mrb[8].mxu1 %v4068_v59  ;;  %v9601_v59 = vld [vmem:[#allocation8] sm:$0xf] }
 0x41d   :  { %6361 = vmatpush1.bf16.msra.mxu0 %v8669_v19  ;;  %6651 = vmatpush1.bf16.msra.mxu1 %v8765_v9  ;;  %v8806_v19 = vld [vmem:[#allocation13 + $0xd4] ss:$8 sps:$4 sm:$0xff]   ;;  %v8737_v9 = vld [vmem:[#allocation10 + $0x164] ss:$8 sps:$4 sm:$0xff]  }
 0x41e   :  { %6362 = vmatprep.subr.bf16.mxu0 %v8674_v20  ;;  %6652 = vmatprep.subr.bf16.mxu1 %v8770_v60  ;;  %v8804_v20 = vld [vmem:[#allocation13 + $0xd0] ss:$8 sps:$4 sm:$0xff]  }
 0x41f   :  { %v8740_v60 = vld [vmem:[#allocation10 + $0x174] ss:$8 sps:$4 sm:$0xff]  }
 0x421   :  { %6363 = vmatpush1.bf16.msra.mxu0 %v8672_v23  ;;  %6653 = vmatpush1.bf16.msra.mxu1 %v8768_v61  ;;  %v4331_v23 = vrot.slane %v9601_v59, %v9576_v6  ;;  %v8738_v61 = vld [vmem:[#allocation10 + $0x170] ss:$8 sps:$4 sm:$0xff]  }
 0x422   :  { %6364 = vmatprep.subr.bf16.mxu0 %v8677_v22  ;;  %6654 = vmatprep.subr.bf16.mxu1 %v8773_v25  ;;  %v4335_v22 = vrot.slane %v9601_v59, %v9566_v55  ;;  %v8743_v25 = vld [vmem:[#allocation10 + $0x184] ss:$8 sps:$4 sm:$0xff]  }
 0x425   :  { %6365 = vmatpush1.bf16.msra.mxu0 %v8675_v24  ;;  %6655 = vmatpush1.bf16.msra.mxu1 %v8771_v62  ;;  %v4343_v24 = vrot.slane %v9601_v59, %v812_v43  ;;  %v8722_v43 = vld [vmem:[#allocation10 + $0x114] ss:$8 sps:$4 sm:$0xff]   ;;  %v8741_v62 = vld [vmem:[#allocation10 + $0x180] ss:$8 sps:$4 sm:$0xff]  }
 0x426   :  { %6366 = vmatprep.subr.bf16.mxu0 %v8680_v21  ;;  %6656 = vmatprep.subr.bf16.mxu1 %v8776_v0  ;;  %v8746_v0 = vld [vmem:[#allocation10 + $0x194] ss:$8 sps:$4 sm:$0xff]  }
 0x429   :  { %6367 = vmatpush1.bf16.msra.mxu0 %v8678_v26  ;;  %6657 = vmatpush1.bf16.msra.mxu1 %v8774_v1  ;;  %v8744_v1 = vld [vmem:[#allocation10 + $0x190] ss:$8 sps:$4 sm:$0xff]  }
 0x42a   :  { %6368 = vmatprep.subr.bf16.mxu0 %v8683_v45  ;;  %6658 = vmatprep.subr.bf16.mxu1 %v8779_v2  ;;  %v8749_v2 = vld [vmem:[#allocation10 + $0x1a4] ss:$8 sps:$4 sm:$0xff]  }
 0x42d   :  { %6369 = vmatpush1.bf16.msra.mxu0 %v8681_v27  ;;  %6659 = vmatpush1.bf16.msra.mxu1 %v8777_v3  ;;  %v8747_v3 = vld [vmem:[#allocation10 + $0x1a0] ss:$8 sps:$4 sm:$0xff]  }
 0x42e   :  { %6370 = vmatprep.subr.bf16.mxu0 %v8686_v13  ;;  %6660 = vmatprep.subr.bf16.mxu1 %v8782_v53  ;;  %v8752_v53 = vld [vmem:[#allocation10 + $0x1b4] ss:$8 sps:$4 sm:$0xff]  }
 0x431   :  { %6371 = vmatpush1.bf16.msra.mxu0 %v8684_v28  ;;  %6661 = vmatpush1.bf16.msra.mxu1 %v8780_v5  ;;  %v8750_v5 = vld [vmem:[#allocation10 + $0x1b0] ss:$8 sps:$4 sm:$0xff]  }
 0x432   :  { %6372 = vmatprep.subr.bf16.mxu0 %v8689_v29  ;;  %6662 = vmatprep.subr.bf16.mxu1 %v8785_v7  ;;  %v8755_v7 = vld [vmem:[#allocation10 + $0x1c4] ss:$8 sps:$4 sm:$0xff]  }
 0x435   :  { %6373 = vmatpush1.bf16.msra.mxu0 %v8687_v16  ;;  %6663 = vmatpush1.bf16.msra.mxu1 %v8783_v36  ;;  %v8753_v36 = vld [vmem:[#allocation10 + $0x1c0] ss:$8 sps:$4 sm:$0xff]  }
 0x436   :  { %6374 = vmatprep.subr.bf16.mxu0 %v8692_v30  ;;  %6664 = vmatprep.subr.bf16.mxu1 %v8788_v8  ;;  %v8758_v8 = vld [vmem:[#allocation10 + $0x1d4] ss:$8 sps:$4 sm:$0xff]  }
 0x439   :  { %6375 = vmatpush1.bf16.msra.mxu0 %v8690_v31  ;;  %6665 = vmatpush1.bf16.msra.mxu1 %v8786_v10  ;;  %v8756_v10 = vld [vmem:[#allocation10 + $0x1d0] ss:$8 sps:$4 sm:$0xff]  }
 0x43a   :  { %6376 = vmatprep.subr.bf16.mxu0 %v8695_v32  ;;  %6666 = vmatprep.subr.bf16.mxu1 %v8791_v11  ;;  %v4339_v11 = vrot.slane %v9601_v59, %v808_v54  ;;  %v8810_v54 = vld [vmem:[#allocation13 + $0xf0] ss:$8 sps:$4 sm:$0xff]  }
 0x43b   :  { %v6696_v59 = vld [vmem:[#allocation16 + $0x18] sm:$0xff] }
 0x43d   :  { %6377 = vmatpush1.bf16.msra.mxu0 %v8693_v34  ;;  %6667 = vmatpush1.bf16.msra.mxu1 %v8789_v58  ;;  %v8761_v58 = vld [vmem:[#allocation10 + $0x1e4] ss:$8 sps:$4 sm:$0xff]  }
 0x43e   :  { %6378 = vmatprep.subr.bf16.mxu0 %v8698_v57  ;;  %6668 = vmatprep.subr.bf16.mxu1 %v8794_v12  ;;  %v8759_v12 = vld [vmem:[#allocation10 + $0x1e0] ss:$8 sps:$4 sm:$0xff]  }
 0x441   :  { %6379 = vmatpush1.bf16.msra.mxu0 %v8696_v35  ;;  %6669 = vmatpush1.bf16.msra.mxu1 %v8792_v33 }
 0x442   :  { %6380 = vmatprep.subr.bf16.mxu0 %v8701_v63  ;;  %6670 = vmatprep.subr.bf16.mxu1 %v8797_v14  ;;  %v8764_v14 = vld [vmem:[#allocation10 + $0x1f4] ss:$8 sps:$4 sm:$0xff]  }
 0x445   :  { %6381 = vmatpush1.bf16.msra.mxu0 %v8699_v37  ;;  %6671 = vmatpush1.bf16.msra.mxu1 %v8795_v15  ;;  %v8717_v37 = vld [vmem:[#allocation10 + $0x100] ss:$8 sps:$4 sm:$0xff]   ;;  %v8762_v15 = vld [vmem:[#allocation10 + $0x1f0] ss:$8 sps:$4 sm:$0xff]  }
 0x446   :  { %6382 = vmatprep.subr.bf16.mxu0 %v8704_v49  ;;  %6672 = vmatprep.subr.bf16.mxu1 %v8800_v17 }
 0x449   :  { %6383 = vmatpush1.bf16.msra.mxu0 %v8702_v38  ;;  %6673 = vmatpush1.bf16.msra.mxu1 %v8798_v50 }
 0x44a   :  { %6384 = vmatprep.subr.bf16.mxu0 %v8707_v39  ;;  %6674 = vmatprep.subr.bf16.mxu1 %v8803_v4  ;;  %v8720_v39 = vld [vmem:[#allocation10 + $0x110] ss:$8 sps:$4 sm:$0xff]  }
 0x44b   :  { %v8809_v4 = vld [vmem:[#allocation13 + $0xe4] ss:$8 sps:$4 sm:$0xff]  }
 0x44d   :  { %6385 = vmatpush1.bf16.msra.mxu0 %v8705_v40  ;;  %6675 = vmatpush1.bf16.msra.mxu1 %v8801_v18  ;;  %v8725_v40 = vld [vmem:[#allocation10 + $0x124] ss:$8 sps:$4 sm:$0xff]  }
 0x44e   :  { %6386 = vmatprep.subr.bf16.mxu0 %v8710_v41  ;;  %6676 = vmatprep.subr.bf16.mxu1 %v8806_v19  ;;  %v8723_v41 = vld [vmem:[#allocation10 + $0x120] ss:$8 sps:$4 sm:$0xff]   ;;  %v6694_v19 = vld [vmem:[#allocation16 + $0x8] sm:$0xff] }
 0x44f   :  { %v8807_v18 = vld [vmem:[#allocation13 + $0xe0] ss:$8 sps:$4 sm:$0xff]  }
 0x451   :  { %6387 = vmatpush1.bf16.msra.mxu0 %v8708_v42  ;;  %6677 = vmatpush1.bf16.msra.mxu1 %v8804_v20  ;;  %v8728_v42 = vld [vmem:[#allocation10 + $0x134] ss:$8 sps:$4 sm:$0xff]   ;;  %v8010_v20 = vpack.c.bf16 %v6696_v59, %v6694_v19 }
 0x452   :  { %6388 = vmatprep.subr.bf16.mxu0 %v8713_v46  ;;  %v8726_v46 = vld [vmem:[#allocation10 + $0x130] ss:$8 sps:$4 sm:$0xff]   ;;  %6678 = vmatprep.subr.bf16.mxu1 %v8809_v4 }
 0x453   :  { %v6698_v4 = vld [vmem:[#allocation16 + $0x28] sm:$0xff] }
 0x455   :  { %6389 = vmatpush1.bf16.msra.mxu0 %v8711_v47  ;;  %v8731_v47 = vld [vmem:[#allocation10 + $0x144] ss:$8 sps:$4 sm:$0xff]   ;;  %6679 = vmatpush1.bf16.msra.mxu1 %v8807_v18  ;;  %v6700_v18 = vld [vmem:[#allocation16 + $0x38] sm:$0xff] }
 0x456   :  { %6390 = vmatprep.subr.bf16.mxu0 %v8716_v48  ;;  %v8729_v48 = vld [vmem:[#allocation10 + $0x140] ss:$8 sps:$4 sm:$0xff]   ;;  %6680 = vmatprep.subr.bf16.mxu1 %v8812_v44  ;;  %v8014_v59 = vpack.c.bf16 %v6700_v18, %v6698_v4  ;;  %v6738_v4 = vld [vmem:[#allocation16 + $0x168] sm:$0xff] }
 0x457   :  { %v6740_v18 = vld [vmem:[#allocation16 + $0x178] sm:$0xff] }
 0x459   :  { %6391 = vmatpush1.bf16.msra.mxu0 %v8714_v51  ;;  %v8734_v51 = vld [vmem:[#allocation10 + $0x154] ss:$8 sps:$4 sm:$0xff]   ;;  %6681 = vmatpush1.bf16.msra.mxu1 %v8810_v54 }
 0x45a   :  { %6401 = vmatprep.subr.bf16.mxu0 %v8719_v52  ;;  %v8732_v52 = vld [vmem:[#allocation10 + $0x150] ss:$8 sps:$4 sm:$0xff]   ;;  %8011 = vmatprep.subr.bf16.mxu1 %v8010_v20  ;;  %v6697_v20 = vld [vmem:[#allocation16 + $0x20] sm:$0xff] }
 0x4ef   :  { %v5785_v21 = vpop.f32.mrb[8].mxu0  ;;  %v9610_v26 = vpop.f32.mrb[8].mxu1 }
 0x4f0   :  { %v8178_v45 = vadd.f32 %v5785_v21, %v4331_v23  ;;  %v5787_v27 = vpop.f32.mrb[9].mxu0  ;;  %v5951_v13 = vpop.f32.mrb[9].mxu1  ;;  %v8180_v33 = vadd.f32 %v9610_v26, %v4339_v11  ;;  %v6844_v23 = vld [vmem:[#allocation19 + $0x8] sm:$0xff]  ;;  %v6843_v21 = vld [vmem:[#allocation19] sm:$0xff]  ;;  %v6845_v26 = vld [vmem:[#allocation19 + $0x10] sm:$0xff] }
 0x4f1   :  { %v8179_v28 = vadd.f32 %v5787_v27, %v4335_v22  ;;  %v8181_v29 = vadd.f32 %v5951_v13, %v4343_v24  ;;  %v5789_v16 = vpop.f32.mrb[10].mxu0  ;;  %v5953_v30 = vpop.f32.mrb[10].mxu1  ;;  %v6846_v22 = vld [vmem:[#allocation19 + $0x18] sm:$0xff]  ;;  %v6848_v27 = vld [vmem:[#allocation19 + $0x28] sm:$0xff] }
 0x4f2   :  { %v5956_v31 = vmax.f32 %v8178_v45, 0.0  ;;  %v5790_v32 = vpop.f32.mrb[11].mxu0  ;;  %v5954_v34 = vpop.f32.mrb[11].mxu1  ;;  %v5958_v17 = vmax.f32 %v8180_v33, 0.0  ;;  %v8074_v24 = vpack.c.bf16 %v6846_v22, %v6844_v23  ;;  %v8076_v45 = vpack.c.bf16 %v6845_v26, %v6843_v21  ;;  %v6850_v13 = vld [vmem:[#allocation19 + $0x38] sm:$0xff]  ;;  %v6849_v16 = vld [vmem:[#allocation19 + $0x30] sm:$0xff] }
 0x4f3   :  { %v5957_v57 = vmax.f32 %v8179_v28, 0.0  ;;  %v5959_v35 = vmax.f32 %v8181_v29, 0.0  ;;  %v8078_v28 = vpack.c.bf16 %v6850_v13, %v6848_v27  ;;  %v6847_v29 = vld [vmem:[#allocation19 + $0x20] sm:$0xff]  ;;  %v6854_v32 = vld [vmem:[#allocation19 + $0x58] sm:$0xff]  ;;  %v6699_v23 = vld [vmem:[#allocation16 + $0x30] sm:$0xff] }
 0x4f4   :  { %v5960_v49 = vpack.c.bf16 %v5956_v31, %v5956_v31  ;;  %v5962_v50 = vpack.c.bf16 %v5958_v17, %v5958_v17  ;;  %v8080_v30 = vpack.c.bf16 %v6849_v16, %v6847_v29  ;;  %v6852_v31 = vld [vmem:[#allocation19 + $0x48] sm:$0xff]  ;;  %v8016_v21 = vpack.c.bf16 %v6699_v23, %v6697_v20  ;;  %v6744_v23 = vld [vmem:[#allocation16 + $0x198] sm:$0xff] }
 0x4f5   :  { %v5961_v63 = vpack.c.bf16 %v5957_v57, %v5957_v57  ;;  %v5963_v38 = vpack.c.bf16 %v5959_v35, %v5959_v35  ;;  %v8082_v34 = vpack.c.bf16 %v6854_v32, %v6852_v31  ;;  %v6851_v57 = vld [vmem:[#allocation19 + $0x40] sm:$0xff]  ;;  %v6853_v35 = vld [vmem:[#allocation19 + $0x50] sm:$0xff] }
 0x4f6   :  { %v6695_v17 = vld [vmem:[#allocation16 + $0x10] sm:$0xff]  ;;  %v6702_v22 = vld [vmem:[#allocation16 + $0x48] sm:$0xff] }
 0x4f7   :  { %6392 = vmatprep.mubr.bf16.mxu0 %v5961_v63  ;;  %v8084_v63 = vpack.c.bf16 %v6853_v35, %v6851_v57  ;;  %v6703_v27 = vld [vmem:[#allocation16 + $0x50] sm:$0xff]  ;;  %v6706_v13 = vld [vmem:[#allocation16 + $0x68] sm:$0xff] }
 0x4f8   :  { %6393 = vmatmul.mubr.bf16.vlgmr.msra.gmra.mrb[12].mxu0 %v5960_v49  ;;  %v6858_v49 = vld [vmem:[#allocation19 + $0x78] sm:$0xff]  ;;  %v6707_v31 = vld [vmem:[#allocation16 + $0x70] sm:$0xff]  ;;  %v6710_v32 = vld [vmem:[#allocation16 + $0x88] sm:$0xff] }
 0x4f9   :  { %6402 = vmatpush1.bf16.msra.mxu0 %v8717_v37  ;;  %6433 = vmatprep.mubr.bf16.mxu0 %v5963_v38  ;;  %v6856_v37 = vld [vmem:[#allocation19 + $0x68] sm:$0xff]  ;;  %v6855_v38 = vld [vmem:[#allocation19 + $0x60] sm:$0xff] }
 0x4fa   :  { %6403 = vmatprep.subr.bf16.mxu0 %v8722_v43  ;;  %v8086_v43 = vpack.c.bf16 %v6858_v49, %v6856_v37  ;;  %v6711_v37 = vld [vmem:[#allocation16 + $0x90] sm:$0xff]  ;;  %v6714_v49 = vld [vmem:[#allocation16 + $0xa8] sm:$0xff] }
 0x4fb   :  { %v6742_v20 = vld [vmem:[#allocation16 + $0x188] sm:$0xff] }
 0x4fd   :  { %6404 = vmatpush1.bf16.msra.mxu0 %v8720_v39  ;;  %v6857_v39 = vld [vmem:[#allocation19 + $0x70] sm:$0xff] }
 0x4fe   :  { %6405 = vmatprep.subr.bf16.mxu0 %v8725_v40  ;;  %v8088_v40 = vpack.c.bf16 %v6857_v39, %v6855_v38 }
 0x501   :  { %6406 = vmatpush1.bf16.msra.mxu0 %v8723_v41  ;;  %v6860_v41 = vld [vmem:[#allocation19 + $0x88] sm:$0xff] }
 0x502   :  { %6407 = vmatprep.subr.bf16.mxu0 %v8728_v42  ;;  %v6862_v42 = vld [vmem:[#allocation19 + $0x98] sm:$0xff] }
 0x505   :  { %6408 = vmatpush1.bf16.msra.mxu0 %v8726_v46  ;;  %v8090_v46 = vpack.c.bf16 %v6862_v42, %v6860_v41  ;;  %v6715_v41 = vld [vmem:[#allocation16 + $0xb0] sm:$0xff]  ;;  %v6718_v42 = vld [vmem:[#allocation16 + $0xc8] sm:$0xff] }
 0x506   :  { %6409 = vmatprep.subr.bf16.mxu0 %v8731_v47  ;;  %v6859_v47 = vld [vmem:[#allocation19 + $0x80] sm:$0xff] }
 0x509   :  { %6410 = vmatpush1.bf16.msra.mxu0 %v8729_v48  ;;  %v6861_v48 = vld [vmem:[#allocation19 + $0x90] sm:$0xff] }
 0x50a   :  { %6411 = vmatprep.subr.bf16.mxu0 %v8734_v51  ;;  %v8092_v51 = vpack.c.bf16 %v6861_v48, %v6859_v47 }
 0x50d   :  { %6412 = vmatpush1.bf16.msra.mxu0 %v8732_v52  ;;  %v6864_v52 = vld [vmem:[#allocation19 + $0xa8] sm:$0xff] }
 0x50e   :  { %6413 = vmatprep.subr.bf16.mxu0 %v8737_v9  ;;  %v6866_v9 = vld [vmem:[#allocation19 + $0xb8] sm:$0xff] }
 0x511   :  { %6414 = vmatpush1.bf16.msra.mxu0 %v8735_v56  ;;  %v8094_v56 = vpack.c.bf16 %v6866_v9, %v6864_v52  ;;  %v6719_v52 = vld [vmem:[#allocation16 + $0xd0] sm:$0xff]  ;;  %v6722_v9 = vld [vmem:[#allocation16 + $0xe8] sm:$0xff] }
 0x512   :  { %6415 = vmatprep.subr.bf16.mxu0 %v8740_v60  ;;  %v6863_v60 = vld [vmem:[#allocation19 + $0xa0] sm:$0xff] }
 0x515   :  { %6416 = vmatpush1.bf16.msra.mxu0 %v8738_v61  ;;  %v6865_v61 = vld [vmem:[#allocation19 + $0xb0] sm:$0xff] }
 0x516   :  { %6417 = vmatprep.subr.bf16.mxu0 %v8743_v25  ;;  %v8096_v25 = vpack.c.bf16 %v6865_v61, %v6863_v60 }
 0x519   :  { %6418 = vmatpush1.bf16.msra.mxu0 %v8741_v62  ;;  %v6868_v62 = vld [vmem:[#allocation19 + $0xc8] sm:$0xff] }
 0x51a   :  { %6419 = vmatprep.subr.bf16.mxu0 %v8746_v0  ;;  %v6870_v0 = vld [vmem:[#allocation19 + $0xd8] sm:$0xff] }
 0x51d   :  { %6420 = vmatpush1.bf16.msra.mxu0 %v8744_v1  ;;  %v8098_v1 = vpack.c.bf16 %v6870_v0, %v6868_v62  ;;  %v6723_v62 = vld [vmem:[#allocation16 + $0xf0] sm:$0xff]  ;;  %v6726_v0 = vld [vmem:[#allocation16 + $0x108] sm:$0xff] }
 0x51e   :  { %6421 = vmatprep.subr.bf16.mxu0 %v8749_v2  ;;  %v6867_v2 = vld [vmem:[#allocation19 + $0xc0] sm:$0xff] }
 0x521   :  { %6422 = vmatpush1.bf16.msra.mxu0 %v8747_v3  ;;  %v6869_v3 = vld [vmem:[#allocation19 + $0xd0] sm:$0xff] }
 0x522   :  { %6423 = vmatprep.subr.bf16.mxu0 %v8752_v53  ;;  %v8100_v53 = vpack.c.bf16 %v6869_v3, %v6867_v2 }
 0x525   :  { %6424 = vmatpush1.bf16.msra.mxu0 %v8750_v5  ;;  %v6028_v5 = vld [vmem:[#allocation11] sm:$0x3] }
 0x526   :  { %6425 = vmatprep.subr.bf16.mxu0 %v8755_v7  ;;  %v6033_v7 = vrot.slane %v6028_v5, %v9576_v6 }
 0x529   :  { %6426 = vmatpush1.bf16.msra.mxu0 %v8753_v36  ;;  %v6037_v36 = vrot.slane %v6028_v5, %v9566_v55  ;;  %v6727_v5 = vld [vmem:[#allocation16 + $0x110] sm:$0xff] }
 0x52a   :  { %6427 = vmatprep.subr.bf16.mxu0 %v8758_v8 }
 0x52d   :  { %6428 = vmatpush1.bf16.msra.mxu0 %v8756_v10 }
 0x52e   :  { %6429 = vmatprep.subr.bf16.mxu0 %v8761_v58 }
 0x531   :  { %6430 = vmatpush1.bf16.msra.mxu0 %v8759_v12 }
 0x532   :  { %6431 = vmatprep.subr.bf16.mxu0 %v8764_v14 }
 0x535   :  { %6432 = vmatpush1.bf16.msra.mxu0 %v8762_v15  ;;  %v6693_v15 = vld [vmem:[#allocation16] sm:$0xff] }
 0x536   :  { %8075 = vmatprep.subr.bf16.mxu0 %v8074_v24  ;;  %v8012_v54 = vpack.c.bf16 %v6695_v17, %v6693_v15  ;;  %v6704_v24 = vld [vmem:[#allocation16 + $0x58] sm:$0xff]  ;;  %v6733_v17 = vld [vmem:[#allocation16 + $0x140] sm:$0xff] }
 0x537   :  { %v8018_v26 = vpack.c.bf16 %v6704_v24, %v6702_v22  ;;  %v8058_v24 = vpack.c.bf16 %v6744_v23, %v6742_v20  ;;  %v6977_v20 = vld [vmem:[#allocation22 + $0x78] sm:$0xff] }
 0x538   :  { %6434 = vmatmul.mubr.bf16.vlgmr.msra.gmra.mrb[12].mxu0 %v5962_v50 }
 0x539   :  { %8077 = vmatpush1.bf16.msra.mxu0 %v8076_v45  ;;  %v6701_v45 = vld [vmem:[#allocation16 + $0x40] sm:$0xff] }
 0x53a   :  { %8079 = vmatprep.subr.bf16.mxu0 %v8078_v28  ;;  %v6708_v28 = vld [vmem:[#allocation16 + $0x78] sm:$0xff]  ;;  %v8020_v29 = vpack.c.bf16 %v6703_v27, %v6701_v45  ;;  %v6746_v45 = vld [vmem:[#allocation16 + $0x1a8] sm:$0xff] }
 0x53b   :  { %v8022_v16 = vpack.c.bf16 %v6708_v28, %v6706_v13  ;;  %v6748_v27 = vld [vmem:[#allocation16 + $0x1b8] sm:$0xff] }
 0x53c   :  { %v8062_v28 = vpack.c.bf16 %v6748_v27, %v6746_v45  ;;  %v6981_v45 = vld [vmem:[#allocation22 + $0x98] sm:$0xff] }
 0x53d   :  { %8081 = vmatpush1.bf16.msra.mxu0 %v8080_v30  ;;  %v6705_v30 = vld [vmem:[#allocation16 + $0x60] sm:$0xff] }
 0x53e   :  { %8083 = vmatprep.subr.bf16.mxu0 %v8082_v34  ;;  %v6712_v34 = vld [vmem:[#allocation16 + $0x98] sm:$0xff]  ;;  %v8024_v57 = vpack.c.bf16 %v6707_v31, %v6705_v30  ;;  %v6750_v30 = vld [vmem:[#allocation16 + $0x1c8] sm:$0xff] }
 0x53f   :  { %v8026_v35 = vpack.c.bf16 %v6712_v34, %v6710_v32  ;;  %v6752_v31 = vld [vmem:[#allocation16 + $0x1d8] sm:$0xff] }
 0x540   :  { %v8066_v34 = vpack.c.bf16 %v6752_v31, %v6750_v30  ;;  %v6985_v30 = vld [vmem:[#allocation22 + $0xb8] sm:$0xff] }
 0x541   :  { %8085 = vmatpush1.bf16.msra.mxu0 %v8084_v63  ;;  %v6709_v63 = vld [vmem:[#allocation16 + $0x80] sm:$0xff] }
 0x542   :  { %8087 = vmatprep.subr.bf16.mxu0 %v8086_v43  ;;  %v6716_v43 = vld [vmem:[#allocation16 + $0xb8] sm:$0xff]  ;;  %v8028_v38 = vpack.c.bf16 %v6711_v37, %v6709_v63  ;;  %v6872_v37 = vld [vmem:[#allocation19 + $0xe8] sm:$0xff] }
 0x543   :  { %v8030_v39 = vpack.c.bf16 %v6716_v43, %v6714_v49  ;;  %v6874_v49 = vld [vmem:[#allocation19 + $0xf8] sm:$0xff] }
 0x544   :  { %v8102_v43 = vpack.c.bf16 %v6874_v49, %v6872_v37 }
 0x545   :  { %8089 = vmatpush1.bf16.msra.mxu0 %v8088_v40  ;;  %v6713_v40 = vld [vmem:[#allocation16 + $0xa0] sm:$0xff] }
 0x546   :  { %8091 = vmatprep.subr.bf16.mxu0 %v8090_v46  ;;  %v6720_v46 = vld [vmem:[#allocation16 + $0xd8] sm:$0xff]  ;;  %v8032_v47 = vpack.c.bf16 %v6715_v41, %v6713_v40  ;;  %v6871_v40 = vld [vmem:[#allocation19 + $0xe0] sm:$0xff] }
 0x547   :  { %v8034_v48 = vpack.c.bf16 %v6720_v46, %v6718_v42  ;;  %v6873_v42 = vld [vmem:[#allocation19 + $0xf0] sm:$0xff]  ;;  %v6753_v46 = vld [vmem:[#allocation16 + $0x1e0] sm:$0xff] }
 0x549   :  { %8093 = vmatpush1.bf16.msra.mxu0 %v8092_v51  ;;  %v6717_v51 = vld [vmem:[#allocation16 + $0xc0] sm:$0xff] }
 0x54a   :  { %8095 = vmatprep.subr.bf16.mxu0 %v8094_v56  ;;  %v6724_v56 = vld [vmem:[#allocation16 + $0xf8] sm:$0xff]  ;;  %v8036_v60 = vpack.c.bf16 %v6719_v52, %v6717_v51  ;;  %v9195_v52 = vmov 0.0  }
 0x54b   :  { %v8038_v61 = vpack.c.bf16 %v6724_v56, %v6722_v9  ;;  %6951 = vmatprep.mubr.f32.mxu0 %v9195_v52  ;;  %v6842_v9 = vld [vmem:[%s9642_s1] sm:$0x3]  ;;  %s9196_s1 = smov [#allocation25]  }
 0x54c   :  { %v6963_v56 = vld [vmem:[#allocation22 + $0x8] sm:$0xff]  ;;  %s7129_s20 = sshll.u32 %s9196_s1, 4  ;;  %s7130_s20 = int_to_ptr.vmem [resolvable:$true] %s7129_s20 }
 0x54d   :  { %8097 = vmatpush1.bf16.msra.mxu0 %v8096_v25  ;;  %v6721_v25 = vld [vmem:[#allocation16 + $0xe0] sm:$0xff]  ;;  %s9134_s21 = scalar_lea.vmem %s7130_s20, 64  ;;  %p9139_p1 = scmp.lt.s32.totalorder %s7130_s20, %s7130_s20 }
 0x54e   :  { %8099 = vmatprep.subr.bf16.mxu0 %v8098_v1  ;;  %v6728_v1 = vld [vmem:[#allocation16 + $0x118] sm:$0xff]  ;;  %v8040_v2 = vpack.c.bf16 %v6723_v62, %v6721_v25  ;;  %p9135_p0 = scmp.ne.s32.totalorder %s7130_s20, %s9134_s21  ;;  %p9140_p2 = scmp.lt.s32.totalorder %s9134_s21, %s9134_s21 }
 0x54f   :  { %v8042_v3 = vpack.c.bf16 %v6728_v1, %v6726_v0  ;;  %v6478_v25 = vld [vmem:[#allocation14] sm:$0x3] }
 0x550   :  { %v6483_v62 = vrot.slane %v6478_v25, %v9576_v6  ;;  %v6487_v0 = vrot.slane %v6478_v25, %v9566_v55  ;;  %v7001_v25 = vld [vmem:[#allocation22 + $0x138] sm:$0xff]  ;;  %p9141_p3 = por %p9140_p2, %p9139_p1 }
 0x551   :  { %8101 = vmatpush1.bf16.msra.mxu0 %v8100_v53  ;;  %v6725_v53 = vld [vmem:[#allocation16 + $0x100] sm:$0xff] }
 0x552   :  { %8103 = vmatprep.subr.bf16.mxu0 %v8102_v43  ;;  %v6986_v43 = vld [vmem:[#allocation22 + $0xc0] sm:$0xff]  ;;  %p9142_p4 = pnand %p9141_p3, %p9135_p0 }
 0x60b   :  { %v6435_v8 = vpop.f32.mrb[12].mxu0 }
 0x60c   :  { %v8182_v10 = vadd.f32 %v6435_v8, %v6033_v7  ;;  %v6437_v11 = vpop.f32.mrb[13].mxu0  ;;  %v6730_v7 = vld [vmem:[#allocation16 + $0x128] sm:$0xff]  ;;  %v8044_v8 = vpack.c.bf16 %v6727_v5, %v6725_v53  ;;  %v6964_v5 = vld [vmem:[#allocation22 + $0x10] sm:$0xff] }
 0x60d   :  { %v8183_v58 = vadd.f32 %v6437_v11, %v6037_v36  ;;  %v6439_v12 = vpop.f32.mrb[14].mxu0  ;;  %v6732_v36 = vld [vmem:[#allocation16 + $0x138] sm:$0xff]  ;;  %v6729_v11 = vld [vmem:[#allocation16 + $0x120] sm:$0xff] }
 0x60e   :  { %v6442_v33 = vmax.f32 %v8182_v10, 0.0  ;;  %v6440_v14 = vpop.f32.mrb[15].mxu0  ;;  %v8046_v10 = vpack.c.bf16 %v6732_v36, %v6730_v7  ;;  %v6734_v12 = vld [vmem:[#allocation16 + $0x148] sm:$0xff] }
 0x60f   :  { %v6443_v50 = vmax.f32 %v8183_v58, 0.0  ;;  %v6731_v58 = vld [vmem:[#allocation16 + $0x130] sm:$0xff]  ;;  %v6962_v53 = vld [vmem:[#allocation22] sm:$0xff] }
 0x610   :  { %v6444_v19 = vpack.c.bf16 %v6442_v33, %v6442_v33  ;;  %v6736_v33 = vld [vmem:[#allocation16 + $0x158] sm:$0xff]  ;;  %v8048_v14 = vpack.c.bf16 %v6731_v58, %v6729_v11 }
 0x611   :  { %v6445_v44 = vpack.c.bf16 %v6443_v50, %v6443_v50  ;;  %v8050_v15 = vpack.c.bf16 %v6736_v33, %v6734_v12  ;;  %v6735_v50 = vld [vmem:[#allocation16 + $0x150] sm:$0xff]  ;;  %v8108_v12 = vpack.c.bf16 %v6964_v5, %v6962_v53  ;;  %v7005_v53 = vld [vmem:[#allocation22 + $0x158] sm:$0xff] }
 0x613   :  { %6682 = vmatprep.mubr.bf16.mxu1 %v6445_v44  ;;  %v8052_v44 = vpack.c.bf16 %v6735_v50, %v6733_v17  ;;  %v6968_v17 = vld [vmem:[#allocation22 + $0x30] sm:$0xff]  ;;  %v6971_v50 = vld [vmem:[#allocation22 + $0x48] sm:$0xff] }
 0x614   :  { %6683 = vmatmul.mubr.bf16.vlgmr.msra.gmra.mrb[12].mxu1 %v6444_v19  ;;  %v6737_v19 = vld [vmem:[#allocation16 + $0x160] sm:$0xff] }
 0x615   :  { %8013 = vmatpush1.bf16.msra.mxu1 %v8012_v54  ;;  %v8054_v54 = vpack.c.bf16 %v6740_v18, %v6738_v4  ;;  %v6973_v4 = vld [vmem:[#allocation22 + $0x58] sm:$0xff] }
 0x616   :  { %8015 = vmatprep.subr.bf16.mxu1 %v8014_v59  ;;  %v6739_v59 = vld [vmem:[#allocation16 + $0x170] sm:$0xff] }
 0x617   :  { %v8056_v22 = vpack.c.bf16 %v6739_v59, %v6737_v19  ;;  %v6972_v19 = vld [vmem:[#allocation22 + $0x50] sm:$0xff]  ;;  %v6975_v59 = vld [vmem:[#allocation22 + $0x68] sm:$0xff] }
 0x619   :  { %8017 = vmatpush1.bf16.msra.mxu1 %v8016_v21  ;;  %v6741_v21 = vld [vmem:[#allocation16 + $0x180] sm:$0xff] }
 0x61a   :  { %8019 = vmatprep.subr.bf16.mxu1 %v8018_v26  ;;  %v6743_v26 = vld [vmem:[#allocation16 + $0x190] sm:$0xff] }
 0x61b   :  { %v8060_v13 = vpack.c.bf16 %v6743_v26, %v6741_v21  ;;  %v6976_v21 = vld [vmem:[#allocation22 + $0x70] sm:$0xff]  ;;  %v6979_v26 = vld [vmem:[#allocation22 + $0x88] sm:$0xff] }
 0x61d   :  { %8021 = vmatpush1.bf16.msra.mxu1 %v8020_v29  ;;  %v6745_v29 = vld [vmem:[#allocation16 + $0x1a0] sm:$0xff] }
 0x61e   :  { %8023 = vmatprep.subr.bf16.mxu1 %v8022_v16  ;;  %v6747_v16 = vld [vmem:[#allocation16 + $0x1b0] sm:$0xff] }
 0x61f   :  { %v8064_v32 = vpack.c.bf16 %v6747_v16, %v6745_v29  ;;  %v6980_v29 = vld [vmem:[#allocation22 + $0x90] sm:$0xff]  ;;  %v6983_v16 = vld [vmem:[#allocation22 + $0xa8] sm:$0xff] }
 0x621   :  { %8025 = vmatpush1.bf16.msra.mxu1 %v8024_v57  ;;  %v6749_v57 = vld [vmem:[#allocation16 + $0x1c0] sm:$0xff] }
 0x622   :  { %8027 = vmatprep.subr.bf16.mxu1 %v8026_v35  ;;  %v6751_v35 = vld [vmem:[#allocation16 + $0x1d0] sm:$0xff] }
 0x623   :  { %v8068_v63 = vpack.c.bf16 %v6751_v35, %v6749_v57  ;;  %v6984_v57 = vld [vmem:[#allocation22 + $0xb0] sm:$0xff]  ;;  %v6987_v35 = vld [vmem:[#allocation22 + $0xc8] sm:$0xff] }
 0x625   :  { %8029 = vmatpush1.bf16.msra.mxu1 %v8028_v38  ;;  %v6754_v38 = vld [vmem:[#allocation16 + $0x1e8] sm:$0xff] }
 0x626   :  { %8031 = vmatprep.subr.bf16.mxu1 %v8030_v39  ;;  %v6756_v39 = vld [vmem:[#allocation16 + $0x1f8] sm:$0xff] }
 0x627   :  { %v8070_v41 = vpack.c.bf16 %v6756_v39, %v6754_v38  ;;  %v6988_v38 = vld [vmem:[#allocation22 + $0xd0] sm:$0xff]  ;;  %v6991_v39 = vld [vmem:[#allocation22 + $0xe8] sm:$0xff] }
 0x629   :  { %8033 = vmatpush1.bf16.msra.mxu1 %v8032_v47  ;;  %v6755_v47 = vld [vmem:[#allocation16 + $0x1f0] sm:$0xff] }
 0x62a   :  { %8035 = vmatprep.subr.bf16.mxu1 %v8034_v48  ;;  %v8104_v48 = vpack.c.bf16 %v6873_v42, %v6871_v40  ;;  %v8072_v51 = vpack.c.bf16 %v6755_v47, %v6753_v46  ;;  %v6993_v40 = vld [vmem:[#allocation22 + $0xf8] sm:$0xff]  ;;  %v6990_v46 = vld [vmem:[#allocation22 + $0xe0] sm:$0xff]  ;;  %v6992_v47 = vld [vmem:[#allocation22 + $0xf0] sm:$0xff] }
 0x62b   :  { %v8134_v42 = vpack.c.bf16 %v6993_v40, %v6991_v39  ;;  %v8136_v52 = vpack.c.bf16 %v6992_v47, %v6990_v46 }
 0x62c   :  { %8105 = vmatpush1.bf16.msra.mxu0 %v8104_v48  ;;  %v6995_v48 = vld [vmem:[#allocation22 + $0x108] sm:$0xff] }
 0x62d   :  { %8037 = vmatpush1.bf16.msra.mxu1 %v8036_v60  ;;  %v6965_v60 = vld [vmem:[#allocation22 + $0x18] sm:$0xff] }
 0x62e   :  { %8039 = vmatprep.subr.bf16.mxu1 %v8038_v61  ;;  %v8106_v61 = vpack.c.bf16 %v6965_v60, %v6963_v56  ;;  %v6994_v56 = vld [vmem:[#allocation22 + $0x100] sm:$0xff]  ;;  %v6996_v60 = vld [vmem:[#allocation22 + $0x110] sm:$0xff] }
 0x62f   :  { %6952 = vmatmul.mubr.f32.vlgmr.msra.gmra.mrb[16].mxu0 %v6842_v9 }
 0x631   :  { %8041 = vmatpush1.bf16.msra.mxu1 %v8040_v2 }
 0x632   :  { %8043 = vmatprep.subr.bf16.mxu1 %v8042_v3 }
 0x635   :  { %8045 = vmatpush1.bf16.msra.mxu1 %v8044_v8  ;;  %v6967_v8 = vld [vmem:[#allocation22 + $0x28] sm:$0xff] }
 0x636   :  { %8047 = vmatprep.subr.bf16.mxu1 %v8046_v10  ;;  %v6969_v10 = vld [vmem:[#allocation22 + $0x38] sm:$0xff] }
 0x639   :  { %8049 = vmatpush1.bf16.msra.mxu1 %v8048_v14  ;;  %v8110_v14 = vpack.c.bf16 %v6969_v10, %v6967_v8  ;;  %v7004_v8 = vld [vmem:[#allocation22 + $0x150] sm:$0xff]  ;;  %v7007_v10 = vld [vmem:[#allocation22 + $0x168] sm:$0xff] }
 0x63a   :  { %8051 = vmatprep.subr.bf16.mxu1 %v8050_v15  ;;  %v6966_v15 = vld [vmem:[#allocation22 + $0x20] sm:$0xff] }
 0x63b   :  { %v8112_v18 = vpack.c.bf16 %v6968_v17, %v6966_v15  ;;  %v7011_v17 = vld [vmem:[#allocation22 + $0x188] sm:$0xff] }
 0x63d   :  { %8053 = vmatpush1.bf16.msra.mxu1 %v8052_v44  ;;  %v8114_v44 = vpack.c.bf16 %v6973_v4, %v6971_v50  ;;  %v7013_v50 = vld [vmem:[#allocation22 + $0x198] sm:$0xff] }
 0x63e   :  { %8055 = vmatprep.subr.bf16.mxu1 %v8054_v54  ;;  %v6970_v54 = vld [vmem:[#allocation22 + $0x40] sm:$0xff] }
 0x63f   :  { %v8116_v23 = vpack.c.bf16 %v6972_v19, %v6970_v54  ;;  %v7012_v54 = vld [vmem:[#allocation22 + $0x190] sm:$0xff] }
 0x641   :  { %8057 = vmatpush1.bf16.msra.mxu1 %v8056_v22  ;;  %v8118_v22 = vpack.c.bf16 %v6977_v20, %v6975_v59  ;;  %v7015_v20 = vld [vmem:[#allocation22 + $0x1a8] sm:$0xff] }
 0x642   :  { %8059 = vmatprep.subr.bf16.mxu1 %v8058_v24  ;;  %v6974_v24 = vld [vmem:[#allocation22 + $0x60] sm:$0xff] }
 0x643   :  { %v8120_v27 = vpack.c.bf16 %v6976_v21, %v6974_v24  ;;  %v7014_v24 = vld [vmem:[#allocation22 + $0x1a0] sm:$0xff]  ;;  %v7016_v21 = vld [vmem:[#allocation22 + $0x1b0] sm:$0xff] }
 0x645   :  { %8061 = vmatpush1.bf16.msra.mxu1 %v8060_v13  ;;  %v8122_v13 = vpack.c.bf16 %v6981_v45, %v6979_v26  ;;  %v7019_v26 = vld [vmem:[#allocation22 + $0x1c8] sm:$0xff]  ;;  %v8160_v45 = vpack.c.bf16 %v7016_v21, %v7014_v24 }
 0x646   :  { %8063 = vmatprep.subr.bf16.mxu1 %v8062_v28  ;;  %v6978_v28 = vld [vmem:[#allocation22 + $0x80] sm:$0xff] }
 0x647   :  { %v8124_v31 = vpack.c.bf16 %v6980_v29, %v6978_v28  ;;  %v7020_v28 = vld [vmem:[#allocation22 + $0x1d0] sm:$0xff] }
 0x649   :  { %8065 = vmatpush1.bf16.msra.mxu1 %v8064_v32  ;;  %v8126_v32 = vpack.c.bf16 %v6985_v30, %v6983_v16  ;;  %v7023_v16 = vld [vmem:[#allocation22 + $0x1e8] sm:$0xff]  ;;  %v7025_v30 = vld [vmem:[#allocation22 + $0x1f8] sm:$0xff] }
 0x64a   :  { %8067 = vmatprep.subr.bf16.mxu1 %v8066_v34  ;;  %v6982_v34 = vld [vmem:[#allocation22 + $0xa0] sm:$0xff] }
 0x64b   :  { %v8128_v37 = vpack.c.bf16 %v6984_v57, %v6982_v34  ;;  %v7022_v34 = vld [vmem:[#allocation22 + $0x1e0] sm:$0xff]  ;;  %v7024_v57 = vld [vmem:[#allocation22 + $0x1f0] sm:$0xff] }
 0x64d   :  { %8069 = vmatpush1.bf16.msra.mxu1 %v8068_v63  ;;  %v6989_v63 = vld [vmem:[#allocation22 + $0xd8] sm:$0xff] }
 0x64e   :  { %8071 = vmatprep.subr.bf16.mxu1 %v8070_v41  ;;  %v8130_v49 = vpack.c.bf16 %v6989_v63, %v6987_v35  ;;  %v8132_v41 = vpack.c.bf16 %v6988_v38, %v6986_v43  ;;  %v8168_v35 = vpack.c.bf16 %v7024_v57, %v7022_v34  ;;  %v6875_v63 = vld [vmem:[#allocation20] sm:$0x3] }
 0x64f   :  { %v6884_v43 = vrot.slane %v6875_v63, %v9566_v55 }
 0x651   :  { %8073 = vmatpush1.bf16.msra.mxu1 %v8072_v51  ;;  %v6997_v51 = vld [vmem:[#allocation22 + $0x118] sm:$0xff] }
 0x652   :  { %8107 = vmatprep.subr.bf16.mxu1 %v8106_v61  ;;  %v8138_v9 = vpack.c.bf16 %v6997_v51, %v6995_v48  ;;  %v6999_v61 = vld [vmem:[#allocation22 + $0x128] sm:$0xff] }
 0x6e7   :  { %v6684_v1 = vpop.f32.mrb[12].mxu1 }
 0x6e8   :  { %v6685_v2 = vadd.f32 %v6684_v1, %v6483_v62  ;;  %v6686_v3 = vpop.f32.mrb[13].mxu1  ;;  %v8140_v62 = vpack.c.bf16 %v6996_v60, %v6994_v56  ;;  %v6998_v1 = vld [vmem:[#allocation22 + $0x120] sm:$0xff] }
 0x6e9   :  { %v6687_v7 = vadd.f32 %v6686_v3, %v6487_v0  ;;  %v6688_v36 = vpop.f32.mrb[14].mxu1  ;;  %v8142_v0 = vpack.c.bf16 %v7001_v25, %v6999_v61  ;;  %v7003_v3 = vld [vmem:[#allocation22 + $0x148] sm:$0xff]  ;;  %v7026_v25 = vld [vmem:[#allocation23] sm:$0x3] }
 0x6ea   :  { %v6689_v11 = vpop.f32.mrb[15].mxu1  ;;  %v6691_v33 = vmax.f32 %v6685_v2, 0.0  ;;  %v7000_v2 = vld [vmem:[#allocation22 + $0x130] sm:$0xff]  ;;  %v7002_v36 = vld [vmem:[#allocation22 + $0x140] sm:$0xff] }
 0x6eb   :  { %v6692_v58 = vmax.f32 %v6687_v7, 0.0  ;;  %v8144_v5 = vpack.c.bf16 %v7000_v2, %v6998_v1  ;;  %v8146_v7 = vpack.c.bf16 %v7005_v53, %v7003_v3  ;;  %v7009_v11 = vld [vmem:[#allocation22 + $0x178] sm:$0xff] }
 0x6ed   :  { %6833 = vmatprep.mubr.f32.mxu1 %v6692_v58  ;;  %v8148_v58 = vpack.c.bf16 %v7004_v8, %v7002_v36 }
 0x6ee   :  { %6834 = vmatmul.mubr.f32.vlgmr.msra.gmra.mrb[16].mxu1 %v6691_v33  ;;  %v7006_v33 = vld [vmem:[#allocation22 + $0x160] sm:$0xff] }
 0x6ef   :  { %8109 = vmatpush1.bf16.msra.mxu1 %v8108_v12  ;;  %v8150_v12 = vpack.c.bf16 %v7009_v11, %v7007_v10 }
 0x6f0   :  { %8111 = vmatprep.subr.bf16.mxu1 %v8110_v14  ;;  %v7008_v14 = vld [vmem:[#allocation22 + $0x170] sm:$0xff] }
 0x6f1   :  { %v8152_v15 = vpack.c.bf16 %v7008_v14, %v7006_v33 }
 0x6f3   :  { %8113 = vmatpush1.bf16.msra.mxu1 %v8112_v18  ;;  %v8154_v18 = vpack.c.bf16 %v7013_v50, %v7011_v17 }
 0x6f4   :  { %8115 = vmatprep.subr.bf16.mxu1 %v8114_v44  ;;  %v7010_v44 = vld [vmem:[#allocation22 + $0x180] sm:$0xff] }
 0x6f5   :  { %v8156_v59 = vpack.c.bf16 %v7012_v54, %v7010_v44 }
 0x6f7   :  { %8117 = vmatpush1.bf16.msra.mxu1 %v8116_v23  ;;  %v7017_v23 = vld [vmem:[#allocation22 + $0x1b8] sm:$0xff] }
 0x6f8   :  { %8119 = vmatprep.subr.bf16.mxu1 %v8118_v22  ;;  %v8158_v22 = vpack.c.bf16 %v7017_v23, %v7015_v20 }
 0x6fb   :  { %8121 = vmatpush1.bf16.msra.mxu1 %v8120_v27  ;;  %v7021_v27 = vld [vmem:[#allocation22 + $0x1d8] sm:$0xff] }
 0x6fc   :  { %8123 = vmatprep.subr.bf16.mxu1 %v8122_v13  ;;  %v7018_v13 = vld [vmem:[#allocation22 + $0x1c0] sm:$0xff]  ;;  %v8162_v29 = vpack.c.bf16 %v7021_v27, %v7019_v26 }
 0x6ff   :  { %8125 = vmatpush1.bf16.msra.mxu1 %v8124_v31  ;;  %v8164_v31 = vpack.c.bf16 %v7020_v28, %v7018_v13 }
 0x700   :  { %8127 = vmatprep.subr.bf16.mxu1 %v8126_v32  ;;  %v8166_v32 = vpack.c.bf16 %v7025_v30, %v7023_v16 }
 0x702   :  { %v6953_v4 = vpop.f32.mrb[16].mxu0 }
 0x703   :  { %8129 = vmatpush1.bf16.msra.mxu1 %v8128_v37  ;;  %v6955_v19 = vpop.f32.mrb[17].mxu0  ;;  %v6880_v37 = vrot.slane %v6875_v63, %v9576_v6 }
 0x704   :  { %8131 = vmatprep.subr.bf16.mxu1 %v8130_v49  ;;  %v6757_v49 = vld [vmem:[#allocation17] sm:$0x3]  ;;  %v6956_v40 = vadd.f32 %v6955_v19, %v6884_v43 }
 0x705   :  { %v6954_v38 = vadd.f32 %v6953_v4, %v6880_v37  ;;  %v6762_v39 = vrot.slane %v6757_v49, %v9576_v6 }
 0x707   :  { %8133 = vmatpush1.bf16.msra.mxu1 %v8132_v41  ;;  %v6766_v41 = vrot.slane %v6757_v49, %v9566_v55  ;;  %8813 = vtanh.f32 %v6954_v38 }
 0x708   :  { %8135 = vmatprep.subr.bf16.mxu1 %v8134_v42  ;;  %8815 = vtanh.f32 %v6956_v40 }
 0x70b   :  { %8137 = vmatpush1.bf16.msra.mxu1 %v8136_v52 }
 0x70c   :  { %8139 = vmatprep.subr.bf16.mxu1 %v8138_v9 }
 0x70f   :  { %8141 = vmatpush1.bf16.msra.mxu1 %v8140_v62  ;;  %v7031_v62 = vrot.slane %v7026_v25, %v9576_v6 }
 0x710   :  { %8143 = vmatprep.subr.bf16.mxu1 %v8142_v0  ;;  %v7035_v0 = vrot.slane %v7026_v25, %v9566_v55 }
 0x711   :  { %v8814_v51 = vpop.eup %8813 }
 0x712   :  { %v8816_v52 = vpop.eup %8815 }
 0x713   :  { %8145 = vmatpush1.bf16.msra.mxu1 %v8144_v5 }
 0x714   :  { %8147 = vmatprep.subr.bf16.mxu1 %v8146_v7 }
 0x717   :  { %8149 = vmatpush1.bf16.msra.mxu1 %v8148_v58 }
 0x718   :  { %8151 = vmatprep.subr.bf16.mxu1 %v8150_v12 }
 0x71b   :  { %8153 = vmatpush1.bf16.msra.mxu1 %v8152_v15 }
 0x71c   :  { %8155 = vmatprep.subr.bf16.mxu1 %v8154_v18 }
 0x71f   :  { %8157 = vmatpush1.bf16.msra.mxu1 %v8156_v59 }
 0x720   :  { %8159 = vmatprep.subr.bf16.mxu1 %v8158_v22 }
 0x723   :  { %8161 = vmatpush1.bf16.msra.mxu1 %v8160_v45 }
 0x724   :  { %8163 = vmatprep.subr.bf16.mxu1 %v8162_v29 }
 0x727   :  { %8165 = vmatpush1.bf16.msra.mxu1 %v8164_v31 }
 0x728   :  { %8167 = vmatprep.subr.bf16.mxu1 %v8166_v32 }
 0x72b   :  { %8169 = vmatpush1.bf16.msra.mxu1 %v8168_v35 }
 0x7c1   :  { %v6835_v42 = vpop.f32.mrb[16].mxu1 }
 0x7c2   :  { %v6836_v46 = vadd.f32 %v6835_v42, %v6762_v39  ;;  %v6837_v47 = vpop.f32.mrb[17].mxu1 }
 0x7c3   :  { %v6838_v48 = vadd.f32 %v6837_v47, %v6766_v41 }
 0x7c4   :  { %8817 = vtanh.f32 %v6836_v46 }
 0x7c5   :  { %8819 = vtanh.f32 %v6838_v48 }
 0x7ce   :  { %v8818_v9 = vpop.eup %8817 }
 0x7cf   :  { %v8820_v56 = vpop.eup %8819  ;;  %v6960_v60 = vadd.f32 %v8818_v9, %v8814_v51 }
 0x7d0   :  { %v6961_v61 = vadd.f32 %v8820_v56, %v8816_v52 }
 0x7d2   :  { %7102 = vmatprep.mubr.f32.mxu1 %v6961_v61 }
 0x7d3   :  { %7103 = vmatmul.mubr.f32.vlgmr.msra.gmra.mrb[18].mxu1 %v6960_v60 }
 0x8a6   :  { %v7104_v1 = vpop.f32.mrb[18].mxu1 }
 0x8a7   :  { %v7105_v2 = vadd.f32 %v7104_v1, %v7031_v62  ;;  %v7106_v3 = vpop.f32.mrb[19].mxu1 }
 0x8a8   :  { %v7107_v53 = vadd.f32 %v7106_v3, %v7035_v0 }
 0x8a9   :  { %8821 = vtanh.f32 %v7105_v2 }
 0x8aa   :  { %8823 = vtanh.f32 %v7107_v53 }
 0x8b3   :  { %v8822_v5 = vpop.eup %8821 }
 0x8b4   :  { %v8824_v7 = vpop.eup %8823 }
 0x8b5   :  { %v7113_v36 = vcombine.low %v8822_v5, %v8824_v7 }
 0x8b7   :  { %8009 = vst.sshfl [vmem:[#allocation25] sm:$0x33 pattern:$0x76325410] %v7113_v36 }
 0x8b8   :  { %9145 = shalt.err (!%p9142_p4)
}
 0x8b9   :  { %s9146_s26 = scalar_lea.hbm %s9657_s16, 64 }
 0x8ba   :  { %p9147_p5 = scmp.ne.s32.totalorder %s9657_s16, %s9146_s26  ;;  %p9150_p6 = scmp.lt.u32.totalorder %s9146_s26, %s9657_s16 }
 0x8bc   :  { %p9152_p7 = pnand %p9150_p6, %p9147_p5 }
 0x8be   :  { %9155 = shalt.err (!%p9152_p7)
}
 0x8bf   :  { %7132 = dma.vmem_to_hbm [thread:$0]  %s7130_s20, 64, %s9657_s16, [#allocation4]  }
 0x8c0   :  { %9172 = dma.done.wait [#allocation4], 64  }
 0x8c1   :  { %9173 = vsyncadd [#allocation4], 4294967232 }
 0x8c2   :  { %7136 = vsyncpa [#allocation3], 1 }
 0x8c3   :  { %7137 = vsyncpa [#allocation6], 1 }
 0x8c4   :  { %7138 = vsyncpa [#allocation9], 1 }
 0x8c5   :  { %7139 = vsyncpa [#allocation12], 1 }
 0x8c6   :  { %7140 = vsyncpa [#allocation15], 1 }
 0x8c7   :  { %7141 = vsyncpa [#allocation18], 1 }
 0x8c8   :  { %7142 = vsyncpa [#allocation21], 1 }
 0x8c9   :  { %7143 = vsyncpa [#allocation24], 1 }
 0x8ca   :  { %7144 = vsyncpa [#allocation4], 1 }

</bundles_post_ra>
